<compile_context>
chip_gen: v5e
topology: v5e:2x2
jax: 0.10.0
libtpu: 0.0.40
codegen_flags: <defaults>
</compile_context>

<pallas_src>
import jax
import jax.numpy as jnp
from jax.experimental import pallas as pl
from jax.experimental.pallas import tpu as pltpu

K = 5        # Conv1d kernel_size
PAD = 2      # Conv1d padding
BN_EPS = 1e-5
N_CONV = 5   # number of conv->bn->relu->pool blocks


def _round_up(v, m):
    return (v + m - 1) // m * m


# ---------------------------------------------------------------------------
# Fused whole-network kernel (one grid step == one block of B samples)
# ---------------------------------------------------------------------------
def _fused_cnn1d_kernel(*args):
    # args layout:
    #   cols0_ref                : (L, B, K)       layer-0 im2col (bf16)
    #   conv_w[0..4]             : (K*Cin_i, Cout_i) BN-scale-folded weights (bf16)
    #   conv_b[0..4]             : (1, Cout_i)     folded BN bias (f32)
    #   w1_ref                   : (l_f*c_f, hid)  permuted fc1 weight (bf16)
    #   b1_ref                   : (1, hid)        (f32)
    #   w2_ref                   : (hid, ncls)     (bf16)
    #   b2_ref                   : (1, ncls)       (f32)
    #   o_ref                    : (B, ncls)       logits (f32)
    cols0_ref = args[0]
    conv_w = args[1:1 + N_CONV]
    conv_b = args[1 + N_CONV:1 + 2 * N_CONV]
    w1_ref, b1_ref, w2_ref, b2_ref, o_ref = args[1 + 2 * N_CONV:]

    l_in = cols0_ref.shape[0]
    bsz = cols0_ref.shape[1]

    # Layer 0 columns come pre-built from the wrapper (c_in == 1 -> K wide).
    cols = cols0_ref[...]                                  # (L, B, K) bf16
    x = None
    for i in range(N_CONV):                                # statically unrolled
        kc = cols.shape[-1]                                # K * c_in
        c_out = conv_w[i].shape[1]
        l_out = l_in // 2

        # One MXU dot per layer: M = l_in*B, contraction = K*c_in, N = c_out.
        y = jnp.dot(cols.reshape(l_in * bsz, kc), conv_w[i][...],
                    preferred_element_type=jnp.float32)    # (l_in*B, c_out) f32

        # Fused MaxPool1d(2): rows are ordered (position, batch), so adjacent
        # position pairs become two slabs -> a single VPU max.
        y = y.reshape(l_out, 2, bsz, c_out)
        pooled = jnp.maximum(y[:, 0], y[:, 1])             # (l_out, B, c_out)

        # Folded BN bias + ReLU (bias-add / ReLU commute with the max).
        x = jnp.maximum(pooled + conv_b[i][...], 0.0).astype(jnp.bfloat16)
        l_in = l_out

        if i + 1 < N_CONV:
            # Zero-pad along the (leading) length axis and build the next
            # layer's im2col: K leading-dim shifts + one lane concat.
            c_in = c_out
            zpad = jnp.zeros((PAD, bsz, c_in), jnp.bfloat16)
            xp = jnp.concatenate([zpad, x, zpad], axis=0)  # (l_in+4, B, c_in)
            cols = jnp.concatenate(
                [xp[k:k + l_in] for k in range(K)], axis=-1)  # (l_in, B, K*c_in)

    # ---- FC head: Linear -> Dropout(eval: identity) -> Linear ----
    # TODO(synk): nn.Dropout(p=0.5) training-mode random masking is not
    # implemented (identity in inference mode).
    l_f = x.shape[0]
    xcat = jnp.concatenate([x[l] for l in range(l_f)], axis=-1)  # (B, l_f*c_f)
    h = jnp.dot(xcat, w1_ref[...],
                preferred_element_type=jnp.float32) + b1_ref[...]     # (B, hid)
    logits = jnp.dot(h.astype(jnp.bfloat16), w2_ref[...],
                     preferred_element_type=jnp.float32) + b2_ref[...]
    o_ref[...] = logits


# ---------------------------------------------------------------------------
# Wrapper: fold BN, permute/reshape weights, batch-block, call once
# ---------------------------------------------------------------------------
def cnn1d_forward(params, x_ncl):
    """x_ncl: (N, 1, L) like the PyTorch NCL input. Returns (logits, 0)."""
    n, c_in0, l = x_ncl.shape
    assert c_in0 == 1
    assert l % (2 ** N_CONV) == 0, "input_size must be divisible by 2**5"

    # Batch blocking: B samples per grid step (multiple of 16 for clean tiling).
    b_tile = min(128, _round_up(n, 16))
    n_pad = _round_up(n, b_tile)

    x_nl = x_ncl[:, 0, :].astype(jnp.float32)                      # (N, L)
    if n_pad != n:
        x_nl = jnp.concatenate(
            [x_nl, jnp.zeros((n_pad - n, l), jnp.float32)], axis=0)

    # Layer-0 im2col in the wrapper (c_in == 1): cols0[p, n, k] = xpad[n, p+k].
    xpad = jnp.pad(x_nl, ((0, 0), (PAD, PAD)))                     # (n_pad, L+4)
    cols0 = jnp.stack([xpad[:, k:k + l] for k in range(K)], axis=-1)  # (n_pad, L, K)
    cols0 = jnp.transpose(cols0, (1, 0, 2)).astype(jnp.bfloat16)   # (L, n_pad, K)

    # Fold BN (eval mode) into conv weights / biases; reshape to (K*Cin, Cout).
    conv_ws, conv_bs = [], []
    for (w, b, gamma, beta, mean, var) in params["conv"]:
        scale = gamma / jnp.sqrt(var + BN_EPS)                     # (c_out,)
        w_kio = jnp.transpose(w, (2, 1, 0)) * scale[None, None, :]  # (K, Cin, Cout)
        kk, ci, co = w_kio.shape
        conv_ws.append(w_kio.reshape(kk * ci, co).astype(jnp.bfloat16))
        conv_bs.append(((b - mean) * scale + beta)[None, :].astype(jnp.float32))

    w1, b1, w2, b2 = params["fc"]
    hid = w1.shape[0]
    ncls = w2.shape[0]
    c_f = conv_ws[-1].shape[-1]
    l_f = l // 2 ** N_CONV
    # PyTorch flattens (N, C, L) channel-major; the kernel's final activation
    # is concatenated as (l, c), so permute w1 once: row index = l*c_f + c.
    w1_flat = jnp.transpose(w1.reshape(hid, c_f, l_f), (2, 1, 0)) \
                 .reshape(l_f * c_f, hid).astype(jnp.bfloat16)
    w2t = w2.T.astype(jnp.bfloat16)
    b1r = b1[None, :].astype(jnp.float32)
    b2r = b2[None, :].astype(jnp.float32)

    in_specs = [pl.BlockSpec((l, b_tile, K), lambda b: (0, b, 0))]
    for wm in conv_ws:
        in_specs.append(pl.BlockSpec(wm.shape, lambda b: (0, 0)))
    for bias in conv_bs:
        in_specs.append(pl.BlockSpec(bias.shape, lambda b: (0, 0)))
    in_specs += [
        pl.BlockSpec(w1_flat.shape, lambda b: (0, 0)),
        pl.BlockSpec(b1r.shape, lambda b: (0, 0)),
        pl.BlockSpec(w2t.shape, lambda b: (0, 0)),
        pl.BlockSpec(b2r.shape, lambda b: (0, 0)),
    ]

    out = pl.pallas_call(
        _fused_cnn1d_kernel,
        out_shape=jax.ShapeDtypeStruct((n_pad, ncls), jnp.float32),
        grid_spec=pltpu.PrefetchScalarGridSpec(
            num_scalar_prefetch=0,
            grid=(n_pad // b_tile,),
            in_specs=in_specs,
            out_specs=pl.BlockSpec((b_tile, ncls), lambda b: (b, 0)),
        ),
        compiler_params=pltpu.CompilerParams(
            dimension_semantics=("parallel",),
            vmem_limit_bytes=48 * 1024 * 1024),
    )(cols0, *conv_ws, *conv_bs, w1_flat, b1r, w2t, b2r)
    return out[:n], 0


# ---------------------------------------------------------------------------
# Parameter init (deterministic, mirrors the PyTorch module's shapes)
# ---------------------------------------------------------------------------
def init_params(key, input_size, num_classes, network_size):
    chans = [1, network_size, network_size * 2, network_size * 4,
             network_size * 8, network_size * 16]
    conv_params = []
    for i in range(N_CONV):
        c_in, c_out = chans[i], chans[i + 1]
        key, kw, kb = jax.random.split(key, 3)
        w = jax.random.normal(kw, (c_out, c_in, K), jnp.float32) \
            * (1.0 / jnp.sqrt(c_in * K))                 # PyTorch conv weight shape
        b = jax.random.normal(kb, (c_out,), jnp.float32) * 0.01
        # BatchNorm1d fresh-init running stats / affine params (eval mode)
        gamma = jnp.ones((c_out,), jnp.float32)
        beta = jnp.zeros((c_out,), jnp.float32)
        mean = jnp.zeros((c_out,), jnp.float32)
        var = jnp.ones((c_out,), jnp.float32)
        conv_params.append((w, b, gamma, beta, mean, var))

    num_conv_output = input_size // 2 ** N_CONV
    f_in = network_size * 16 * num_conv_output
    hid = network_size * 8
    key, k1, k2, k3, k4 = jax.random.split(key, 5)
    w1 = jax.random.normal(k1, (hid, f_in), jnp.float32) * (1.0 / jnp.sqrt(f_in))
    b1 = jax.random.normal(k2, (hid,), jnp.float32) * 0.01
    w2 = jax.random.normal(k3, (num_classes, hid), jnp.float32) * (1.0 / jnp.sqrt(hid))
    b2 = jax.random.normal(k4, (num_classes,), jnp.float32) * 0.01
    return {"conv": conv_params, "fc": (w1, b1, w2, b2)}


# ---------------------------------------------------------------------------
# Pure-JAX reference (eval mode) for a numerical sanity check
# ---------------------------------------------------------------------------
def _reference_forward(params, x_ncl):
    x = x_ncl.astype(jnp.float32)                              # (N, C, L)
    for (w, b, gamma, beta, mean, var) in params["conv"]:
        n, _, l = x.shape
        c_out = w.shape[0]
        xp = jnp.pad(x, ((0, 0), (0, 0), (PAD, PAD)))
        cols = jnp.stack([xp[:, :, k:k + l] for k in range(K)], axis=-1)  # (N,Cin,L,K)
        y = jnp.einsum('nilk,oik->nol', cols, w) + b[None, :, None]
        scale = gamma / jnp.sqrt(var + BN_EPS)
        y = (y - mean[None, :, None]) * scale[None, :, None] + beta[None, :, None]
        y = jnp.maximum(y, 0.0)
        x = jnp.max(y.reshape(n, c_out, l // 2, 2), axis=-1)
    w1, b1, w2, b2 = params["fc"]
    flat = x.reshape(x.shape[0], -1)                           # channel-major flatten
    h = flat @ w1.T + b1
    return h @ w2.T + b2


if __name__ == "__main__":
    input_size = 64        # must be divisible by 2**5
    num_classes = 3
    network_size = 4
    batch = 10

    key = jax.random.PRNGKey(0)
    key, kp, kx = jax.random.split(key, 3)
    params = init_params(kp, input_size, num_classes, network_size)
    x = jax.random.normal(kx, (batch, 1, input_size), jnp.float32)

    logits, aux = cnn1d_forward(params, x)
    logits = jax.block_until_ready(logits)
    assert logits.shape == (batch, num_classes)
    assert aux == 0

    ref = jax.block_until_ready(_reference_forward(params, x))
    # bf16 matmul operands (f32 accumulation) -> allow a few % of tolerance.
    assert jnp.allclose(logits, ref, atol=7e-2, rtol=7e-2), \
        float(jnp.max(jnp.abs(logits - ref)))
    print("KERNEL_OK")
</pallas_src>

<mosaic_0001>
module attributes {stable_mosaic.version = 11 : i64} {
  func.func @_fused_cnn1d_kernel(%arg0: i32, %arg1: memref<64x16x5xbf16, #tpu.memory_space<vmem>>, %arg2: memref<5x4xbf16, #tpu.memory_space<vmem>>, %arg3: memref<20x8xbf16, #tpu.memory_space<vmem>>, %arg4: memref<40x16xbf16, #tpu.memory_space<vmem>>, %arg5: memref<80x32xbf16, #tpu.memory_space<vmem>>, %arg6: memref<160x64xbf16, #tpu.memory_space<vmem>>, %arg7: memref<1x4xf32, #tpu.memory_space<vmem>>, %arg8: memref<1x8xf32, #tpu.memory_space<vmem>>, %arg9: memref<1x16xf32, #tpu.memory_space<vmem>>, %arg10: memref<1x32xf32, #tpu.memory_space<vmem>>, %arg11: memref<1x64xf32, #tpu.memory_space<vmem>>, %arg12: memref<128x32xbf16, #tpu.memory_space<vmem>>, %arg13: memref<1x32xf32, #tpu.memory_space<vmem>>, %arg14: memref<32x3xbf16, #tpu.memory_space<vmem>>, %arg15: memref<1x3xf32, #tpu.memory_space<vmem>>, %arg16: memref<16x3xf32, #tpu.memory_space<vmem>>) attributes {dimension_semantics = [#tpu.dimension_semantics<parallel>], iteration_bounds = array<i64: 1>, scalar_prefetch = 0 : i64, scratch_operands = 0 : i64, tpu.core_type = #tpu.core_type<tc>, window_params = [{transform_indices = @transform_0, window_bounds = array<i64: 64, 16, 5>}, {pipeline_mode = #tpu.pipeline_mode<synchronous>, transform_indices = @transform_1, window_bounds = array<i64: 5, 4>}, {pipeline_mode = #tpu.pipeline_mode<synchronous>, transform_indices = @transform_2, window_bounds = array<i64: 20, 8>}, {pipeline_mode = #tpu.pipeline_mode<synchronous>, transform_indices = @transform_3, window_bounds = array<i64: 40, 16>}, {pipeline_mode = #tpu.pipeline_mode<synchronous>, transform_indices = @transform_4, window_bounds = array<i64: 80, 32>}, {pipeline_mode = #tpu.pipeline_mode<synchronous>, transform_indices = @transform_5, window_bounds = array<i64: 160, 64>}, {pipeline_mode = #tpu.pipeline_mode<synchronous>, transform_indices = @transform_6, window_bounds = array<i64: 1, 4>}, {pipeline_mode = #tpu.pipeline_mode<synchronous>, transform_indices = @transform_7, window_bounds = array<i64: 1, 8>}, {pipeline_mode = #tpu.pipeline_mode<synchronous>, transform_indices = @transform_8, window_bounds = array<i64: 1, 16>}, {pipeline_mode = #tpu.pipeline_mode<synchronous>, transform_indices = @transform_9, window_bounds = array<i64: 1, 32>}, {pipeline_mode = #tpu.pipeline_mode<synchronous>, transform_indices = @transform_10, window_bounds = array<i64: 1, 64>}, {pipeline_mode = #tpu.pipeline_mode<synchronous>, transform_indices = @transform_11, window_bounds = array<i64: 128, 32>}, {pipeline_mode = #tpu.pipeline_mode<synchronous>, transform_indices = @transform_12, window_bounds = array<i64: 1, 32>}, {pipeline_mode = #tpu.pipeline_mode<synchronous>, transform_indices = @transform_13, window_bounds = array<i64: 32, 3>}, {pipeline_mode = #tpu.pipeline_mode<synchronous>, transform_indices = @transform_14, window_bounds = array<i64: 1, 3>}, {transform_indices = @transform_15, window_bounds = array<i64: 16, 3>}]} {
    %c0 = arith.constant 0 : index
    %c0_0 = arith.constant 0 : index
    %c0_1 = arith.constant 0 : index
    %0 = vector.load %arg1[%c0, %c0_0, %c0_1] : memref<64x16x5xbf16, #tpu.memory_space<vmem>>, vector<64x16x5xbf16>
    %1 = vector.shape_cast %0 : vector<64x16x5xbf16> to vector<1024x5xbf16>
    %c0_2 = arith.constant 0 : index
    %c0_3 = arith.constant 0 : index
    %2 = vector.load %arg2[%c0_2, %c0_3] : memref<5x4xbf16, #tpu.memory_space<vmem>>, vector<5x4xbf16>
    %cst = arith.constant dense<0.000000e+00> : vector<1024x4xf32>
    %3 = tpu.matmul %1, %2, %cst {dimension_numbers = #tpu.dot_dimension_numbers<[1], [0], [0], [1], [0, 0, 1, 1], [], []>} : vector<1024x5xbf16>, vector<5x4xbf16>, vector<1024x4xf32> -> vector<1024x4xf32>
    %4 = vector.shape_cast %3 : vector<1024x4xf32> to vector<32x2x16x4xf32>
    %5 = vector.extract_strided_slice %4 {offsets = [0, 0, 0, 0], sizes = [32, 1, 16, 4], strides = [1, 1, 1, 1]} : vector<32x2x16x4xf32> to vector<32x1x16x4xf32>
    %6 = vector.shape_cast %5 : vector<32x1x16x4xf32> to vector<32x16x4xf32>
    %7 = vector.extract_strided_slice %4 {offsets = [0, 1, 0, 0], sizes = [32, 1, 16, 4], strides = [1, 1, 1, 1]} : vector<32x2x16x4xf32> to vector<32x1x16x4xf32>
    %8 = vector.shape_cast %7 : vector<32x1x16x4xf32> to vector<32x16x4xf32>
    %9 = arith.maximumf %6, %8 : vector<32x16x4xf32>
    %c0_4 = arith.constant 0 : index
    %c0_5 = arith.constant 0 : index
    %10 = vector.load %arg7[%c0_4, %c0_5] : memref<1x4xf32, #tpu.memory_space<vmem>>, vector<1x4xf32>
    %11 = vector.shape_cast %10 : vector<1x4xf32> to vector<1x1x4xf32>
    %12 = vector.broadcast %11 : vector<1x1x4xf32> to vector<32x16x4xf32>
    %13 = arith.addf %9, %12 : vector<32x16x4xf32>
    %cst_6 = arith.constant 0.000000e+00 : f32
    %14 = vector.broadcast %cst_6 : f32 to vector<32x16x4xf32>
    %15 = arith.maximumf %13, %14 : vector<32x16x4xf32>
    %16 = arith.truncf %15 : vector<32x16x4xf32> to vector<32x16x4xbf16>
    %cst_7 = arith.constant 0.000000e+00 : bf16
    %17 = vector.broadcast %cst_7 : bf16 to vector<2x16x4xbf16>
    %18 = tpu.concatenate %17, %16, %17 in 0 : vector<2x16x4xbf16>, vector<32x16x4xbf16>, vector<2x16x4xbf16> -> vector<36x16x4xbf16>
    %19 = vector.extract_strided_slice %18 {offsets = [0, 0, 0], sizes = [32, 16, 4], strides = [1, 1, 1]} : vector<36x16x4xbf16> to vector<32x16x4xbf16>
    %20 = vector.extract_strided_slice %18 {offsets = [1, 0, 0], sizes = [32, 16, 4], strides = [1, 1, 1]} : vector<36x16x4xbf16> to vector<32x16x4xbf16>
    %21 = vector.extract_strided_slice %18 {offsets = [2, 0, 0], sizes = [32, 16, 4], strides = [1, 1, 1]} : vector<36x16x4xbf16> to vector<32x16x4xbf16>
    %22 = vector.extract_strided_slice %18 {offsets = [3, 0, 0], sizes = [32, 16, 4], strides = [1, 1, 1]} : vector<36x16x4xbf16> to vector<32x16x4xbf16>
    %23 = vector.extract_strided_slice %18 {offsets = [4, 0, 0], sizes = [32, 16, 4], strides = [1, 1, 1]} : vector<36x16x4xbf16> to vector<32x16x4xbf16>
    %24 = tpu.concatenate %19, %20, %21, %22, %23 in 2 : vector<32x16x4xbf16>, vector<32x16x4xbf16>, vector<32x16x4xbf16>, vector<32x16x4xbf16>, vector<32x16x4xbf16> -> vector<32x16x20xbf16>
    %25 = vector.shape_cast %24 : vector<32x16x20xbf16> to vector<512x20xbf16>
    %c0_8 = arith.constant 0 : index
    %c0_9 = arith.constant 0 : index
    %26 = vector.load %arg3[%c0_8, %c0_9] : memref<20x8xbf16, #tpu.memory_space<vmem>>, vector<20x8xbf16>
    %cst_10 = arith.constant dense<0.000000e+00> : vector<512x8xf32>
    %27 = tpu.matmul %25, %26, %cst_10 {dimension_numbers = #tpu.dot_dimension_numbers<[1], [0], [0], [1], [0, 0, 1, 1], [], []>} : vector<512x20xbf16>, vector<20x8xbf16>, vector<512x8xf32> -> vector<512x8xf32>
    %28 = vector.shape_cast %27 : vector<512x8xf32> to vector<16x2x16x8xf32>
    %29 = vector.extract_strided_slice %28 {offsets = [0, 0, 0, 0], sizes = [16, 1, 16, 8], strides = [1, 1, 1, 1]} : vector<16x2x16x8xf32> to vector<16x1x16x8xf32>
    %30 = vector.shape_cast %29 : vector<16x1x16x8xf32> to vector<16x16x8xf32>
    %31 = vector.extract_strided_slice %28 {offsets = [0, 1, 0, 0], sizes = [16, 1, 16, 8], strides = [1, 1, 1, 1]} : vector<16x2x16x8xf32> to vector<16x1x16x8xf32>
    %32 = vector.shape_cast %31 : vector<16x1x16x8xf32> to vector<16x16x8xf32>
    %33 = arith.maximumf %30, %32 : vector<16x16x8xf32>
    %c0_11 = arith.constant 0 : index
    %c0_12 = arith.constant 0 : index
    %34 = vector.load %arg8[%c0_11, %c0_12] : memref<1x8xf32, #tpu.memory_space<vmem>>, vector<1x8xf32>
    %35 = vector.shape_cast %34 : vector<1x8xf32> to vector<1x1x8xf32>
    %36 = vector.broadcast %35 : vector<1x1x8xf32> to vector<16x16x8xf32>
    %37 = arith.addf %33, %36 : vector<16x16x8xf32>
    %cst_13 = arith.constant 0.000000e+00 : f32
    %38 = vector.broadcast %cst_13 : f32 to vector<16x16x8xf32>
    %39 = arith.maximumf %37, %38 : vector<16x16x8xf32>
    %40 = arith.truncf %39 : vector<16x16x8xf32> to vector<16x16x8xbf16>
    %cst_14 = arith.constant 0.000000e+00 : bf16
    %41 = vector.broadcast %cst_14 : bf16 to vector<2x16x8xbf16>
    %42 = tpu.concatenate %41, %40, %41 in 0 : vector<2x16x8xbf16>, vector<16x16x8xbf16>, vector<2x16x8xbf16> -> vector<20x16x8xbf16>
    %43 = vector.extract_strided_slice %42 {offsets = [0, 0, 0], sizes = [16, 16, 8], strides = [1, 1, 1]} : vector<20x16x8xbf16> to vector<16x16x8xbf16>
    %44 = vector.extract_strided_slice %42 {offsets = [1, 0, 0], sizes = [16, 16, 8], strides = [1, 1, 1]} : vector<20x16x8xbf16> to vector<16x16x8xbf16>
    %45 = vector.extract_strided_slice %42 {offsets = [2, 0, 0], sizes = [16, 16, 8], strides = [1, 1, 1]} : vector<20x16x8xbf16> to vector<16x16x8xbf16>
    %46 = vector.extract_strided_slice %42 {offsets = [3, 0, 0], sizes = [16, 16, 8], strides = [1, 1, 1]} : vector<20x16x8xbf16> to vector<16x16x8xbf16>
    %47 = vector.extract_strided_slice %42 {offsets = [4, 0, 0], sizes = [16, 16, 8], strides = [1, 1, 1]} : vector<20x16x8xbf16> to vector<16x16x8xbf16>
    %48 = tpu.concatenate %43, %44, %45, %46, %47 in 2 : vector<16x16x8xbf16>, vector<16x16x8xbf16>, vector<16x16x8xbf16>, vector<16x16x8xbf16>, vector<16x16x8xbf16> -> vector<16x16x40xbf16>
    %49 = vector.shape_cast %48 : vector<16x16x40xbf16> to vector<256x40xbf16>
    %c0_15 = arith.constant 0 : index
    %c0_16 = arith.constant 0 : index
    %50 = vector.load %arg4[%c0_15, %c0_16] : memref<40x16xbf16, #tpu.memory_space<vmem>>, vector<40x16xbf16>
    %cst_17 = arith.constant dense<0.000000e+00> : vector<256x16xf32>
    %51 = tpu.matmul %49, %50, %cst_17 {dimension_numbers = #tpu.dot_dimension_numbers<[1], [0], [0], [1], [0, 0, 1, 1], [], []>} : vector<256x40xbf16>, vector<40x16xbf16>, vector<256x16xf32> -> vector<256x16xf32>
    %52 = vector.shape_cast %51 : vector<256x16xf32> to vector<8x2x16x16xf32>
    %53 = vector.extract_strided_slice %52 {offsets = [0, 0, 0, 0], sizes = [8, 1, 16, 16], strides = [1, 1, 1, 1]} : vector<8x2x16x16xf32> to vector<8x1x16x16xf32>
    %54 = vector.shape_cast %53 : vector<8x1x16x16xf32> to vector<8x16x16xf32>
    %55 = vector.extract_strided_slice %52 {offsets = [0, 1, 0, 0], sizes = [8, 1, 16, 16], strides = [1, 1, 1, 1]} : vector<8x2x16x16xf32> to vector<8x1x16x16xf32>
    %56 = vector.shape_cast %55 : vector<8x1x16x16xf32> to vector<8x16x16xf32>
    %57 = arith.maximumf %54, %56 : vector<8x16x16xf32>
    %c0_18 = arith.constant 0 : index
    %c0_19 = arith.constant 0 : index
    %58 = vector.load %arg9[%c0_18, %c0_19] : memref<1x16xf32, #tpu.memory_space<vmem>>, vector<1x16xf32>
    %59 = vector.shape_cast %58 : vector<1x16xf32> to vector<1x1x16xf32>
    %60 = vector.broadcast %59 : vector<1x1x16xf32> to vector<8x16x16xf32>
    %61 = arith.addf %57, %60 : vector<8x16x16xf32>
    %cst_20 = arith.constant 0.000000e+00 : f32
    %62 = vector.broadcast %cst_20 : f32 to vector<8x16x16xf32>
    %63 = arith.maximumf %61, %62 : vector<8x16x16xf32>
    %64 = arith.truncf %63 : vector<8x16x16xf32> to vector<8x16x16xbf16>
    %cst_21 = arith.constant 0.000000e+00 : bf16
    %65 = vector.broadcast %cst_21 : bf16 to vector<2x16x16xbf16>
    %66 = tpu.concatenate %65, %64, %65 in 0 : vector<2x16x16xbf16>, vector<8x16x16xbf16>, vector<2x16x16xbf16> -> vector<12x16x16xbf16>
    %67 = vector.extract_strided_slice %66 {offsets = [0, 0, 0], sizes = [8, 16, 16], strides = [1, 1, 1]} : vector<12x16x16xbf16> to vector<8x16x16xbf16>
    %68 = vector.extract_strided_slice %66 {offsets = [1, 0, 0], sizes = [8, 16, 16], strides = [1, 1, 1]} : vector<12x16x16xbf16> to vector<8x16x16xbf16>
    %69 = vector.extract_strided_slice %66 {offsets = [2, 0, 0], sizes = [8, 16, 16], strides = [1, 1, 1]} : vector<12x16x16xbf16> to vector<8x16x16xbf16>
    %70 = vector.extract_strided_slice %66 {offsets = [3, 0, 0], sizes = [8, 16, 16], strides = [1, 1, 1]} : vector<12x16x16xbf16> to vector<8x16x16xbf16>
    %71 = vector.extract_strided_slice %66 {offsets = [4, 0, 0], sizes = [8, 16, 16], strides = [1, 1, 1]} : vector<12x16x16xbf16> to vector<8x16x16xbf16>
    %72 = tpu.concatenate %67, %68, %69, %70, %71 in 2 : vector<8x16x16xbf16>, vector<8x16x16xbf16>, vector<8x16x16xbf16>, vector<8x16x16xbf16>, vector<8x16x16xbf16> -> vector<8x16x80xbf16>
    %73 = vector.shape_cast %72 : vector<8x16x80xbf16> to vector<128x80xbf16>
    %c0_22 = arith.constant 0 : index
    %c0_23 = arith.constant 0 : index
    %74 = vector.load %arg5[%c0_22, %c0_23] : memref<80x32xbf16, #tpu.memory_space<vmem>>, vector<80x32xbf16>
    %cst_24 = arith.constant dense<0.000000e+00> : vector<128x32xf32>
    %75 = tpu.matmul %73, %74, %cst_24 {dimension_numbers = #tpu.dot_dimension_numbers<[1], [0], [0], [1], [0, 0, 1, 1], [], []>} : vector<128x80xbf16>, vector<80x32xbf16>, vector<128x32xf32> -> vector<128x32xf32>
    %76 = vector.shape_cast %75 : vector<128x32xf32> to vector<4x2x16x32xf32>
    %77 = vector.extract_strided_slice %76 {offsets = [0, 0, 0, 0], sizes = [4, 1, 16, 32], strides = [1, 1, 1, 1]} : vector<4x2x16x32xf32> to vector<4x1x16x32xf32>
    %78 = vector.shape_cast %77 : vector<4x1x16x32xf32> to vector<4x16x32xf32>
    %79 = vector.extract_strided_slice %76 {offsets = [0, 1, 0, 0], sizes = [4, 1, 16, 32], strides = [1, 1, 1, 1]} : vector<4x2x16x32xf32> to vector<4x1x16x32xf32>
    %80 = vector.shape_cast %79 : vector<4x1x16x32xf32> to vector<4x16x32xf32>
    %81 = arith.maximumf %78, %80 : vector<4x16x32xf32>
    %c0_25 = arith.constant 0 : index
    %c0_26 = arith.constant 0 : index
    %82 = vector.load %arg10[%c0_25, %c0_26] : memref<1x32xf32, #tpu.memory_space<vmem>>, vector<1x32xf32>
    %83 = vector.shape_cast %82 : vector<1x32xf32> to vector<1x1x32xf32>
    %84 = vector.broadcast %83 : vector<1x1x32xf32> to vector<4x16x32xf32>
    %85 = arith.addf %81, %84 : vector<4x16x32xf32>
    %cst_27 = arith.constant 0.000000e+00 : f32
    %86 = vector.broadcast %cst_27 : f32 to vector<4x16x32xf32>
    %87 = arith.maximumf %85, %86 : vector<4x16x32xf32>
    %88 = arith.truncf %87 : vector<4x16x32xf32> to vector<4x16x32xbf16>
    %cst_28 = arith.constant 0.000000e+00 : bf16
    %89 = vector.broadcast %cst_28 : bf16 to vector<2x16x32xbf16>
    %90 = tpu.concatenate %89, %88, %89 in 0 : vector<2x16x32xbf16>, vector<4x16x32xbf16>, vector<2x16x32xbf16> -> vector<8x16x32xbf16>
    %91 = vector.extract_strided_slice %90 {offsets = [0, 0, 0], sizes = [4, 16, 32], strides = [1, 1, 1]} : vector<8x16x32xbf16> to vector<4x16x32xbf16>
    %92 = vector.extract_strided_slice %90 {offsets = [1, 0, 0], sizes = [4, 16, 32], strides = [1, 1, 1]} : vector<8x16x32xbf16> to vector<4x16x32xbf16>
    %93 = vector.extract_strided_slice %90 {offsets = [2, 0, 0], sizes = [4, 16, 32], strides = [1, 1, 1]} : vector<8x16x32xbf16> to vector<4x16x32xbf16>
    %94 = vector.extract_strided_slice %90 {offsets = [3, 0, 0], sizes = [4, 16, 32], strides = [1, 1, 1]} : vector<8x16x32xbf16> to vector<4x16x32xbf16>
    %95 = vector.extract_strided_slice %90 {offsets = [4, 0, 0], sizes = [4, 16, 32], strides = [1, 1, 1]} : vector<8x16x32xbf16> to vector<4x16x32xbf16>
    %96 = tpu.concatenate %91, %92, %93, %94, %95 in 2 : vector<4x16x32xbf16>, vector<4x16x32xbf16>, vector<4x16x32xbf16>, vector<4x16x32xbf16>, vector<4x16x32xbf16> -> vector<4x16x160xbf16>
    %97 = vector.shape_cast %96 : vector<4x16x160xbf16> to vector<64x160xbf16>
    %c0_29 = arith.constant 0 : index
    %c0_30 = arith.constant 0 : index
    %98 = vector.load %arg6[%c0_29, %c0_30] : memref<160x64xbf16, #tpu.memory_space<vmem>>, vector<160x64xbf16>
    %cst_31 = arith.constant dense<0.000000e+00> : vector<64x64xf32>
    %99 = tpu.matmul %97, %98, %cst_31 {dimension_numbers = #tpu.dot_dimension_numbers<[1], [0], [0], [1], [0, 0, 1, 1], [], []>} : vector<64x160xbf16>, vector<160x64xbf16>, vector<64x64xf32> -> vector<64x64xf32>
    %100 = vector.shape_cast %99 : vector<64x64xf32> to vector<2x2x16x64xf32>
    %101 = vector.extract_strided_slice %100 {offsets = [0, 0, 0, 0], sizes = [2, 1, 16, 64], strides = [1, 1, 1, 1]} : vector<2x2x16x64xf32> to vector<2x1x16x64xf32>
    %102 = vector.shape_cast %101 : vector<2x1x16x64xf32> to vector<2x16x64xf32>
    %103 = vector.extract_strided_slice %100 {offsets = [0, 1, 0, 0], sizes = [2, 1, 16, 64], strides = [1, 1, 1, 1]} : vector<2x2x16x64xf32> to vector<2x1x16x64xf32>
    %104 = vector.shape_cast %103 : vector<2x1x16x64xf32> to vector<2x16x64xf32>
    %105 = arith.maximumf %102, %104 : vector<2x16x64xf32>
    %c0_32 = arith.constant 0 : index
    %c0_33 = arith.constant 0 : index
    %106 = vector.load %arg11[%c0_32, %c0_33] : memref<1x64xf32, #tpu.memory_space<vmem>>, vector<1x64xf32>
    %107 = vector.shape_cast %106 : vector<1x64xf32> to vector<1x1x64xf32>
    %108 = vector.broadcast %107 : vector<1x1x64xf32> to vector<2x16x64xf32>
    %109 = arith.addf %105, %108 : vector<2x16x64xf32>
    %cst_34 = arith.constant 0.000000e+00 : f32
    %110 = vector.broadcast %cst_34 : f32 to vector<2x16x64xf32>
    %111 = arith.maximumf %109, %110 : vector<2x16x64xf32>
    %112 = arith.truncf %111 : vector<2x16x64xf32> to vector<2x16x64xbf16>
    %113 = vector.extract_strided_slice %112 {offsets = [0, 0, 0], sizes = [1, 16, 64], strides = [1, 1, 1]} : vector<2x16x64xbf16> to vector<1x16x64xbf16>
    %114 = vector.shape_cast %113 : vector<1x16x64xbf16> to vector<16x64xbf16>
    %115 = vector.extract_strided_slice %112 {offsets = [1, 0, 0], sizes = [1, 16, 64], strides = [1, 1, 1]} : vector<2x16x64xbf16> to vector<1x16x64xbf16>
    %116 = vector.shape_cast %115 : vector<1x16x64xbf16> to vector<16x64xbf16>
    %117 = tpu.concatenate %114, %116 in 1 : vector<16x64xbf16>, vector<16x64xbf16> -> vector<16x128xbf16>
    %c0_35 = arith.constant 0 : index
    %c0_36 = arith.constant 0 : index
    %118 = vector.load %arg12[%c0_35, %c0_36] : memref<128x32xbf16, #tpu.memory_space<vmem>>, vector<128x32xbf16>
    %cst_37 = arith.constant dense<0.000000e+00> : vector<16x32xf32>
    %119 = tpu.matmul %117, %118, %cst_37 {dimension_numbers = #tpu.dot_dimension_numbers<[1], [0], [0], [1], [0, 0, 1, 1], [], []>} : vector<16x128xbf16>, vector<128x32xbf16>, vector<16x32xf32> -> vector<16x32xf32>
    %c0_38 = arith.constant 0 : index
    %c0_39 = arith.constant 0 : index
    %120 = vector.load %arg13[%c0_38, %c0_39] : memref<1x32xf32, #tpu.memory_space<vmem>>, vector<1x32xf32>
    %121 = vector.broadcast %120 : vector<1x32xf32> to vector<16x32xf32>
    %122 = arith.addf %119, %121 : vector<16x32xf32>
    %123 = arith.truncf %122 : vector<16x32xf32> to vector<16x32xbf16>
    %c0_40 = arith.constant 0 : index
    %c0_41 = arith.constant 0 : index
    %124 = vector.load %arg14[%c0_40, %c0_41] : memref<32x3xbf16, #tpu.memory_space<vmem>>, vector<32x3xbf16>
    %cst_42 = arith.constant dense<0.000000e+00> : vector<16x3xf32>
    %125 = tpu.matmul %123, %124, %cst_42 {dimension_numbers = #tpu.dot_dimension_numbers<[1], [0], [0], [1], [0, 0, 1, 1], [], []>} : vector<16x32xbf16>, vector<32x3xbf16>, vector<16x3xf32> -> vector<16x3xf32>
    %c0_43 = arith.constant 0 : index
    %c0_44 = arith.constant 0 : index
    %126 = vector.load %arg15[%c0_43, %c0_44] : memref<1x3xf32, #tpu.memory_space<vmem>>, vector<1x3xf32>
    %127 = vector.broadcast %126 : vector<1x3xf32> to vector<16x3xf32>
    %128 = arith.addf %125, %127 : vector<16x3xf32>
    %c0_45 = arith.constant 0 : index
    %c0_46 = arith.constant 0 : index
    %129 = vector.load %arg16[%c0_45, %c0_46] : memref<16x3xf32, #tpu.memory_space<vmem>>, vector<16x3xf32>
    tpu.vector_store %arg16[%c0_45, %c0_46], %128 {strides = array<i32>} : memref<16x3xf32, #tpu.memory_space<vmem>>, vector<16x3xf32>,
    return
  }
  func.func @transform_0(%arg0: i32) -> (i32, i32, i32) {
    %c0_i32 = arith.constant 0 : i32
    %c0_i32_0 = arith.constant 0 : i32
    %c0_i32_1 = arith.constant 0 : i32
    return %c0_i32, %arg0, %c0_i32_0 : i32, i32, i32
  }
  func.func @transform_1(%arg0: i32) -> (i32, i32) {
    %c0_i32 = arith.constant 0 : i32
    %c0_i32_0 = arith.constant 0 : i32
    %c0_i32_1 = arith.constant 0 : i32
    return %c0_i32, %c0_i32_0 : i32, i32
  }
  func.func @transform_2(%arg0: i32) -> (i32, i32) {
    %c0_i32 = arith.constant 0 : i32
    %c0_i32_0 = arith.constant 0 : i32
    %c0_i32_1 = arith.constant 0 : i32
    return %c0_i32, %c0_i32_0 : i32, i32
  }
  func.func @transform_3(%arg0: i32) -> (i32, i32) {
    %c0_i32 = arith.constant 0 : i32
    %c0_i32_0 = arith.constant 0 : i32
    %c0_i32_1 = arith.constant 0 : i32
    return %c0_i32, %c0_i32_0 : i32, i32
  }
  func.func @transform_4(%arg0: i32) -> (i32, i32) {
    %c0_i32 = arith.constant 0 : i32
    %c0_i32_0 = arith.constant 0 : i32
    %c0_i32_1 = arith.constant 0 : i32
    return %c0_i32, %c0_i32_0 : i32, i32
  }
  func.func @transform_5(%arg0: i32) -> (i32, i32) {
    %c0_i32 = arith.constant 0 : i32
    %c0_i32_0 = arith.constant 0 : i32
    %c0_i32_1 = arith.constant 0 : i32
    return %c0_i32, %c0_i32_0 : i32, i32
  }
  func.func @transform_6(%arg0: i32) -> (i32, i32) {
    %c0_i32 = arith.constant 0 : i32
    %c0_i32_0 = arith.constant 0 : i32
    %c0_i32_1 = arith.constant 0 : i32
    return %c0_i32, %c0_i32_0 : i32, i32
  }
  func.func @transform_7(%arg0: i32) -> (i32, i32) {
    %c0_i32 = arith.constant 0 : i32
    %c0_i32_0 = arith.constant 0 : i32
    %c0_i32_1 = arith.constant 0 : i32
    return %c0_i32, %c0_i32_0 : i32, i32
  }
  func.func @transform_8(%arg0: i32) -> (i32, i32) {
    %c0_i32 = arith.constant 0 : i32
    %c0_i32_0 = arith.constant 0 : i32
    %c0_i32_1 = arith.constant 0 : i32
    return %c0_i32, %c0_i32_0 : i32, i32
  }
  func.func @transform_9(%arg0: i32) -> (i32, i32) {
    %c0_i32 = arith.constant 0 : i32
    %c0_i32_0 = arith.constant 0 : i32
    %c0_i32_1 = arith.constant 0 : i32
    return %c0_i32, %c0_i32_0 : i32, i32
  }
  func.func @transform_10(%arg0: i32) -> (i32, i32) {
    %c0_i32 = arith.constant 0 : i32
    %c0_i32_0 = arith.constant 0 : i32
    %c0_i32_1 = arith.constant 0 : i32
    return %c0_i32, %c0_i32_0 : i32, i32
  }
  func.func @transform_11(%arg0: i32) -> (i32, i32) {
    %c0_i32 = arith.constant 0 : i32
    %c0_i32_0 = arith.constant 0 : i32
    %c0_i32_1 = arith.constant 0 : i32
    return %c0_i32, %c0_i32_0 : i32, i32
  }
  func.func @transform_12(%arg0: i32) -> (i32, i32) {
    %c0_i32 = arith.constant 0 : i32
    %c0_i32_0 = arith.constant 0 : i32
    %c0_i32_1 = arith.constant 0 : i32
    return %c0_i32, %c0_i32_0 : i32, i32
  }
  func.func @transform_13(%arg0: i32) -> (i32, i32) {
    %c0_i32 = arith.constant 0 : i32
    %c0_i32_0 = arith.constant 0 : i32
    %c0_i32_1 = arith.constant 0 : i32
    return %c0_i32, %c0_i32_0 : i32, i32
  }
  func.func @transform_14(%arg0: i32) -> (i32, i32) {
    %c0_i32 = arith.constant 0 : i32
    %c0_i32_0 = arith.constant 0 : i32
    %c0_i32_1 = arith.constant 0 : i32
    return %c0_i32, %c0_i32_0 : i32, i32
  }
  func.func @transform_15(%arg0: i32) -> (i32, i32) {
    %c0_i32 = arith.constant 0 : i32
    %c0_i32_0 = arith.constant 0 : i32
    return %arg0, %c0_i32 : i32, i32
  }
}

</mosaic_0001>

<bundles_post_ra>
// kernel: tpu_custom_call.1
= control target key start
LH: loop header
LB: loop body
LE: loop exit
PB: predicated region body
PF: predicated region fallthrough
CT: control target
= control target key end

     0   :  { %vm693_vm0 = vcmask 1041408   ;;  %vm694_vm1 = vcmask 1042432   ;;  %v4236_v1 = vmov 65535   ;;  %vm500_vm2 = vcmask 39936   ;;  %s4238_s20 = smov 4   ;;  %s4239_s28 = smov 8   ;;  %s6103_s1 = inlined_call_operand.vmem [shape: bf16[5,4], index: 1, kind: input, shape index: {}]   ;;  %s6104_s0 = inlined_call_operand.vmem [shape: bf16[64,16,5], index: 0, kind: input, shape index: {}]   ;;  %s6105_s6 = inlined_call_operand.vmem [shape: f32[1,4], index: 6, kind: input, shape index: {}]   ;;  %s6106_s2 = inlined_call_operand.vmem [shape: bf16[20,8], index: 2, kind: input, shape index: {}]   ;;  %s6107_s7 = inlined_call_operand.vmem [shape: f32[1,8], index: 7, kind: input, shape index: {}]   ;;  %s6108_s3 = inlined_call_operand.vmem [shape: bf16[40,16], index: 3, kind: input, shape index: {}]   ;;  %s6109_s8 = inlined_call_operand.vmem [shape: f32[1,16], index: 8, kind: input, shape index: {}]   ;;  %s6110_s4 = inlined_call_operand.vmem [shape: bf16[80,32], index: 4, kind: input, shape index: {}]   ;;  %s6111_s9 = inlined_call_operand.vmem [shape: f32[1,32], index: 9, kind: input, shape index: {}]   ;;  %s6112_s5 = inlined_call_operand.vmem [shape: bf16[160,64], index: 5, kind: input, shape index: {}]   ;;  %s6113_s10 = inlined_call_operand.vmem [shape: f32[1,64], index: 10, kind: input, shape index: {}]   ;;  %s6114_s11 = inlined_call_operand.vmem [shape: bf16[128,32], index: 11, kind: input, shape index: {}]   ;;  %s6115_s12 = inlined_call_operand.vmem [shape: f32[1,32], index: 12, kind: input, shape index: {}]   ;;  %s6116_s13 = inlined_call_operand.vmem [shape: bf16[32,3], index: 13, kind: input, shape index: {}]   ;;  %s6117_s14 = inlined_call_operand.vmem [shape: f32[1,3], index: 14, kind: input, shape index: {}]   ;;  %s6118_s15 = inlined_call_operand.vmem [shape: f32[16,3], index: 15, kind: output, shape index: {}]  }
   0x1   :  { %v179_v0 = vld [vmem:[%s6103_s1] sm:$0x7]  ;;  %v695_v2 = vsel %vm693_vm0, 4294967295, %v4236_v1  ;;  %v4123_v6 = vld [vmem:[%s6104_s0 + $0x8] sm:$0xff]  ;;  %v4124_v7 = vld [vmem:[%s6104_s0 + $0x10] sm:$0xff]  ;;  %v6119_v13 = vmov 0  }
   0x2   :  { %v696_v3 = vsel %vm694_vm1, %v695_v2, 0  ;;  %v4122_v5 = vld [vmem:[%s6104_s0] sm:$0xff]  ;;  %v4125_v8 = vld [vmem:[%s6104_s0 + $0x18] sm:$0xff]  ;;  %v4127_v10 = vld [vmem:[%s6104_s0 + $0x28] sm:$0xff]  ;;  %1450 = vrot.lane.b32.xlu0 %v6119_v13, %s4238_s20  ;;  %s4240_s18 = smov 12   ;;  %s4241_s1 = smov 16  }
   0x3   :  { %v698_v4 = vand.u32 %v696_v3, %v179_v0  ;;  %v4126_v9 = vld [vmem:[%s6104_s0 + $0x20] sm:$0xff]  ;;  %v4128_v11 = vld [vmem:[%s6104_s0 + $0x30] sm:$0xff]  ;;  %v4129_v12 = vld [vmem:[%s6104_s0 + $0x38] sm:$0xff]  ;;  %vm1704_vm3 = vcmask 31744   ;;  %vm1800_vm4 = vcmask 64512   ;;  %vm1865_vm5 = vcmask 97280  }
   0x4   :  { %v4130_v14 = vld [vmem:[%s6104_s0 + $0x40] sm:$0xff]  ;;  %v4131_v17 = vld [vmem:[%s6104_s0 + $0x48] sm:$0xff]  ;;  %v4132_v29 = vld [vmem:[%s6104_s0 + $0x50] sm:$0xff]  ;;  %vm1930_vm6 = vcmask 130048   ;;  %vm2006_vm7 = vcmask 162816   ;;  %vm2777_vm8 = vcmask 1043456  }
   0x5   :  { %707 = vmatpush.bf16.msra.mxu0 %v698_v4  ;;  %4214 = vmatpush.bf16.msra.mxu2 %v698_v4  ;;  %v4375_v20 = vld [vmem:[%s6105_s6] ss:$0 sm:$0xff]  ;;  %v4133_v35 = vld [vmem:[%s6104_s0 + $0x58] sm:$0xff]  ;;  %v4135_v52 = vld [vmem:[%s6104_s0 + $0x68] sm:$0xff]  ;;  %s4242_s27 = smov 32   ;;  %s4243_s29 = smov 24  }
   0x6   :  { %4215 = vmatpush.bf16.msra.mxu3 %v698_v4  ;;  %v4134_v46 = vld [vmem:[%s6104_s0 + $0x60] sm:$0xff]  ;;  %v4136_v63 = vld [vmem:[%s6104_s0 + $0x70] sm:$0xff]  ;;  %vm2659_vm9 = vcmask 195584   ;;  %vm2692_vm10 = vcmask 261120   ;;  %vm2744_vm11 = vcmask 326656   ;;  %vm3075_vm12 = vcmask 392192  }
   0x7   :  { %vm3092_vm13 = vcmask 523264   ;;  %vm3148_vm14 = vcmask 654336   ;;  %vm3309_vm15 = vcmask 785408  }
   0x8   :  { %3887 = vmatmul.msk.bf16.vlgmr.msra.gmra.mxu0 %vm500_vm2, %v4122_v5  ;;  %v4137_v5 = vld [vmem:[%s6104_s0 + $0x78] sm:$0xff] }
  0x18   :  { %3888 = vmatmul.msk.bf16.gmra.mxu0 %vm500_vm2, %v4123_v6 }
  0x28   :  { %3889 = vmatmul.msk.bf16.gmra.mxu0 %vm500_vm2, %v4124_v7 }
  0x38   :  { %3890 = vmatmul.msk.bf16.gmra.mxu0 %vm500_vm2, %v4125_v8 }
  0x48   :  { %3891 = vmatmul.msk.bf16.gmra.mxu0 %vm500_vm2, %v4126_v9 }
  0x58   :  { %3892 = vmatmul.msk.bf16.gmra.mxu0 %vm500_vm2, %v4127_v10 }
  0x68   :  { %3893 = vmatmul.msk.bf16.gmra.mxu0 %vm500_vm2, %v4128_v11 }
  0x78   :  { %3894 = vmatmul.msk.bf16.gmra.mxu0 %vm500_vm2, %v4129_v12 }
  0x85   :  { %v709_v15 = vpop.f32.mrf.mxu0 }
  0x88   :  { %3895 = vmatmul.msk.bf16.gmra.mxu0 %vm500_vm2, %v4130_v14 }
  0x8d   :  { %v711_v16 = vpop.f32.mrf.mxu0 }
  0x95   :  { %v714_v18 = vpop.f32.mrf.mxu0 }
  0x96   :  { %v1029_v19 = vmax.f32 %v709_v15, %v714_v18 }
  0x98   :  { %3896 = vmatmul.msk.bf16.gmra.mxu0 %vm500_vm2, %v4131_v17  ;;  %v1097_v21 = vadd.f32 %v4375_v20, %v1029_v19  ;;  %v4138_v17 = vld [vmem:[%s6104_s0 + $0x80] sm:$0xff] }
  0x9a   :  { %v1161_v23 = vmax.f32 %v1097_v21, 0.0 }
  0x9c   :  { %v1225_v26 = vpack.c.bf16 %v1161_v23, %v1161_v23  ;;  %v4155_v23 = vld [vmem:[%s6104_s0 + $0x108] sm:$0xff] }
  0x9d   :  { %v716_v22 = vpop.f32.mrf.mxu0  ;;  %3920 = vmatmul.msk.bf16.vlgmr.msra.gmra.mxu2 %vm500_vm2, %v4155_v23 }
  0x9e   :  { %v1030_v24 = vmax.f32 %v711_v16, %v716_v22  ;;  %v1353_v31 = vunpack.c.l.b16 %v1225_v26 }
  0xa0   :  { %v1098_v25 = vadd.f32 %v4375_v20, %v1030_v24 }
  0xa2   :  { %v1162_v27 = vmax.f32 %v1098_v25, 0.0  ;;  %v4139_v25 = vld [vmem:[%s6104_s0 + $0x88] sm:$0xff] }
  0xa4   :  { %v1226_v28 = vpack.c.bf16 %v1162_v27, %v1162_v27 }
  0xa5   :  { %v719_v30 = vpop.f32.mrf.mxu0 }
  0xa6   :  { %v1354_v32 = vunpack.c.l.b16 %v1226_v28  ;;  %v4156_v28 = vld [vmem:[%s6104_s0 + $0x110] sm:$0xff] }
  0xa8   :  { %3897 = vmatmul.msk.bf16.gmra.mxu0 %vm500_vm2, %v4132_v29  ;;  %v4384_v33 = vpack.c.b16 %v1354_v32, %v1353_v31 }
  0xaa   :  { %1452 = vrot.lane.b32.xlu2 %v4384_v33, %s4238_s20  ;;  %1514 = vrot.lane.b32.xlu0 %v4384_v33, %s4239_s28 }
  0xad   :  { %v721_v34 = vpop.f32.mrf.mxu0  ;;  %3921 = vmatmul.msk.bf16.gmra.mxu2 %vm500_vm2, %v4156_v28 }
  0xb5   :  { %v724_v36 = vpop.f32.mrf.mxu0 }
  0xb6   :  { %v1031_v37 = vmax.f32 %v719_v30, %v724_v36 }
  0xb8   :  { %3898 = vmatmul.msk.bf16.gmra.mxu0 %vm500_vm2, %v4133_v35  ;;  %v1099_v38 = vadd.f32 %v4375_v20, %v1031_v37 }
  0xba   :  { %v1163_v40 = vmax.f32 %v1099_v38, 0.0  ;;  %v4140_v38 = vld [vmem:[%s6104_s0 + $0x90] sm:$0xff] }
  0xbc   :  { %v1227_v43 = vpack.c.bf16 %v1163_v40, %v1163_v40 }
  0xbd   :  { %v726_v39 = vpop.f32.mrf.mxu0 }
  0xbe   :  { %v1032_v41 = vmax.f32 %v721_v34, %v726_v39  ;;  %v1355_v48 = vunpack.c.l.b16 %v1227_v43  ;;  %v4157_v43 = vld [vmem:[%s6104_s0 + $0x118] sm:$0xff] }
  0xbf   :  { %3922 = vmatmul.msk.bf16.gmra.mxu2 %vm500_vm2, %v4157_v43 }
  0xc0   :  { %v1100_v42 = vadd.f32 %v4375_v20, %v1032_v41 }
  0xc2   :  { %v1164_v44 = vmax.f32 %v1100_v42, 0.0 }
  0xc4   :  { %v1228_v45 = vpack.c.bf16 %v1164_v44, %v1164_v44 }
  0xc5   :  { %v729_v47 = vpop.f32.mrf.mxu0 }
  0xc6   :  { %v1356_v49 = vunpack.c.l.b16 %v1228_v45  ;;  %v1996_v45 = vld [vmem:[%s6106_s2 + $0x8] sm:$0x3] }
  0xc8   :  { %v4399_v50 = vpack.c.b16 %v1356_v49, %v1355_v48  ;;  %3899 = vmatmul.msk.bf16.gmra.mxu0 %vm500_vm2, %v4134_v46  ;;  %v2002_v46 = vunpack.c.l.b16 %v1996_v45 }
  0xca   :  { %1516 = vrot.lane.b32.xlu2 %v4399_v50, %s4239_s28  ;;  %1578 = vrot.lane.b32.xlu1 %v4399_v50, %s4240_s18  ;;  %v2004_v48 = vpack.c.b16 %v2002_v46, %v2002_v46 }
  0xcd   :  { %v731_v51 = vpop.f32.mrf.mxu0 }
  0xd2   :  { %1454 = vrot.lane.b32.xlu2 %v4399_v50, %s4238_s20 }
  0xd5   :  { %v734_v53 = vpop.f32.mrf.mxu0 }
  0xd6   :  { %v1033_v54 = vmax.f32 %v729_v47, %v734_v53  ;;  %v4141_v47 = vld [vmem:[%s6104_s0 + $0x98] sm:$0xff]  ;;  %v4158_v53 = vld [vmem:[%s6104_s0 + $0x120] sm:$0xff] }
  0xd7   :  { %3923 = vmatmul.msk.bf16.gmra.mxu2 %vm500_vm2, %v4158_v53 }
  0xd8   :  { %3900 = vmatmul.msk.bf16.gmra.mxu0 %vm500_vm2, %v4135_v52  ;;  %v1101_v55 = vadd.f32 %v4375_v20, %v1033_v54  ;;  %v2072_v52 = vsel %vm693_vm0, %v2004_v48, 0  ;;  %v4186_v54 = vld [vmem:[%s6106_s2] sm:$0xff]  ;;  %vm3624_vm0 = vcmask 23552  }
  0xd9   :  { %2080 = vmatpush.bf16.msra.mxu1 %v2072_v52 }
  0xda   :  { %v1165_v57 = vmax.f32 %v1101_v55, 0.0 }
  0xdc   :  { %v1229_v60 = vpack.c.bf16 %v1165_v57, %v1165_v57 }
  0xdd   :  { %v736_v56 = vpop.f32.mrf.mxu0  ;;  %2081 = vmatpush.bf16.msra.mxu1 %v4186_v54 }
  0xde   :  { %v1034_v58 = vmax.f32 %v731_v51, %v736_v56  ;;  %v1357_v1 = vunpack.c.l.b16 %v1229_v60 }
  0xe0   :  { %v1102_v59 = vadd.f32 %v4375_v20, %v1034_v58 }
  0xe2   :  { %v1166_v61 = vmax.f32 %v1102_v59, 0.0 }
  0xe4   :  { %v1230_v62 = vpack.c.bf16 %v1166_v61, %v1166_v61 }
  0xe5   :  { %v739_v0 = vpop.f32.mrf.mxu0 }
  0xe6   :  { %v1358_v2 = vunpack.c.l.b16 %v1230_v62 }
  0xe8   :  { %v4417_v3 = vpack.c.b16 %v1358_v2, %v1357_v1  ;;  %3901 = vmatmul.msk.bf16.gmra.mxu0 %vm500_vm2, %v4136_v63  ;;  %v4142_v63 = vld [vmem:[%s6104_s0 + $0xa0] sm:$0xff] }
  0xea   :  { %1580 = vrot.lane.b32.xlu0 %v4417_v3, %s4240_s18  ;;  %1642 = vrot.lane.b32.xlu1 %v4417_v3, %s4241_s1 }
  0xed   :  { %v741_v4 = vpop.f32.mrf.mxu0 }
  0xf2   :  { %1518 = vrot.lane.b32.xlu0 %v4417_v3, %s4239_s28 }
  0xf5   :  { %v744_v6 = vpop.f32.mrf.mxu0 }
  0xf6   :  { %v1035_v7 = vmax.f32 %v739_v0, %v744_v6 }
  0xf8   :  { %3902 = vmatmul.msk.bf16.gmra.mxu0 %vm500_vm2, %v4137_v5  ;;  %v1103_v8 = vadd.f32 %v4375_v20, %v1035_v7  ;;  %v4159_v5 = vld [vmem:[%s6104_s0 + $0x128] sm:$0xff]  ;;  %v1451_v7 = vpop.permute.xlu0 %1450 }
  0xf9   :  { %3924 = vmatmul.msk.bf16.gmra.mxu2 %vm500_vm2, %v4159_v5 }
  0xfa   :  { %1456 = vrot.lane.b32.xlu0 %v4417_v3, %s4238_s20  ;;  %v1167_v10 = vmax.f32 %v1103_v8, 0.0 }
  0xfc   :  { %v1231_v14 = vpack.c.bf16 %v1167_v10, %v1167_v10 }
  0xfd   :  { %v746_v9 = vpop.f32.mrf.mxu0 }
  0xfe   :  { %v1036_v11 = vmax.f32 %v741_v4, %v746_v9  ;;  %v1359_v19 = vunpack.c.l.b16 %v1231_v14  ;;  %v4143_v9 = vld [vmem:[%s6104_s0 + $0xa8] sm:$0xff] }
 0x100   :  { %v1104_v12 = vadd.f32 %v4375_v20, %v1036_v11 }
 0x102   :  { %v1168_v15 = vmax.f32 %v1104_v12, 0.0  ;;  %v1707_v12 = vsel %vm1704_vm3, 0, %v1451_v7  ;;  %v4163_v7 = vld [vmem:[%s6104_s0 + $0x148] sm:$0xff] }
 0x104   :  { %v1232_v16 = vpack.c.bf16 %v1168_v15, %v1168_v15  ;;  %v4160_v15 = vld [vmem:[%s6104_s0 + $0x130] sm:$0xff] }
 0x105   :  { %v749_v18 = vpop.f32.mrf.mxu0 }
 0x106   :  { %v1360_v21 = vunpack.c.l.b16 %v1232_v16 }
 0x108   :  { %v4437_v22 = vpack.c.b16 %v1360_v21, %v1359_v19  ;;  %3903 = vmatmul.msk.bf16.gmra.mxu0 %vm500_vm2, %v4138_v17 }
 0x109   :  { %3925 = vmatmul.msk.bf16.gmra.mxu2 %vm500_vm2, %v4160_v15 }
 0x10a   :  { %1644 = vrot.lane.b32.xlu1 %v4437_v22, %s4241_s1 }
 0x10d   :  { %v751_v24 = vpop.f32.mrf.mxu0 }
 0x112   :  { %1582 = vrot.lane.b32.xlu1 %v4437_v22, %s4240_s18 }
 0x115   :  { %v754_v26 = vpop.f32.mrf.mxu0 }
 0x116   :  { %v1037_v27 = vmax.f32 %v749_v18, %v754_v26 }
 0x118   :  { %3904 = vmatmul.msk.bf16.gmra.mxu0 %vm500_vm2, %v4139_v25  ;;  %v1105_v29 = vadd.f32 %v4375_v20, %v1037_v27 }
 0x11a   :  { %1520 = vrot.lane.b32.xlu1 %v4437_v22, %s4239_s28  ;;  %v1169_v31 = vmax.f32 %v1105_v29, 0.0 }
 0x11c   :  { %v1233_v35 = vpack.c.bf16 %v1169_v31, %v1169_v31  ;;  %v1515_v14 = vpop.permute.xlu0 %1514 }
 0x11d   :  { %v756_v30 = vpop.f32.mrf.mxu0  ;;  %v1802_v17 = vsel %vm1800_vm4, %v1707_v12, %v1515_v14  ;;  %v4147_v14 = vld [vmem:[%s6104_s0 + $0xc8] sm:$0xff] }
 0x11e   :  { %v1038_v32 = vmax.f32 %v751_v24, %v756_v30  ;;  %v1361_v40 = vunpack.c.l.b16 %v1233_v35  ;;  %v4144_v30 = vld [vmem:[%s6104_s0 + $0xb0] sm:$0xff] }
 0x120   :  { %v1106_v34 = vadd.f32 %v4375_v20, %v1038_v32  ;;  %v4580_v12 = vpop.f32.mrf.mxu2 }
 0x122   :  { %v1170_v36 = vmax.f32 %v1106_v34, 0.0  ;;  %1458 = vrot.lane.b32.xlu1 %v4437_v22, %s4238_s20 }
 0x124   :  { %v1234_v37 = vpack.c.bf16 %v1170_v36, %v1170_v36  ;;  %v4161_v36 = vld [vmem:[%s6104_s0 + $0x138] sm:$0xff] }
 0x125   :  { %v759_v39 = vpop.f32.mrf.mxu0  ;;  %3926 = vmatmul.msk.bf16.gmra.mxu2 %vm500_vm2, %v4161_v36 }
 0x126   :  { %v1362_v41 = vunpack.c.l.b16 %v1234_v37 }
 0x128   :  { %v4465_v42 = vpack.c.b16 %v1362_v41, %v1361_v40  ;;  %3905 = vmatmul.msk.bf16.gmra.mxu0 %vm500_vm2, %v4140_v38  ;;  %v1453_v38 = vpop.permute.xlu2 %1452 }
 0x129   :  { %v1709_v46 = vsel %vm1704_vm3, 0, %v1453_v38 }
 0x12a   :  { %1646 = vrot.lane.b32.xlu2 %v4465_v42, %s4241_s1 }
 0x12d   :  { %v761_v44 = vpop.f32.mrf.mxu0 }
 0x130   :  { %v1517_v43 = vpop.permute.xlu2 %1516 }
 0x131   :  { %v1804_v48 = vsel %vm1800_vm4, %v1709_v46, %v1517_v43  ;;  %v4149_v46 = vld [vmem:[%s6104_s0 + $0xd8] sm:$0xff] }
 0x132   :  { %1584 = vrot.lane.b32.xlu2 %v4465_v42, %s4240_s18 }
 0x135   :  { %v764_v49 = vpop.f32.mrf.mxu0 }
 0x136   :  { %v1039_v51 = vmax.f32 %v759_v39, %v764_v49  ;;  %v4145_v39 = vld [vmem:[%s6104_s0 + $0xb8] sm:$0xff] }
 0x138   :  { %3906 = vmatmul.msk.bf16.gmra.mxu0 %vm500_vm2, %v4141_v47  ;;  %v1107_v55 = vadd.f32 %v4375_v20, %v1039_v51 }
 0x13a   :  { %1522 = vrot.lane.b32.xlu2 %v4465_v42, %s4239_s28  ;;  %v1171_v57 = vmax.f32 %v1107_v55, 0.0 }
 0x13c   :  { %v1235_v60 = vpack.c.bf16 %v1171_v57, %v1171_v57  ;;  %v1579_v8 = vpop.permute.xlu1 %1578  ;;  %v1455_v57 = vpop.permute.xlu2 %1454 }
 0x13d   :  { %v766_v56 = vpop.f32.mrf.mxu0  ;;  %v1867_v18 = vsel %vm1865_vm5, %v1802_v17, %v1579_v8  ;;  %v1712_v5 = vsel %vm1704_vm3, %v4384_v33, %v1455_v57 }
 0x13e   :  { %v1040_v58 = vmax.f32 %v761_v44, %v766_v56  ;;  %v1363_v1 = vunpack.c.l.b16 %v1235_v60  ;;  %v4162_v44 = vld [vmem:[%s6104_s0 + $0x140] sm:$0xff] }
 0x13f   :  { %3927 = vmatmul.msk.bf16.gmra.mxu2 %vm500_vm2, %v4162_v44 }
 0x140   :  { %v1108_v59 = vadd.f32 %v4375_v20, %v1040_v58 }
 0x142   :  { %v1172_v61 = vmax.f32 %v1108_v59, 0.0  ;;  %1460 = vrot.lane.b32.xlu2 %v4465_v42, %s4238_s20 }
 0x144   :  { %v1236_v62 = vpack.c.bf16 %v1172_v61, %v1172_v61  ;;  %v4146_v61 = vld [vmem:[%s6104_s0 + $0xc0] sm:$0xff] }
 0x145   :  { %v769_v0 = vpop.f32.mrf.mxu0 }
 0x146   :  { %v1364_v2 = vunpack.c.l.b16 %v1236_v62 }
 0x148   :  { %v4500_v4 = vpack.c.b16 %v1364_v2, %v1363_v1  ;;  %3907 = vmatmul.msk.bf16.gmra.mxu0 %vm500_vm2, %v4142_v63 }
 0x14a   :  { %1648 = vrot.lane.b32.xlu0 %v4500_v4, %s4241_s1 }
 0x14d   :  { %v771_v6 = vpop.f32.mrf.mxu0 }
 0x14f   :  { %3928 = vmatmul.msk.bf16.gmra.mxu2 %vm500_vm2, %v4163_v7 }
 0x152   :  { %1586 = vrot.lane.b32.xlu0 %v4500_v4, %s4240_s18 }
 0x155   :  { %v774_v10 = vpop.f32.mrf.mxu0 }
 0x156   :  { %v1041_v11 = vmax.f32 %v769_v0, %v774_v10 }
 0x158   :  { %3908 = vmatmul.msk.bf16.gmra.mxu0 %vm500_vm2, %v4143_v9  ;;  %v1109_v16 = vadd.f32 %v4375_v20, %v1041_v11 }
 0x15a   :  { %1524 = vrot.lane.b32.xlu0 %v4500_v4, %s4239_s28  ;;  %v1173_v24 = vmax.f32 %v1109_v16, 0.0  ;;  %v4588_v16 = vpop.f32.mrf.mxu2 }
 0x15c   :  { %v1643_v19 = vpop.permute.xlu1 %1642  ;;  %v1237_v27 = vpack.c.bf16 %v1173_v24, %v1173_v24  ;;  %v1581_v45 = vpop.permute.xlu0 %1580 }
 0x15d   :  { %v776_v21 = vpop.f32.mrf.mxu0  ;;  %v1932_v23 = vsel %vm1930_vm6, %v1867_v18, %v1643_v19  ;;  %v1869_v49 = vsel %vm1865_vm5, %v1804_v48, %v1581_v45  ;;  %v4164_v18 = vld [vmem:[%s6104_s0 + $0x150] sm:$0xff]  ;;  %v4171_v19 = vld [vmem:[%s6104_s0 + $0x188] sm:$0xff] }
 0x15e   :  { %v1042_v25 = vmax.f32 %v771_v6, %v776_v21  ;;  %3955 = vmatmul.msk.bf16.vlgmr.msra.gmra.mxu1 %vm2006_vm7, %v1932_v23  ;;  %v1365_v32 = vunpack.c.l.b16 %v1237_v27  ;;  %3936 = vmatmul.msk.bf16.vlgmr.msra.gmra.mxu3 %vm500_vm2, %v4171_v19 }
 0x15f   :  { %3929 = vmatmul.msk.bf16.gmra.mxu2 %vm500_vm2, %v4164_v18 }
 0x160   :  { %v1110_v26 = vadd.f32 %v4375_v20, %v1042_v25 }
 0x162   :  { %v1174_v28 = vmax.f32 %v1110_v26, 0.0  ;;  %1462 = vrot.lane.b32.xlu0 %v4500_v4, %s4238_s20  ;;  %v879_v24 = vpop.f32.mrf.mxu2 }
 0x164   :  { %v1238_v29 = vpack.c.bf16 %v1174_v28, %v1174_v28  ;;  %v1519_v63 = vpop.permute.xlu0 %1518 }
 0x165   :  { %v779_v31 = vpop.f32.mrf.mxu0  ;;  %v1806_v8 = vsel %vm1800_vm4, %v1712_v5, %v1519_v63 }
 0x166   :  { %v1366_v34 = vunpack.c.l.b16 %v1238_v29 }
 0x168   :  { %v4533_v35 = vpack.c.b16 %v1366_v34, %v1365_v32  ;;  %3909 = vmatmul.msk.bf16.gmra.mxu0 %vm500_vm2, %v4144_v30 }
 0x16a   :  { %1650 = vrot.lane.b32.xlu1 %v4533_v35, %s4241_s1  ;;  %v881_v34 = vpop.f32.mrf.mxu2 }
 0x16c   :  { %v1457_v45 = vpop.permute.xlu0 %1456 }
 0x16d   :  { %v781_v37 = vpop.f32.mrf.mxu0 }
 0x172   :  { %1588 = vrot.lane.b32.xlu1 %v4533_v35, %s4240_s18  ;;  %v884_v43 = vpop.f32.mrf.mxu2 }
 0x173   :  { %v1063_v44 = vmax.f32 %v879_v24, %v884_v43 }
 0x175   :  { %v784_v40 = vpop.f32.mrf.mxu0 }
 0x176   :  { %v1043_v41 = vmax.f32 %v779_v31, %v784_v40  ;;  %v4148_v31 = vld [vmem:[%s6104_s0 + $0xd0] sm:$0xff] }
 0x177   :  { %v4172_v40 = vld [vmem:[%s6104_s0 + $0x190] sm:$0xff] }
 0x178   :  { %3910 = vmatmul.msk.bf16.gmra.mxu0 %vm500_vm2, %v4145_v39  ;;  %v1111_v47 = vadd.f32 %v4375_v20, %v1043_v41  ;;  %v4165_v39 = vld [vmem:[%s6104_s0 + $0x158] sm:$0xff]  ;;  %3937 = vmatmul.msk.bf16.gmra.mxu3 %vm500_vm2, %v4172_v40 }
 0x179   :  { %3930 = vmatmul.msk.bf16.gmra.mxu2 %vm500_vm2, %v4165_v39 }
 0x17a   :  { %1526 = vrot.lane.b32.xlu1 %v4533_v35, %s4239_s28  ;;  %v1175_v54 = vmax.f32 %v1111_v47, 0.0  ;;  %v886_v48 = vpop.f32.mrf.mxu2 }
 0x17c   :  { %v1645_v51 = vpop.permute.xlu1 %1644  ;;  %v1239_v58 = vpack.c.bf16 %v1175_v54, %v1175_v54  ;;  %v4166_v54 = vld [vmem:[%s6104_s0 + $0x160] sm:$0xff] }
 0x17d   :  { %v786_v52 = vpop.f32.mrf.mxu0  ;;  %v1934_v53 = vsel %vm1930_vm6, %v1869_v49, %v1645_v51 }
 0x17e   :  { %v1044_v55 = vmax.f32 %v781_v37, %v786_v52  ;;  %3956 = vmatmul.msk.bf16.gmra.mxu1 %vm2006_vm7, %v1934_v53  ;;  %v1367_v0 = vunpack.c.l.b16 %v1239_v58  ;;  %v1715_v52 = vsel %vm1704_vm3, %v4399_v50, %v1457_v45  ;;  %v1131_v53 = vadd.f32 %v4375_v20, %v1063_v44  ;;  %v4168_v44 = vld [vmem:[%s6104_s0 + $0x170] sm:$0xff]  ;;  %v4175_v45 = vld [vmem:[%s6104_s0 + $0x1a8] sm:$0xff] }
 0x180   :  { %v1112_v56 = vadd.f32 %v4375_v20, %v1044_v55  ;;  %v4173_v55 = vld [vmem:[%s6104_s0 + $0x198] sm:$0xff] }
 0x182   :  { %v1176_v59 = vmax.f32 %v1112_v56, 0.0  ;;  %1464 = vrot.lane.b32.xlu1 %v4533_v35, %s4238_s20  ;;  %v889_v63 = vpop.f32.mrf.mxu2 }
 0x184   :  { %v1240_v60 = vpack.c.bf16 %v1176_v59, %v1176_v59  ;;  %v1583_v2 = vpop.permute.xlu1 %1582  ;;  %v1647_v10 = vpop.permute.xlu2 %1646 }
 0x185   :  { %v789_v62 = vpop.f32.mrf.mxu0  ;;  %v1871_v9 = vsel %vm1865_vm5, %v1806_v8, %v1583_v2  ;;  %v1064_v2 = vmax.f32 %v881_v34, %v886_v48  ;;  %v4151_v34 = vld [vmem:[%s6104_s0 + $0xe8] sm:$0xff] }
 0x186   :  { %v1368_v1 = vunpack.c.l.b16 %v1240_v60  ;;  %v1936_v33 = vsel %vm1930_vm6, %v1871_v9, %v1647_v10  ;;  %v1195_v60 = vmax.f32 %v1131_v53, 0.0 }
 0x187   :  { %v1132_v8 = vadd.f32 %v4375_v20, %v1064_v2 }
 0x188   :  { %v4568_v6 = vpack.c.b16 %v1368_v1, %v1367_v0  ;;  %3911 = vmatmul.msk.bf16.gmra.mxu0 %vm500_vm2, %v4146_v61  ;;  %3938 = vmatmul.msk.bf16.gmra.mxu3 %vm500_vm2, %v4173_v55  ;;  %v1259_v7 = vpack.c.bf16 %v1195_v60, %v1195_v60 }
 0x189   :  { %3931 = vmatmul.msk.bf16.gmra.mxu2 %vm500_vm2, %v4166_v54 }
 0x18a   :  { %1652 = vrot.lane.b32.xlu2 %v4568_v6, %s4241_s1  ;;  %v891_v19 = vpop.f32.mrf.mxu2 }
 0x18c   :  { %v1521_v49 = vpop.permute.xlu1 %1520  ;;  %v1585_v57 = vpop.permute.xlu2 %1584 }
 0x18d   :  { %v791_v11 = vpop.f32.mrf.mxu0  ;;  %v1808_v56 = vsel %vm1800_vm4, %v1715_v52, %v1521_v49 }
 0x18e   :  { %3957 = vmatmul.msk.bf16.gmra.mxu1 %vm2006_vm7, %v1936_v33  ;;  %v1873_v50 = vsel %vm1865_vm5, %v1808_v56, %v1585_v57 }
 0x192   :  { %1590 = vrot.lane.b32.xlu2 %v4568_v6, %s4240_s18 }
 0x195   :  { %v794_v15 = vpop.f32.mrf.mxu0 }
 0x196   :  { %v1045_v17 = vmax.f32 %v789_v62, %v794_v15  ;;  %v1387_v15 = vunpack.c.l.b16 %v1259_v7 }
 0x198   :  { %3912 = vmatmul.msk.bf16.gmra.mxu0 %vm500_vm2, %v4147_v14  ;;  %v1113_v21 = vadd.f32 %v4375_v20, %v1045_v17  ;;  %v4150_v14 = vld [vmem:[%s6104_s0 + $0xe0] sm:$0xff] }
 0x19a   :  { %1528 = vrot.lane.b32.xlu2 %v4568_v6, %s4239_s28  ;;  %v1177_v25 = vmax.f32 %v1113_v21, 0.0 }
 0x19c   :  { %v1241_v28 = vpack.c.bf16 %v1177_v25, %v1177_v25 }
 0x19d   :  { %v796_v23 = vpop.f32.mrf.mxu0 }
 0x19e   :  { %v1046_v26 = vmax.f32 %v791_v11, %v796_v23  ;;  %v1369_v36 = vunpack.c.l.b16 %v1241_v28  ;;  %v1196_v11 = vmax.f32 %v1132_v8, 0.0  ;;  %v4174_v28 = vld [vmem:[%s6104_s0 + $0x1a0] sm:$0xff] }
 0x19f   :  { %3939 = vmatmul.msk.bf16.gmra.mxu3 %vm500_vm2, %v4174_v28 }
 0x1a0   :  { %v1114_v27 = vadd.f32 %v4375_v20, %v1046_v26  ;;  %v1260_v17 = vpack.c.bf16 %v1196_v11, %v1196_v11 }
 0x1a2   :  { %v1178_v29 = vmax.f32 %v1114_v27, 0.0  ;;  %1466 = vrot.lane.b32.xlu2 %v4568_v6, %s4238_s20  ;;  %v1388_v24 = vunpack.c.l.b16 %v1260_v17  ;;  %v4167_v27 = vld [vmem:[%s6104_s0 + $0x168] sm:$0xff] }
 0x1a3   :  { %3932 = vmatmul.msk.bf16.gmra.mxu2 %vm500_vm2, %v4167_v27 }
 0x1a4   :  { %v1242_v30 = vpack.c.bf16 %v1178_v29, %v1178_v29  ;;  %v4655_v26 = vpack.c.b16 %v1388_v24, %v1387_v15 }
 0x1a5   :  { %v799_v32 = vpop.f32.mrf.mxu0 }
 0x1a6   :  { %v1370_v37 = vunpack.c.l.b16 %v1242_v30  ;;  %v894_v30 = vpop.f32.mrf.mxu2 }
 0x1a8   :  { %v4608_v38 = vpack.c.b16 %v1370_v37, %v1369_v36  ;;  %3913 = vmatmul.msk.bf16.gmra.mxu0 %vm500_vm2, %v4148_v31  ;;  %v1065_v31 = vmax.f32 %v889_v63, %v894_v30 }
 0x1aa   :  { %1654 = vrot.lane.b32.xlu0 %v4608_v38, %s4241_s1  ;;  %v1133_v43 = vadd.f32 %v4375_v20, %v1065_v31 }
 0x1ad   :  { %v801_v41 = vpop.f32.mrf.mxu0 }
 0x1ae   :  { %v896_v37 = vpop.f32.mrf.mxu2 }
 0x1af   :  { %3940 = vmatmul.msk.bf16.gmra.mxu3 %vm500_vm2, %v4175_v45  ;;  %v1066_v57 = vmax.f32 %v891_v19, %v896_v37  ;;  %v4169_v19 = vld [vmem:[%s6104_s0 + $0x178] sm:$0xff] }
 0x1b2   :  { %1592 = vrot.lane.b32.xlu0 %v4608_v38, %s4240_s18 }
 0x1b3   :  { %3933 = vmatmul.msk.bf16.gmra.mxu2 %vm500_vm2, %v4168_v44 }
 0x1b5   :  { %v804_v47 = vpop.f32.mrf.mxu0 }
 0x1b6   :  { %v1047_v51 = vmax.f32 %v799_v32, %v804_v47  ;;  %v1459_v32 = vpop.permute.xlu1 %1458  ;;  %v4690_v54 = vpop.f32.mrf.mxu2 }
 0x1b7   :  { %v1718_v40 = vsel %vm1704_vm3, %v4417_v3, %v1459_v32 }
 0x1b8   :  { %3914 = vmatmul.msk.bf16.gmra.mxu0 %vm500_vm2, %v4149_v46  ;;  %v1115_v58 = vadd.f32 %v4375_v20, %v1047_v51  ;;  %v1197_v51 = vmax.f32 %v1133_v43, 0.0 }
 0x1ba   :  { %1530 = vrot.lane.b32.xlu0 %v4608_v38, %s4239_s28  ;;  %v1179_v0 = vmax.f32 %v1115_v58, 0.0 }
 0x1bc   :  { %v1649_v59 = vpop.permute.xlu0 %1648  ;;  %v1243_v9 = vpack.c.bf16 %v1179_v0, %v1179_v0 }
 0x1bd   :  { %v806_v61 = vpop.f32.mrf.mxu0  ;;  %v1938_v62 = vsel %vm1930_vm6, %v1873_v50, %v1649_v59  ;;  %v1261_v50 = vpack.c.bf16 %v1197_v51, %v1197_v51  ;;  %v1134_v59 = vadd.f32 %v4375_v20, %v1066_v57 }
 0x1be   :  { %v1048_v1 = vmax.f32 %v801_v41, %v806_v61  ;;  %3958 = vmatmul.msk.bf16.gmra.mxu1 %vm2006_vm7, %v1938_v62  ;;  %v1371_v21 = vunpack.c.l.b16 %v1243_v9  ;;  %v1523_v41 = vpop.permute.xlu2 %1522  ;;  %v4700_v8 = vpop.f32.mrf.mxu2 }
 0x1bf   :  { %v1810_v3 = vsel %vm1800_vm4, %v1718_v40, %v1523_v41  ;;  %v1198_v63 = vmax.f32 %v1134_v59, 0.0  ;;  %v1389_v2 = vunpack.c.l.b16 %v1261_v50  ;;  %v4170_v40 = vld [vmem:[%s6104_s0 + $0x180] sm:$0xff]  ;;  %v4177_v41 = vld [vmem:[%s6104_s0 + $0x1b8] sm:$0xff] }
 0x1c0   :  { %v1116_v5 = vadd.f32 %v4375_v20, %v1048_v1  ;;  %v4152_v1 = vld [vmem:[%s6104_s0 + $0xf0] sm:$0xff] }
 0x1c2   :  { %v1180_v10 = vmax.f32 %v1116_v5, 0.0  ;;  %1468 = vrot.lane.b32.xlu0 %v4608_v38, %s4238_s20  ;;  %v1262_v5 = vpack.c.bf16 %v1198_v63, %v1198_v63 }
 0x1c3   :  { %3934 = vmatmul.msk.bf16.gmra.mxu2 %vm500_vm2, %v4169_v19 }
 0x1c4   :  { %v1244_v33 = vpack.c.bf16 %v1180_v10, %v1180_v10  ;;  %v1587_v46 = vpop.permute.xlu0 %1586 }
 0x1c5   :  { %v809_v18 = vpop.f32.mrf.mxu0  ;;  %v1875_v48 = vsel %vm1865_vm5, %v1810_v3, %v1587_v46 }
 0x1c6   :  { %v1372_v23 = vunpack.c.l.b16 %v1244_v33  ;;  %v1461_v60 = vpop.permute.xlu2 %1460  ;;  %v1390_v33 = vunpack.c.l.b16 %v1262_v5  ;;  %v4724_v30 = vpop.f32.mrf.mxu2 }
 0x1c7   :  { %v1721_v15 = vsel %vm1704_vm3, %v4437_v22, %v1461_v60  ;;  %v1067_v31 = vmax.f32 %v4690_v54, %v4724_v30  ;;  %v4178_v60 = vld [vmem:[%s6104_s0 + $0x1c0] sm:$0xff] }
 0x1c8   :  { %v4652_v25 = vpack.c.b16 %v1372_v23, %v1371_v21  ;;  %3915 = vmatmul.msk.bf16.gmra.mxu0 %vm500_vm2, %v4150_v14  ;;  %v4176_v21 = vld [vmem:[%s6104_s0 + $0x1b0] sm:$0xff] }
 0x1c9   :  { %3941 = vmatmul.msk.bf16.gmra.mxu3 %vm500_vm2, %v4176_v21 }
 0x1ca   :  { %1656 = vrot.lane.b32.xlu1 %v4652_v25, %s4241_s1 }
 0x1cc   :  { %v1525_v9 = vpop.permute.xlu0 %1524 }
 0x1cd   :  { %v811_v29 = vpop.f32.mrf.mxu0  ;;  %v1812_v23 = vsel %vm1800_vm4, %v1721_v15, %v1525_v9 }
 0x1ce   :  { %v4736_v37 = vpop.f32.mrf.mxu2 }
 0x1d2   :  { %1594 = vrot.lane.b32.xlu1 %v4652_v25, %s4240_s18 }
 0x1d3   :  { %3935 = vmatmul.msk.bf16.gmra.mxu2 %vm500_vm2, %v4170_v40 }
 0x1d5   :  { %v814_v36 = vpop.f32.mrf.mxu0 }
 0x1d6   :  { %v1049_v39 = vmax.f32 %v809_v18, %v814_v36  ;;  %v4707_v18 = vpack.c.b16 %v1390_v33, %v1389_v2 }
 0x1d8   :  { %3916 = vmatmul.msk.bf16.gmra.mxu0 %vm500_vm2, %v4151_v34  ;;  %v1117_v47 = vadd.f32 %v4375_v20, %v1049_v39  ;;  %v4153_v34 = vld [vmem:[%s6104_s0 + $0xf8] sm:$0xff] }
 0x1d9   :  { %3942 = vmatmul.msk.bf16.gmra.mxu3 %vm500_vm2, %v4177_v41 }
 0x1da   :  { %1532 = vrot.lane.b32.xlu1 %v4652_v25, %s4239_s28  ;;  %v1181_v55 = vmax.f32 %v1117_v47, 0.0  ;;  %v4754_v47 = vpop.f32.mrf.mxu2 }
 0x1db   :  { %v4716_v24 = vpop.f32.mrf.mxu1 }
 0x1dc   :  { %v1651_v49 = vpop.permute.xlu1 %1650  ;;  %v1245_v61 = vpack.c.bf16 %v1181_v55, %v1181_v55  ;;  %v4154_v55 = vld [vmem:[%s6104_s0 + $0x100] sm:$0xff] }
 0x1dd   :  { %v816_v52 = vpop.f32.mrf.mxu0  ;;  %v1940_v53 = vsel %vm1930_vm6, %v1875_v48, %v1651_v49 }
 0x1de   :  { %v1050_v56 = vmax.f32 %v811_v29, %v816_v52  ;;  %3959 = vmatmul.msk.bf16.gmra.mxu1 %vm2006_vm7, %v1940_v53  ;;  %v1373_v10 = vunpack.c.l.b16 %v1245_v61 }
 0x1e0   :  { %v1118_v58 = vadd.f32 %v4375_v20, %v1050_v56 }
 0x1e2   :  { %v1182_v62 = vmax.f32 %v1118_v58, 0.0  ;;  %1470 = vrot.lane.b32.xlu1 %v4652_v25, %s4238_s20  ;;  %v4762_v57 = vpop.f32.mrf.mxu2 }
 0x1e3   :  { %v4731_v32 = vpop.f32.mrf.mxu1 }
 0x1e4   :  { %v1246_v0 = vpack.c.bf16 %v1182_v62, %v1182_v62  ;;  %v1589_v14 = vpop.permute.xlu1 %1588  ;;  %v1653_v27 = vpop.permute.xlu2 %1652 }
 0x1e5   :  { %v819_v7 = vpop.f32.mrf.mxu0  ;;  %v1877_v22 = vsel %vm1865_vm5, %v1812_v23, %v1589_v14 }
 0x1e6   :  { %v1374_v11 = vunpack.c.l.b16 %v1246_v0  ;;  %v1942_v29 = vsel %vm1930_vm6, %v1877_v22, %v1653_v27  ;;  %v1463_v0 = vpop.permute.xlu0 %1462 }
 0x1e7   :  { %v1724_v9 = vsel %vm1704_vm3, %v4465_v42, %v1463_v0 }
 0x1e8   :  { %v4704_v17 = vpack.c.b16 %v1374_v11, %v1373_v10  ;;  %3917 = vmatmul.msk.bf16.gmra.mxu0 %vm500_vm2, %v4152_v1  ;;  %v4179_v10 = vld [vmem:[%s6104_s0 + $0x1c8] sm:$0xff] }
 0x1e9   :  { %3943 = vmatmul.msk.bf16.gmra.mxu3 %vm500_vm2, %v4178_v60 }
 0x1ea   :  { %1658 = vrot.lane.b32.xlu2 %v4704_v17, %s4241_s1  ;;  %v4773_v62 = vpop.f32.mrf.mxu2 }
 0x1eb   :  { %v1069_v63 = vmax.f32 %v4754_v47, %v4773_v62 }
 0x1ec   :  { %v1527_v5 = vpop.permute.xlu1 %1526  ;;  %v1591_v33 = vpop.permute.xlu2 %1590 }
 0x1ed   :  { %v821_v28 = vpop.f32.mrf.mxu0  ;;  %v1814_v11 = vsel %vm1800_vm4, %v1724_v9, %v1527_v5  ;;  %v4181_v9 = vld [vmem:[%s6104_s0 + $0x1d8] sm:$0xff] }
 0x1ee   :  { %3960 = vmatmul.msk.bf16.gmra.mxu1 %vm2006_vm7, %v1942_v29  ;;  %v1879_v15 = vsel %vm1865_vm5, %v1814_v11, %v1591_v33 }
 0x1f2   :  { %1596 = vrot.lane.b32.xlu2 %v4704_v17, %s4240_s18  ;;  %v4779_v2 = vpop.f32.mrf.mxu2 }
 0x1f4   :  { %v1465_v60 = vpop.permute.xlu1 %1464 }
 0x1f5   :  { %v824_v36 = vpop.f32.mrf.mxu0  ;;  %v1727_v5 = vsel %vm1704_vm3, %v4500_v4, %v1465_v60 }
 0x1f6   :  { %v1051_v39 = vmax.f32 %v819_v7, %v824_v36 }
 0x1f8   :  { %3918 = vmatmul.msk.bf16.gmra.mxu0 %vm500_vm2, %v4153_v34  ;;  %v1119_v43 = vadd.f32 %v4375_v20, %v1051_v39 }
 0x1f9   :  { %3944 = vmatmul.msk.bf16.gmra.mxu3 %vm500_vm2, %v4179_v10 }
 0x1fa   :  { %1534 = vrot.lane.b32.xlu2 %v4704_v17, %s4239_s28  ;;  %v1183_v3 = vmax.f32 %v1119_v43, 0.0  ;;  %v4793_v23 = vpop.f32.mrf.mxu2 }
 0x1fb   :  { %v4749_v44 = vpop.f32.mrf.mxu1 }
 0x1fc   :  { %v1247_v51 = vpack.c.bf16 %v1183_v3, %v1183_v3 }
 0x1fd   :  { %v826_v46 = vpop.f32.mrf.mxu0 }
 0x1fe   :  { %v1052_v48 = vmax.f32 %v821_v28, %v826_v46  ;;  %v1375_v58 = vunpack.c.l.b16 %v1247_v51  ;;  %v4796_v28 = vpop.f32.mrf.mxu3  ;;  %v4180_v51 = vld [vmem:[%s6104_s0 + $0x1d0] sm:$0xff] }
 0x200   :  { %v1120_v49 = vadd.f32 %v4375_v20, %v1052_v48 }
 0x202   :  { %v1184_v52 = vmax.f32 %v1120_v49, 0.0  ;;  %1472 = vrot.lane.b32.xlu2 %v4704_v17, %s4238_s20  ;;  %v4803_v43 = vpop.f32.mrf.mxu2 }
 0x203   :  { %v4798_v29 = vpop.f32.mrf.mxu1 }
 0x204   :  { %v1248_v53 = vpack.c.bf16 %v1184_v52, %v1184_v52 }
 0x205   :  { %v829_v56 = vpop.f32.mrf.mxu0 }
 0x206   :  { %v1376_v50 = vunpack.c.l.b16 %v1248_v53  ;;  %v4805_v48 = vpop.f32.mrf.mxu3 }
 0x208   :  { %v4764_v59 = vpack.c.b16 %v1376_v50, %v1375_v58  ;;  %3919 = vmatmul.msk.bf16.gmra.mxu0 %vm500_vm2, %v4154_v55 }
 0x209   :  { %3945 = vmatmul.msk.bf16.gmra.mxu3 %vm500_vm2, %v4180_v51 }
 0x20a   :  { %1660 = vrot.lane.b32.xlu0 %v4764_v59, %s4241_s1  ;;  %v4817_v55 = vpop.f32.mrf.mxu2 }
 0x20b   :  { %v4812_v52 = vpop.f32.mrf.mxu1 }
 0x20d   :  { %v831_v61 = vpop.f32.mrf.mxu0 }
 0x20e   :  { %v959_v58 = vpop.f32.mrf.mxu3 }
 0x212   :  { %1598 = vrot.lane.b32.xlu0 %v4764_v59, %s4240_s18 }
 0x213   :  { %v4823_v50 = vpop.f32.mrf.mxu1 }
 0x215   :  { %v834_v1 = vpop.f32.mrf.mxu0 }
 0x216   :  { %v1053_v7 = vmax.f32 %v829_v56, %v834_v1  ;;  %v1071_v56 = vmax.f32 %v4793_v23, %v4817_v55  ;;  %v961_v1 = vpop.f32.mrf.mxu3 }
 0x218   :  { %v1121_v14 = vadd.f32 %v4375_v20, %v1053_v7  ;;  %v1529_v7 = vpop.permute.xlu2 %1528 }
 0x219   :  { %v1816_v33 = vsel %vm1800_vm4, %v1727_v5, %v1529_v7  ;;  %3946 = vmatmul.msk.bf16.gmra.mxu3 %vm500_vm2, %v4181_v9 }
 0x21a   :  { %1536 = vrot.lane.b32.xlu0 %v4764_v59, %s4239_s28  ;;  %v1185_v22 = vmax.f32 %v1121_v14, 0.0 }
 0x21c   :  { %v1655_v19 = vpop.permute.xlu0 %1654  ;;  %v1249_v36 = vpack.c.bf16 %v1185_v22, %v1185_v22 }
 0x21d   :  { %v836_v21 = vpop.f32.mrf.mxu0  ;;  %v1944_v42 = vsel %vm1930_vm6, %v1879_v15, %v1655_v19 }
 0x21e   :  { %v1054_v27 = vmax.f32 %v831_v61, %v836_v21  ;;  %3961 = vmatmul.msk.bf16.gmra.mxu1 %vm2006_vm7, %v1944_v42  ;;  %v1377_v46 = vunpack.c.l.b16 %v1249_v36 }
 0x220   :  { %v1122_v34 = vadd.f32 %v4375_v20, %v1054_v27 }
 0x222   :  { %v1186_v39 = vmax.f32 %v1122_v34, 0.0  ;;  %1474 = vrot.lane.b32.xlu0 %v4764_v59, %s4238_s20  ;;  %v964_v34 = vpop.f32.mrf.mxu3 }
 0x223   :  { %v1079_v9 = vmax.f32 %v959_v58, %v964_v34 }
 0x224   :  { %v1250_v40 = vpack.c.bf16 %v1186_v39, %v1186_v39  ;;  %v1593_v10 = vpop.permute.xlu0 %1592  ;;  %v1467_v39 = vpop.permute.xlu2 %1466 }
 0x225   :  { %v839_v41 = vpop.f32.mrf.mxu0  ;;  %v1881_v15 = vsel %vm1865_vm5, %v1816_v33, %v1593_v10 }
 0x226   :  { %v1378_v3 = vunpack.c.l.b16 %v1250_v40 }
 0x228   :  { %v4807_v49 = vpack.c.b16 %v1378_v3, %v1377_v46 }
 0x22a   :  { %1662 = vrot.lane.b32.xlu1 %v4807_v49, %s4241_s1 }
 0x22c   :  { %v1531_v51 = vpop.permute.xlu0 %1530 }
 0x22d   :  { %v841_v53 = vpop.f32.mrf.mxu0 }
 0x232   :  { %1600 = vrot.lane.b32.xlu1 %v4807_v49, %s4240_s18 }
 0x235   :  { %v844_v61 = vpop.f32.mrf.mxu0 }
 0x236   :  { %v1055_v0 = vmax.f32 %v839_v41, %v844_v61 }
 0x238   :  { %v1123_v11 = vadd.f32 %v4375_v20, %v1055_v0  ;;  %v966_v0 = vpop.f32.mrf.mxu3 }
 0x23a   :  { %1538 = vrot.lane.b32.xlu1 %v4807_v49, %s4239_s28  ;;  %v1187_v22 = vmax.f32 %v1123_v11, 0.0  ;;  %v1080_v11 = vmax.f32 %v961_v1, %v966_v0 }
 0x23b   :  { %v4834_v14 = vpop.f32.mrf.mxu1 }
 0x23c   :  { %v1657_v19 = vpop.permute.xlu1 %1656  ;;  %v1251_v40 = vpack.c.bf16 %v1187_v22, %v1187_v22 }
 0x23d   :  { %v846_v21 = vpop.f32.mrf.mxu0  ;;  %v1946_v42 = vsel %vm1930_vm6, %v1881_v15, %v1657_v19 }
 0x23e   :  { %v1056_v27 = vmax.f32 %v841_v53, %v846_v21  ;;  %3962 = vmatmul.msk.bf16.gmra.mxu1 %vm2006_vm7, %v1946_v42  ;;  %v1379_v60 = vunpack.c.l.b16 %v1251_v40  ;;  %v1730_v53 = vsel %vm1704_vm3, %v4533_v35, %v1467_v39  ;;  %v4859_v35 = vld [vmem:[%s6105_s6] ss:$0 sm:$0xff] }
 0x23f   :  { %v1818_v10 = vsel %vm1800_vm4, %v1730_v53, %v1531_v51  ;;  %v1147_v58 = vadd.f32 %v4859_v35, %v1079_v9  ;;  %v1148_v19 = vadd.f32 %v4859_v35, %v1080_v11 }
 0x240   :  { %v1124_v36 = vadd.f32 %v4375_v20, %v1056_v27  ;;  %v4182_v20 = vld [vmem:[%s6104_s0 + $0x1e0] sm:$0xff]  ;;  %v4866_v34 = vpop.f32.mrf.mxu3 }
 0x241   :  { %3947 = vmatmul.msk.bf16.gmra.mxu3 %vm500_vm2, %v4182_v20  ;;  %v1211_v21 = vmax.f32 %v1147_v58, 0.0  ;;  %v1212_v22 = vmax.f32 %v1148_v19, 0.0 }
 0x242   :  { %v1188_v41 = vmax.f32 %v1124_v36, 0.0  ;;  %1476 = vrot.lane.b32.xlu1 %v4807_v49, %s4238_s20 }
 0x243   :  { %v1275_v27 = vpack.c.bf16 %v1211_v21, %v1211_v21  ;;  %v1276_v36 = vpack.c.bf16 %v1212_v22, %v1212_v22 }
 0x244   :  { %v1252_v46 = vpack.c.bf16 %v1188_v41, %v1188_v41  ;;  %v1595_v5 = vpop.permute.xlu1 %1594  ;;  %v1659_v15 = vpop.permute.xlu2 %1658 }
 0x245   :  { %v849_v3 = vpop.f32.mrf.mxu0  ;;  %v1883_v33 = vsel %vm1865_vm5, %v1818_v10, %v1595_v5  ;;  %v1403_v39 = vunpack.c.l.b16 %v1275_v27  ;;  %v1404_v40 = vunpack.c.l.b16 %v1276_v36  ;;  %v4884_v10 = vpop.f32.mrf.mxu2  ;;  %v4184_v27 = vld [vmem:[%s6104_s0 + $0x1f0] sm:$0xff] }
 0x246   :  { %v1380_v61 = vunpack.c.l.b16 %v1252_v46  ;;  %v1948_v1 = vsel %vm1930_vm6, %v1883_v33, %v1659_v15 }
 0x247   :  { %v4870_v41 = vpack.c.b16 %v1404_v40, %v1403_v39 }
 0x248   :  { %v4847_v7 = vpack.c.b16 %v1380_v61, %v1379_v60  ;;  %v4872_v60 = vpop.f32.mrf.mxu3  ;;  %v4183_v61 = vld [vmem:[%s6104_s0 + $0x1e8] sm:$0xff] }
 0x24a   :  { %1664 = vrot.lane.b32.xlu2 %v4847_v7, %s4241_s1 }
 0x24d   :  { %v851_v42 = vpop.f32.mrf.mxu0  ;;  %v4899_v36 = vpop.f32.mrf.mxu2 }
 0x24e   :  { %3963 = vmatmul.msk.bf16.gmra.mxu1 %vm2006_vm7, %v1948_v1 }
 0x250   :  { %v4881_v20 = vpop.f32.mrf.mxu3 }
 0x251   :  { %3948 = vmatmul.msk.bf16.gmra.mxu3 %vm500_vm2, %v4183_v61 }
 0x252   :  { %1602 = vrot.lane.b32.xlu2 %v4847_v7, %s4240_s18 }
 0x255   :  { %v854_v46 = vpop.f32.mrf.mxu0 }
 0x256   :  { %v1057_v51 = vmax.f32 %v849_v3, %v854_v46  ;;  %v1469_v46 = vpop.permute.xlu0 %1468 }
 0x258   :  { %v1125_v0 = vadd.f32 %v4859_v35, %v1057_v51  ;;  %v4888_v1 = vpop.f32.mrf.mxu3  ;;  %v4906_v51 = vpop.f32.mrf.mxu2 }
 0x25a   :  { %1540 = vrot.lane.b32.xlu2 %v4847_v7, %s4239_s28  ;;  %v1189_v53 = vmax.f32 %v1125_v0, 0.0  ;;  %v1533_v0 = vpop.permute.xlu1 %1532 }
 0x25c   :  { %v1253_v11 = vpack.c.bf16 %v1189_v53, %v1189_v53 }
 0x25d   :  { %v856_v5 = vpop.f32.mrf.mxu0 }
 0x25e   :  { %v1058_v9 = vmax.f32 %v851_v42, %v856_v5  ;;  %v1381_v19 = vunpack.c.l.b16 %v1253_v11  ;;  %v1081_v42 = vmax.f32 %v4866_v34, %v4881_v20 }
 0x260   :  { %v1126_v3 = vadd.f32 %v4859_v35, %v1058_v9  ;;  %v4902_v40 = vpop.f32.mrf.mxu3  ;;  %v1733_v9 = vsel %vm1704_vm3, %v4568_v6, %v1469_v46 }
 0x261   :  { %3949 = vmatmul.msk.bf16.gmra.mxu3 %vm500_vm2, %v4184_v27  ;;  %v1820_v11 = vsel %vm1800_vm4, %v1733_v9, %v1533_v0  ;;  %v4925_v0 = vpop.f32.mrf.mxu2 }
 0x262   :  { %v1190_v33 = vmax.f32 %v1126_v3, 0.0  ;;  %1478 = vrot.lane.b32.xlu2 %v4847_v7, %s4238_s20  ;;  %v4185_v3 = vld [vmem:[%s6104_s0 + $0x1f8] sm:$0xff] }
 0x264   :  { %v1254_v15 = vpack.c.bf16 %v1190_v33, %v1190_v33  ;;  %v1597_v33 = vpop.permute.xlu2 %1596 }
 0x265   :  { %v859_v58 = vpop.f32.mrf.mxu0 }
 0x266   :  { %v1382_v21 = vunpack.c.l.b16 %v1254_v15 }
 0x268   :  { %v4890_v22 = vpack.c.b16 %v1382_v21, %v1381_v19  ;;  %v4908_v53 = vpop.f32.mrf.mxu3 }
 0x26a   :  { %1666 = vrot.lane.b32.xlu0 %v4890_v22, %s4241_s1 }
 0x26c   :  { %v1535_v13 = vpop.permute.xlu2 %1534 }
 0x26d   :  { %v861_v39 = vpop.f32.mrf.mxu0 }
 0x271   :  { %3950 = vmatmul.msk.bf16.gmra.mxu3 %vm500_vm2, %v4185_v3 }
 0x272   :  { %1604 = vrot.lane.b32.xlu0 %v4890_v22, %s4240_s18 }
 0x275   :  { %v864_v61 = vpop.f32.mrf.mxu0 }
 0x276   :  { %v1059_v5 = vmax.f32 %v859_v58, %v864_v61  ;;  %v1885_v58 = vsel %vm1865_vm5, %v1820_v11, %v1597_v33  ;;  %v4923_v61 = vpop.f32.mrf.mxu3 }
 0x278   :  { %v1127_v15 = vadd.f32 %v4859_v35, %v1059_v5 }
 0x27a   :  { %1542 = vrot.lane.b32.xlu0 %v4890_v22, %s4239_s28  ;;  %v1191_v27 = vmax.f32 %v1127_v15, 0.0 }
 0x27c   :  { %v1661_v19 = vpop.permute.xlu0 %1660  ;;  %v1255_v3 = vpack.c.bf16 %v1191_v27, %v1191_v27 }
 0x27d   :  { %v866_v21 = vpop.f32.mrf.mxu0  ;;  %v1950_v6 = vsel %vm1930_vm6, %v1885_v58, %v1661_v19 }
 0x27e   :  { %v1060_v46 = vmax.f32 %v861_v39, %v866_v21  ;;  %3964 = vmatmul.msk.bf16.gmra.mxu1 %vm2006_vm7, %v1950_v6  ;;  %v1383_v15 = vunpack.c.l.b16 %v1255_v3  ;;  %v4933_v19 = vpop.f32.mrf.mxu3  ;;  %v4937_v6 = vpop.f32.mrf.mxu2 }
 0x280   :  { %v1128_v9 = vadd.f32 %v4859_v35, %v1060_v46 }
 0x282   :  { %v1192_v4 = vmax.f32 %v1128_v9, 0.0  ;;  %1480 = vrot.lane.b32.xlu0 %v4890_v22, %s4238_s20 }
 0x284   :  { %v1256_v11 = vpack.c.bf16 %v1192_v4, %v1192_v4 }
 0x285   :  { %v869_v33 = vpop.f32.mrf.mxu0 }
 0x286   :  { %v1384_v39 = vunpack.c.l.b16 %v1256_v11  ;;  %v1061_v58 = vmax.f32 %v869_v33, %v4580_v12  ;;  %v4945_v9 = vpop.f32.mrf.mxu3  ;;  %v4952_v33 = vpop.f32.mrf.mxu2 }
 0x288   :  { %v4935_v21 = vpack.c.b16 %v1384_v39, %v1383_v15  ;;  %v1129_v45 = vadd.f32 %v4859_v35, %v1061_v58  ;;  %v1070_v15 = vmax.f32 %v4762_v57, %v4779_v2  ;;  %v1599_v57 = vpop.permute.xlu0 %1598 }
 0x28a   :  { %1672 = vrot.lane.b32.xlu0 %v4655_v26, %s4241_s1  ;;  %1668 = vrot.lane.b32.xlu1 %v4935_v21, %s4241_s1  ;;  %v1193_v27 = vmax.f32 %v1129_v45, 0.0  ;;  %v1471_v45 = vpop.permute.xlu1 %1470 }
 0x28c   :  { %v1257_v3 = vpack.c.bf16 %v1193_v27, %v1193_v27  ;;  %v1137_v27 = vadd.f32 %v4859_v35, %v1069_v63 }
 0x28d   :  { %v871_v4 = vpop.f32.mrf.mxu0 }
 0x28e   :  { %v1062_v46 = vmax.f32 %v871_v4, %v4588_v16  ;;  %v1385_v16 = vunpack.c.l.b16 %v1257_v3  ;;  %v4956_v4 = vpop.f32.mrf.mxu3  ;;  %v1201_v47 = vmax.f32 %v1137_v27, 0.0  ;;  %v941_v3 = vpop.f32.mrf.mxu2 }
 0x290   :  { %v1130_v12 = vadd.f32 %v4859_v35, %v1062_v46  ;;  %v1138_v46 = vadd.f32 %v4859_v35, %v1070_v15 }
 0x292   :  { %v1194_v11 = vmax.f32 %v1130_v12, 0.0  ;;  %1610 = vrot.lane.b32.xlu0 %v4655_v26, %s4240_s18  ;;  %1606 = vrot.lane.b32.xlu1 %v4935_v21, %s4240_s18  ;;  %v1736_v12 = vsel %vm1704_vm3, %v4608_v38, %v1471_v45  ;;  %v1202_v62 = vmax.f32 %v1138_v46, 0.0  ;;  %v1265_v45 = vpack.c.bf16 %v1201_v47, %v1201_v47 }
 0x293   :  { %v1822_v2 = vsel %vm1800_vm4, %v1736_v12, %v1535_v13  ;;  %v1068_v46 = vmax.f32 %v4700_v8, %v4736_v37  ;;  %v1537_v12 = vpop.permute.xlu0 %1536 }
 0x294   :  { %v1258_v39 = vpack.c.bf16 %v1194_v11, %v1194_v11  ;;  %v1887_v63 = vsel %vm1865_vm5, %v1822_v2, %v1599_v57  ;;  %v1393_v13 = vunpack.c.l.b16 %v1265_v45 }
 0x296   :  { %v1386_v58 = vunpack.c.l.b16 %v1258_v39  ;;  %v4977_v15 = vpop.f32.mrf.mxu3  ;;  %v1266_v39 = vpack.c.bf16 %v1202_v62, %v1202_v62  ;;  %v944_v2 = vpop.f32.mrf.mxu2 }
 0x297   :  { %v1085_v27 = vmax.f32 %v4945_v9, %v4977_v15 }
 0x298   :  { %v4965_v5 = vpack.c.b16 %v1386_v58, %v1385_v16  ;;  %v1473_v16 = vpop.permute.xlu2 %1472  ;;  %v1394_v58 = vunpack.c.l.b16 %v1266_v39 }
 0x29a   :  { %1548 = vrot.lane.b32.xlu0 %v4655_v26, %s4239_s28  ;;  %1544 = vrot.lane.b32.xlu1 %v4935_v21, %s4239_s28  ;;  %v4991_v62 = vpack.c.b16 %v1394_v58, %v1393_v13  ;;  %v1075_v58 = vmax.f32 %v4952_v33, %v944_v2 }
 0x29b   :  { %1670 = vrot.lane.b32.xlu2 %v4965_v5, %s4241_s1 }
 0x29c   :  { %v1663_v38 = vpop.permute.xlu1 %1662 }
 0x29d   :  { %v1952_v11 = vsel %vm1930_vm6, %v1887_v63, %v1663_v38  ;;  %v1739_v63 = vsel %vm1704_vm3, %v4652_v25, %v1473_v16  ;;  %v1135_v38 = vadd.f32 %v4859_v35, %v1067_v31 }
 0x29e   :  { %3965 = vmatmul.msk.bf16.gmra.mxu1 %vm2006_vm7, %v1952_v11  ;;  %v4989_v57 = vpop.f32.mrf.mxu3  ;;  %v1136_v11 = vadd.f32 %v4859_v35, %v1068_v46  ;;  %v1824_v45 = vsel %vm1800_vm4, %v1739_v63, %v1537_v12  ;;  %v946_v13 = vpop.f32.mrf.mxu2  ;;  %v1072_v12 = vmax.f32 %v4803_v43, %v4884_v10 }
 0x29f   :  { %v1199_v25 = vmax.f32 %v1135_v38, 0.0  ;;  %v1076_v46 = vmax.f32 %v941_v3, %v946_v13  ;;  %v1143_v38 = vadd.f32 %v4859_v35, %v1075_v58  ;;  %v1139_v3 = vadd.f32 %v4859_v35, %v1071_v56 }
 0x2a0   :  { %v1200_v54 = vmax.f32 %v1136_v11, 0.0  ;;  %v1140_v2 = vadd.f32 %v4859_v35, %v1072_v12  ;;  %v1074_v12 = vmax.f32 %v4906_v51, %v4937_v6 }
 0x2a1   :  { %v1263_v39 = vpack.c.bf16 %v1199_v25, %v1199_v25  ;;  %v1144_v11 = vadd.f32 %v4859_v35, %v1076_v46  ;;  %v1203_v43 = vmax.f32 %v1139_v3, 0.0  ;;  %v1073_v46 = vmax.f32 %v4899_v36, %v4925_v0 }
 0x2a2   :  { %1486 = vrot.lane.b32.xlu0 %v4655_v26, %s4238_s20  ;;  %1482 = vrot.lane.b32.xlu1 %v4935_v21, %s4238_s20  ;;  %v1264_v16 = vpack.c.bf16 %v1200_v54, %v1200_v54  ;;  %v1204_v10 = vmax.f32 %v1140_v2, 0.0 }
 0x2a3   :  { %1608 = vrot.lane.b32.xlu2 %v4965_v5, %s4240_s18  ;;  %v1267_v25 = vpack.c.bf16 %v1203_v43, %v1203_v43  ;;  %v1141_v2 = vadd.f32 %v4859_v35, %v1073_v46 }
 0x2a4   :  { %v1601_v47 = vpop.permute.xlu1 %1600  ;;  %v1665_v37 = vpop.permute.xlu2 %1664  ;;  %v1392_v63 = vunpack.c.l.b16 %v1264_v16  ;;  %v1268_v54 = vpack.c.bf16 %v1204_v10, %v1204_v10 }
 0x2a5   :  { %v1889_v8 = vsel %vm1865_vm5, %v1824_v45, %v1601_v47  ;;  %v1391_v47 = vunpack.c.l.b16 %v1263_v39  ;;  %v1395_v13 = vunpack.c.l.b16 %v1267_v25  ;;  %v1205_v36 = vmax.f32 %v1141_v2, 0.0 }
 0x2a6   :  { %v1954_v30 = vsel %vm1930_vm6, %v1889_v8, %v1665_v37  ;;  %v5010_v31 = vpop.f32.mrf.mxu3  ;;  %v1207_v8 = vmax.f32 %v1143_v38, 0.0  ;;  %v1208_v37 = vmax.f32 %v1144_v11, 0.0  ;;  %v1396_v58 = vunpack.c.l.b16 %v1268_v54 }
 0x2a7   :  { %v5030_v45 = vpack.c.b16 %v1392_v63, %v1391_v47  ;;  %v949_v63 = vpop.f32.mrf.mxu2  ;;  %v1269_v0 = vpack.c.bf16 %v1205_v36, %v1205_v36 }
 0x2a8   :  { %v1271_v23 = vpack.c.bf16 %v1207_v8, %v1207_v8  ;;  %v1272_v55 = vpack.c.bf16 %v1208_v37, %v1208_v37  ;;  %v5056_v11 = vpack.c.b16 %v1396_v58, %v1395_v13  ;;  %v1142_v8 = vadd.f32 %v4859_v35, %v1074_v12 }
 0x2a9   :  { %v1077_v25 = vmax.f32 %v949_v63, %v4796_v28  ;;  %v1149_v58 = vadd.f32 %v4859_v35, %v1081_v42 }
 0x2aa   :  { %1678 = vrot.lane.b32.xlu0 %v4991_v62, %s4241_s1  ;;  %1674 = vrot.lane.b32.xlu1 %v4707_v18, %s4241_s1  ;;  %v1399_v39 = vunpack.c.l.b16 %v1271_v23  ;;  %v1400_v16 = vunpack.c.l.b16 %v1272_v55  ;;  %v1206_v51 = vmax.f32 %v1142_v8, 0.0  ;;  %v1082_v23 = vmax.f32 %v4872_v60, %v4888_v1  ;;  %v1475_v55 = vpop.permute.xlu0 %1474 }
 0x2ab   :  { %1546 = vrot.lane.b32.xlu2 %v4965_v5, %s4239_s28  ;;  %v1742_v12 = vsel %vm1704_vm3, %v4704_v17, %v1475_v55  ;;  %v1145_v60 = vadd.f32 %v4859_v35, %v1077_v25  ;;  %v1213_v34 = vmax.f32 %v1149_v58, 0.0 }
 0x2ac   :  { %v5052_v47 = vpack.c.b16 %v1400_v16, %v1399_v39  ;;  %v1270_v6 = vpack.c.bf16 %v1206_v51, %v1206_v51  ;;  %v1397_v39 = vunpack.c.l.b16 %v1269_v0  ;;  %v1539_v13 = vpop.permute.xlu1 %1538  ;;  %v1150_v46 = vadd.f32 %v4859_v35, %v1082_v23  ;;  %v1603_v63 = vpop.permute.xlu2 %1602 }
 0x2ad   :  { %v1209_v42 = vmax.f32 %v1145_v60, 0.0 }
 0x2ae   :  { %3966 = vmatmul.msk.bf16.gmra.mxu1 %vm2006_vm7, %v1954_v30  ;;  %v5023_v33 = vpop.f32.mrf.mxu3  ;;  %v5040_v30 = vpop.f32.mrf.mxu1  ;;  %v1398_v16 = vunpack.c.l.b16 %v1270_v6  ;;  %v1214_v20 = vmax.f32 %v1150_v46, 0.0  ;;  %v1277_v6 = vpack.c.bf16 %v1213_v34, %v1213_v34 }
 0x2af   :  { %v951_v37 = vpop.f32.mrf.mxu2  ;;  %v1273_v23 = vpack.c.bf16 %v1209_v42, %v1209_v42 }
 0x2b0   :  { %v1078_v54 = vmax.f32 %v951_v37, %v4805_v48  ;;  %v5091_v28 = vpack.c.b16 %v1398_v16, %v1397_v39  ;;  %v1826_v48 = vsel %vm1800_vm4, %v1742_v12, %v1539_v13  ;;  %v1278_v37 = vpack.c.bf16 %v1214_v20, %v1214_v20 }
 0x2b1   :  { %v1891_v8 = vsel %vm1865_vm5, %v1826_v48, %v1603_v63  ;;  %v1401_v16 = vunpack.c.l.b16 %v1273_v23 }
 0x2b2   :  { %1616 = vrot.lane.b32.xlu0 %v4991_v62, %s4240_s18  ;;  %1612 = vrot.lane.b32.xlu1 %v4707_v18, %s4240_s18  ;;  %v1146_v1 = vadd.f32 %v4859_v35, %v1078_v54  ;;  %v1405_v54 = vunpack.c.l.b16 %v1277_v6  ;;  %v1406_v39 = vunpack.c.l.b16 %v1278_v37 }
 0x2b3   :  { %1484 = vrot.lane.b32.xlu2 %v4965_v5, %s4238_s20 }
 0x2b4   :  { %v1210_v2 = vmax.f32 %v1146_v1, 0.0  ;;  %v1541_v25 = vpop.permute.xlu2 %1540  ;;  %v5117_v60 = vpack.c.b16 %v1406_v39, %v1405_v54 }
 0x2b6   :  { %v5038_v56 = vpop.f32.mrf.mxu3  ;;  %v5058_v3 = vpop.f32.mrf.mxu1  ;;  %v1274_v55 = vpack.c.bf16 %v1210_v2, %v1210_v2 }
 0x2b7   :  { %v1087_v42 = vmax.f32 %v5010_v31, %v5038_v56  ;;  %v6121_v56 = vmax.f32 %v4902_v40, %v4923_v61 }
 0x2b8   :  { %v1402_v13 = vunpack.c.l.b16 %v1274_v55 }
 0x2b9   :  { %v1155_v31 = vadd.f32 %v4859_v35, %v1087_v42 }
 0x2ba   :  { %1554 = vrot.lane.b32.xlu0 %v4991_v62, %s4239_s28  ;;  %1550 = vrot.lane.b32.xlu1 %v4707_v18, %s4239_s28  ;;  %v5119_v1 = vpack.c.b16 %v1402_v13, %v1401_v16 }
 0x2bb   :  { %1676 = vrot.lane.b32.xlu2 %v5030_v45, %s4241_s1 }
 0x2bc   :  { %v1479_v63 = vpop.permute.xlu2 %1478 }
 0x2be   :  { %v5054_v38 = vpop.f32.mrf.mxu3  ;;  %v5074_v10 = vpop.f32.mrf.mxu1 }
 0x2bf   :  { %v1088_v2 = vmax.f32 %v5023_v33, %v5054_v38  ;;  %v1151_v38 = vadd.f32 %v4859_v35, %v6121_v56 }
 0x2c1   :  { %v1156_v33 = vadd.f32 %v4859_v35, %v1088_v2  ;;  %v1215_v61 = vmax.f32 %v1151_v38, 0.0 }
 0x2c2   :  { %1492 = vrot.lane.b32.xlu0 %v4991_v62, %s4238_s20  ;;  %1488 = vrot.lane.b32.xlu1 %v4707_v18, %s4238_s20 }
 0x2c3   :  { %1614 = vrot.lane.b32.xlu2 %v5030_v45, %s4240_s18  ;;  %v1220_v54 = vmax.f32 %v1156_v33, 0.0 }
 0x2c6   :  { %v5068_v43 = vpop.f32.mrf.mxu3  ;;  %v5103_v51 = vpop.f32.mrf.mxu1 }
 0x2ca   :  { %1684 = vrot.lane.b32.xlu0 %v5052_v47, %s4241_s1  ;;  %1680 = vrot.lane.b32.xlu1 %v5056_v11, %s4241_s1 }
 0x2cb   :  { %1552 = vrot.lane.b32.xlu2 %v5030_v45, %s4239_s28 }
 0x2ce   :  { %v5100_v17 = vpop.f32.mrf.mxu3  ;;  %v5115_v12 = vpop.f32.mrf.mxu1 }
 0x2d2   :  { %1622 = vrot.lane.b32.xlu0 %v5052_v47, %s4240_s18  ;;  %1618 = vrot.lane.b32.xlu1 %v5056_v11, %s4240_s18 }
 0x2d3   :  { %1490 = vrot.lane.b32.xlu2 %v5030_v45, %s4238_s20 }
 0x2d6   :  { %v5113_v46 = vpop.f32.mrf.mxu3  ;;  %v5127_v34 = vpop.f32.mrf.mxu1 }
 0x2da   :  { %1560 = vrot.lane.b32.xlu0 %v5052_v47, %s4239_s28  ;;  %1556 = vrot.lane.b32.xlu1 %v5056_v11, %s4239_s28 }
 0x2db   :  { %1682 = vrot.lane.b32.xlu2 %v5091_v28, %s4241_s1 }
 0x2dc   :  { %v1667_v36 = vpop.permute.xlu0 %1666 }
 0x2dd   :  { %v1956_v0 = vsel %vm1930_vm6, %v1891_v8, %v1667_v36  ;;  %v1084_v8 = vmax.f32 %v4908_v53, %v4933_v19  ;;  %v1477_v36 = vpop.permute.xlu1 %1476  ;;  %v1219_v19 = vmax.f32 %v1155_v31, 0.0  ;;  %v1279_v31 = vpack.c.bf16 %v1215_v61, %v1215_v61 }
 0x2de   :  { %3967 = vmatmul.msk.bf16.gmra.mxu1 %vm2006_vm7, %v1956_v0  ;;  %v5129_v20 = vpop.f32.mrf.mxu3  ;;  %v1745_v23 = vsel %vm1704_vm3, %v4764_v59, %v1477_v36  ;;  %v5154_v55 = vpop.f32.mrf.mxu1  ;;  %v1284_v36 = vpack.c.bf16 %v1220_v54, %v1220_v54 }
 0x2df   :  { %v1152_v37 = vadd.f32 %v4859_v35, %v1084_v8  ;;  %v1828_v40 = vsel %vm1800_vm4, %v1745_v23, %v1541_v25  ;;  %v1283_v8 = vpack.c.bf16 %v1219_v19, %v1219_v19  ;;  %v1407_v23 = vunpack.c.l.b16 %v1279_v31 }
 0x2e0   :  { %v1412_v38 = vunpack.c.l.b16 %v1284_v36 }
 0x2e1   :  { %v1216_v39 = vmax.f32 %v1152_v37, 0.0  ;;  %v1411_v56 = vunpack.c.l.b16 %v1283_v8 }
 0x2e2   :  { %1498 = vrot.lane.b32.xlu0 %v5052_v47, %s4238_s20  ;;  %1494 = vrot.lane.b32.xlu1 %v5056_v11, %s4238_s20 }
 0x2e3   :  { %1620 = vrot.lane.b32.xlu2 %v5091_v28, %s4240_s18  ;;  %v1280_v25 = vpack.c.bf16 %v1216_v39, %v1216_v39  ;;  %v5188_v39 = vpack.c.b16 %v1412_v38, %v1411_v56  ;;  %v1089_v38 = vmax.f32 %v5068_v43, %v5113_v46 }
 0x2e4   :  { %v1605_v58 = vpop.permute.xlu0 %1604 }
 0x2e5   :  { %v1893_v59 = vsel %vm1865_vm5, %v1828_v40, %v1605_v58  ;;  %v1086_v58 = vmax.f32 %v4956_v4, %v4989_v57  ;;  %v1408_v19 = vunpack.c.l.b16 %v1280_v25  ;;  %v1157_v46 = vadd.f32 %v4859_v35, %v1089_v38 }
 0x2e6   :  { %v5156_v53 = vpop.f32.mrf.mxu3  ;;  %v5172_v33 = vpop.f32.mrf.mxu1 }
 0x2e7   :  { %v1154_v4 = vadd.f32 %v4859_v35, %v1086_v58  ;;  %v5195_v57 = vpack.c.b16 %v1408_v19, %v1407_v23  ;;  %v1090_v58 = vmax.f32 %v5100_v17, %v5129_v20  ;;  %v2247_v17 = vmax.f32 %v5058_v3, %v5103_v51 }
 0x2e9   :  { %v1158_v20 = vadd.f32 %v4859_v35, %v1090_v58 }
 0x2ea   :  { %1690 = vrot.lane.b32.xlu0 %v5117_v60, %s4241_s1  ;;  %1686 = vrot.lane.b32.xlu1 %v5119_v1, %s4241_s1 }
 0x2eb   :  { %1558 = vrot.lane.b32.xlu2 %v5091_v28, %s4239_s28 }
 0x2ec   :  { %v1543_v48 = vpop.permute.xlu0 %1542 }
 0x2ee   :  { %v5182_v37 = vpop.f32.mrf.mxu3  ;;  %v5205_v15 = vpop.f32.mrf.mxu1 }
 0x2f2   :  { %1628 = vrot.lane.b32.xlu0 %v5117_v60, %s4240_s18  ;;  %1624 = vrot.lane.b32.xlu1 %v5119_v1, %s4240_s18 }
 0x2f3   :  { %1496 = vrot.lane.b32.xlu2 %v5091_v28, %s4238_s20 }
 0x2f4   :  { %v5143_v0 = vpop.permute.xlu0 %1480 }
 0x2f5   :  { %v1671_v6 = vpop.permute.xlu2 %1670 }
 0x2f6   :  { %v1024_v31 = vpop.f32.mrf.mxu3 }
 0x2fa   :  { %1566 = vrot.lane.b32.xlu0 %v5117_v60, %s4239_s28  ;;  %1562 = vrot.lane.b32.xlu1 %v5119_v1, %s4239_s28 }
 0x2fb   :  { %1688 = vrot.lane.b32.xlu2 %v4870_v41, %s4241_s1 }
 0x2fc   :  { %v5166_v16 = vpop.permute.xlu0 %1672  ;;  %v1669_v13 = vpop.permute.xlu1 %1668 }
 0x2fd   :  { %v1958_v42 = vsel %vm1930_vm6, %v1893_v59, %v1669_v13  ;;  %v5169_v2 = vpop.permute.xlu2 %1608  ;;  %v1153_v59 = vadd.f32 %v4859_v35, %v1085_v27  ;;  %v1748_v13 = vsel %vm1704_vm3, %v4807_v49, %v1479_v63  ;;  %v1218_v27 = vmax.f32 %v1154_v4, 0.0  ;;  %v5238_v4 = vld [vmem:[%s6107_s7] ss:$0 sm:$0xff] }
 0x2fe   :  { %3968 = vmatmul.msk.bf16.gmra.mxu1 %vm2006_vm7, %v1958_v42  ;;  %v1830_v42 = vsel %vm1800_vm4, %v1748_v13, %v1543_v48  ;;  %v5245_v13 = vpop.f32.mrf.mxu1  ;;  %v1026_v51 = vpop.f32.mrf.mxu3 }
 0x2ff   :  { %v1217_v9 = vmax.f32 %v1153_v59, 0.0  ;;  %v1282_v56 = vpack.c.bf16 %v1218_v27, %v1218_v27  ;;  %v1222_v27 = vmax.f32 %v1158_v20, 0.0 }
 0x301   :  { %v1281_v25 = vpack.c.bf16 %v1217_v9, %v1217_v9  ;;  %v1410_v19 = vunpack.c.l.b16 %v1282_v56  ;;  %v1221_v9 = vmax.f32 %v1157_v46, 0.0 }
 0x302   :  { %1504 = vrot.lane.b32.xlu0 %v5117_v60, %s4238_s20  ;;  %1500 = vrot.lane.b32.xlu1 %v5119_v1, %s4238_s20 }
 0x303   :  { %1626 = vrot.lane.b32.xlu2 %v4870_v41, %s4240_s18  ;;  %v1409_v23 = vunpack.c.l.b16 %v1281_v25  ;;  %v1285_v58 = vpack.c.bf16 %v1221_v9, %v1221_v9 }
 0x304   :  { %v5184_v54 = vpop.permute.xlu0 %1610  ;;  %v1607_v40 = vpop.permute.xlu1 %1606 }
 0x305   :  { %v5186_v61 = vpop.permute.xlu2 %1546  ;;  %v1895_v8 = vsel %vm1865_vm5, %v1830_v42, %v1607_v40  ;;  %v1413_v46 = vunpack.c.l.b16 %v1285_v58 }
 0x306   :  { %v1960_v48 = vsel %vm1930_vm6, %v1895_v8, %v1671_v6  ;;  %v2248_v6 = vmax.f32 %v5074_v10, %v5115_v12  ;;  %v1751_v10 = vsel %vm1704_vm3, %v4847_v7, %v5143_v0  ;;  %v5243_v12 = vpack.c.b16 %v1410_v19, %v1409_v23 }
 0x307   :  { %v2283_v8 = vadd.f32 %v5238_v4, %v2247_v17  ;;  %v1091_v7 = vmax.f32 %v5156_v53, %v1024_v31  ;;  %v1092_v0 = vmax.f32 %v5182_v37, %v1026_v51  ;;  %v5269_v17 = vpop.f32.mrf.mxu1  ;;  %v2244_v51 = vmax.f32 %v4731_v32, %v4798_v29 }
 0x308   :  { %v2284_v42 = vadd.f32 %v5238_v4, %v2248_v6 }
 0x309   :  { %v2315_v38 = vmax.f32 %v2283_v8, 0.0  ;;  %v1159_v6 = vadd.f32 %v4859_v35, %v1091_v7  ;;  %v1160_v53 = vadd.f32 %v4859_v35, %v1092_v0  ;;  %v2728_v35 = vld [vmem:[%s6108_s3 + $0x10] sm:$0xf]  ;;  %v2280_v29 = vadd.f32 %v5238_v4, %v2244_v51 }
 0x30a   :  { %1696 = vrot.lane.b32.xlu0 %v5188_v39, %s4241_s1  ;;  %1692 = vrot.lane.b32.xlu1 %v5195_v57, %s4241_s1 }
 0x30b   :  { %1564 = vrot.lane.b32.xlu2 %v4870_v41, %s4239_s28  ;;  %v2347_v31 = vpack.c.bf16 %v2315_v38, %v2315_v38 }
 0x30c   :  { %v5209_v36 = vpop.permute.xlu0 %1548  ;;  %v1545_v49 = vpop.permute.xlu1 %1544 }
 0x30d   :  { %v5211_v63 = vpop.permute.xlu2 %1484  ;;  %v1832_v3 = vsel %vm1800_vm4, %v1751_v10, %v1545_v49  ;;  %v2316_v49 = vmax.f32 %v2284_v42, 0.0  ;;  %v1223_v10 = vmax.f32 %v1159_v6, 0.0  ;;  %v2246_v42 = vmax.f32 %v4823_v50, %v5040_v30 }
 0x30e   :  { %3969 = vmatmul.msk.bf16.gmra.mxu1 %vm2006_vm7, %v1960_v48  ;;  %v1897_v48 = vsel %vm1865_vm5, %v1832_v3, %v5169_v2  ;;  %v1286_v2 = vpack.c.bf16 %v1222_v27, %v1222_v27  ;;  %v6122_v3 = vmov 0   ;;  %v2411_v7 = vunpack.c.l.b16 %v2347_v31 }
 0x30f   :  { %v1962_v19 = vsel %vm1930_vm6, %v1897_v48, %v5166_v16  ;;  %v2348_v37 = vpack.c.bf16 %v2316_v49, %v2316_v49  ;;  %v1224_v16 = vmax.f32 %v1160_v53, 0.0  ;;  %v2738_v48 = vunpack.c.l.b16 %v2728_v35  ;;  %v2128_v6 = vpop.f32.mrf.mxu1 }
 0x310   :  { %v1414_v20 = vunpack.c.l.b16 %v1286_v2  ;;  %v1287_v58 = vpack.c.bf16 %v1223_v10, %v1223_v10  ;;  %v2282_v50 = vadd.f32 %v5238_v4, %v2246_v42 }
 0x311   :  { %v2412_v8 = vunpack.c.l.b16 %v2348_v37  ;;  %v1288_v2 = vpack.c.bf16 %v1224_v16, %v1224_v16  ;;  %v2741_v32 = vpack.c.b16 %v2738_v48, %v2738_v48  ;;  %v6123_v37 = vmax.f32 %v4716_v24, %v4749_v44 }
 0x312   :  { %1634 = vrot.lane.b32.xlu0 %v5188_v39, %s4240_s18  ;;  %1630 = vrot.lane.b32.xlu1 %v5195_v57, %s4240_s18  ;;  %v5286_v0 = vpack.c.b16 %v1414_v20, %v1413_v46  ;;  %v1415_v46 = vunpack.c.l.b16 %v1287_v58  ;;  %v2312_v24 = vmax.f32 %v2280_v29, 0.0  ;;  %v2314_v44 = vmax.f32 %v2282_v50, 0.0 }
 0x313   :  { %1502 = vrot.lane.b32.xlu2 %v4870_v41, %s4238_s20  ;;  %v5294_v30 = vpack.c.b16 %v2412_v8, %v2411_v7  ;;  %v1416_v20 = vunpack.c.l.b16 %v1288_v2 }
 0x314   :  { %v5227_v40 = vpop.permute.xlu0 %1486  ;;  %v1483_v43 = vpop.permute.xlu1 %1482  ;;  %v2344_v8 = vpack.c.bf16 %v2312_v24, %v2312_v24  ;;  %v2346_v48 = vpack.c.bf16 %v2314_v44, %v2314_v44 }
 0x315   :  { %v5233_v59 = vpop.permute.xlu2 %1676  ;;  %v1754_v38 = vsel %vm1704_vm3, %v4890_v22, %v1483_v43  ;;  %v2279_v22 = vadd.f32 %v5238_v4, %v6123_v37  ;;  %v6124_v43 = vmax.f32 %v4812_v52, %v4834_v14  ;;  %v5320_v42 = vpack.c.b16 %v1416_v20, %v1415_v46 }
 0x316   :  { %v1834_v53 = vsel %vm1800_vm4, %v1754_v38, %v5186_v61  ;;  %v2410_v58 = vunpack.c.l.b16 %v2346_v48  ;;  %v2249_v48 = vmax.f32 %v5127_v34, %v5172_v33 }
 0x317   :  { %v2281_v31 = vadd.f32 %v5238_v4, %v6124_v43  ;;  %v1899_v61 = vsel %vm1865_vm5, %v1834_v53, %v5184_v54  ;;  %v2311_v35 = vmax.f32 %v2279_v22, 0.0  ;;  %v2130_v54 = vpop.f32.mrf.mxu1  ;;  %v1757_v53 = vsel %vm1704_vm3, %v4935_v21, %v5211_v63 }
 0x318   :  { %v1836_v43 = vsel %vm1800_vm4, %v1757_v53, %v5209_v36  ;;  %v2252_v21 = vmax.f32 %v5269_v17, %v2130_v54 }
 0x319   :  { %v2313_v51 = vmax.f32 %v2281_v31, 0.0  ;;  %v2343_v7 = vpack.c.bf16 %v2311_v35, %v2311_v35 }
 0x31a   :  { %1572 = vrot.lane.b32.xlu0 %v5188_v39, %s4239_s28  ;;  %1568 = vrot.lane.b32.xlu1 %v5195_v57, %s4239_s28  ;;  %v2288_v44 = vadd.f32 %v5238_v4, %v2252_v21 }
 0x31b   :  { %1694 = vrot.lane.b32.xlu2 %v5243_v12, %s4241_s1  ;;  %v2345_v38 = vpack.c.bf16 %v2313_v51, %v2313_v51  ;;  %v2407_v50 = vunpack.c.l.b16 %v2343_v7 }
 0x31c   :  { %v5260_v25 = vpop.permute.xlu0 %1678  ;;  %v1675_v56 = vpop.permute.xlu1 %1674  ;;  %v2320_v17 = vmax.f32 %v2288_v44, 0.0 }
 0x31d   :  { %v5262_v23 = vpop.permute.xlu2 %1614  ;;  %v1964_v10 = vsel %vm1930_vm6, %v1899_v61, %v1675_v56  ;;  %v2408_v56 = vunpack.c.l.b16 %v2344_v8  ;;  %v1760_v8 = vsel %vm1704_vm3, %v4965_v5, %v5227_v40  ;;  %v2285_v5 = vadd.f32 %v5238_v4, %v2249_v48 }
 0x31e   :  { %3970 = vmatmul.msk.bf16.gmra.mxu1 %vm2006_vm7, %v1962_v19  ;;  %v2779_v19 = vsel %vm2777_vm8, %v2741_v32, 0 }
 0x31f   :  { %2786 = vmatpush.bf16.msrb.mxu2 %v2779_v19  ;;  %v2409_v19 = vunpack.c.l.b16 %v2345_v38  ;;  %v5339_v22 = vpack.c.b16 %v2408_v56, %v2407_v50  ;;  %v5348_v46 = vpop.f32.mrf.mxu1  ;;  %v2352_v38 = vpack.c.bf16 %v2320_v17, %v2320_v17  ;;  %v2317_v50 = vmax.f32 %v2285_v5, 0.0 }
 0x321   :  { %v5337_v37 = vpack.c.b16 %v2410_v58, %v2409_v19  ;;  %v2416_v34 = vunpack.c.l.b16 %v2352_v38 }
 0x322   :  { %2455 = vrot.lane.b32.xlu0 %v6122_v3, %s4239_s28  ;;  %1506 = vrot.lane.b32.xlu1 %v5195_v57, %s4238_s20 }
 0x323   :  { %1632 = vrot.lane.b32.xlu2 %v5243_v12, %s4240_s18 }
 0x324   :  { %v5284_v9 = vpop.permute.xlu0 %1616  ;;  %v1613_v27 = vpop.permute.xlu1 %1612 }
 0x325   :  { %v5288_v49 = vpop.permute.xlu2 %1552  ;;  %v1901_v31 = vsel %vm1865_vm5, %v1836_v43, %v1613_v27  ;;  %v2251_v27 = vmax.f32 %v5245_v13, %v2128_v6  ;;  %v2250_v6 = vmax.f32 %v5154_v55, %v5205_v15 }
 0x326   :  { %v1966_v36 = vsel %vm1930_vm6, %v1901_v31, %v5233_v59 }
 0x327   :  { %v2287_v61 = vadd.f32 %v5238_v4, %v2251_v27  ;;  %v2286_v54 = vadd.f32 %v5238_v4, %v2250_v6 }
 0x329   :  { %v2319_v51 = vmax.f32 %v2287_v61, 0.0  ;;  %v2318_v40 = vmax.f32 %v2286_v54, 0.0 }
 0x32a   :  { %2551 = vrot.lane.b32.xlu0 %v5294_v30, %s4242_s27  ;;  %1698 = vrot.lane.b32.xlu1 %v5286_v0, %s4241_s1 }
 0x32b   :  { %1570 = vrot.lane.b32.xlu2 %v5243_v12, %s4239_s28  ;;  %v2351_v56 = vpack.c.bf16 %v2319_v51, %v2319_v51  ;;  %v2350_v43 = vpack.c.bf16 %v2318_v40, %v2318_v40 }
 0x32c   :  { %v5314_v52 = vpop.permute.xlu0 %1554  ;;  %v1551_v14 = vpop.permute.xlu1 %1550 }
 0x32d   :  { %v5317_v16 = vpop.permute.xlu2 %1490  ;;  %v1838_v7 = vsel %vm1800_vm4, %v1760_v8, %v1551_v14  ;;  %v2415_v58 = vunpack.c.l.b16 %v2351_v56  ;;  %v2414_v21 = vunpack.c.l.b16 %v2350_v43 }
 0x32e   :  { %3971 = vmatmul.msk.bf16.gmra.mxu1 %vm2006_vm7, %v1964_v10  ;;  %v2135_v10 = vpop.f32.mrf.mxu1  ;;  %v1903_v55 = vsel %vm1865_vm5, %v1838_v7, %v5262_v23  ;;  %v1766_v56 = vsel %vm1704_vm3, %v4707_v18, %v5317_v16 }
 0x32f   :  { %v1968_v23 = vsel %vm1930_vm6, %v1903_v55, %v5260_v25  ;;  %v5402_v53 = vpack.c.b16 %v2416_v34, %v2415_v58  ;;  %v1842_v5 = vsel %vm1800_vm4, %v1766_v56, %v5314_v52 }
 0x332   :  { %1638 = vrot.lane.b32.xlu0 %v5320_v42, %s4240_s18  ;;  %1636 = vrot.lane.b32.xlu1 %v5286_v0, %s4240_s18 }
 0x333   :  { %1508 = vrot.lane.b32.xlu2 %v5243_v12, %s4238_s20 }
 0x334   :  { %v5328_v2 = vpop.permute.xlu0 %1492  ;;  %v5330_v32 = vpop.permute.xlu1 %1488 }
 0x335   :  { %v5332_v29 = vpop.permute.xlu2 %1682  ;;  %v1763_v27 = vsel %vm1704_vm3, %v4655_v26, %v5330_v32 }
 0x336   :  { %v2138_v19 = vpop.f32.mrf.mxu1  ;;  %v1840_v6 = vsel %vm1800_vm4, %v1763_v27, %v5288_v49 }
 0x337   :  { %v1905_v26 = vsel %vm1865_vm5, %v1840_v6, %v5284_v9  ;;  %v2253_v7 = vmax.f32 %v5348_v46, %v2138_v19 }
 0x339   :  { %v2289_v38 = vadd.f32 %v5238_v4, %v2253_v7 }
 0x33a   :  { %2489 = vrot.lane.b32.xlu0 %v5337_v37, %s4241_s1  ;;  %2487 = vrot.lane.b32.xlu1 %v5339_v22, %s4241_s1 }
 0x33b   :  { %1700 = vrot.lane.b32.xlu2 %v5320_v42, %s4241_s1  ;;  %v2321_v54 = vmax.f32 %v2289_v38, 0.0 }
 0x33c   :  { %v5353_v63 = vpop.permute.xlu0 %1684  ;;  %v1681_v20 = vpop.permute.xlu1 %1680 }
 0x33d   :  { %v5355_v24 = vpop.permute.xlu2 %1620  ;;  %v1970_v48 = vsel %vm1930_vm6, %v1905_v26, %v1681_v20  ;;  %v2353_v40 = vpack.c.bf16 %v2321_v54, %v2321_v54 }
 0x33e   :  { %3972 = vmatmul.msk.bf16.gmra.mxu1 %vm2006_vm7, %v1966_v36  ;;  %v2140_v17 = vpop.f32.mrf.mxu1 }
 0x33f   :  { %v2254_v51 = vmax.f32 %v2135_v10, %v2140_v17  ;;  %v2417_v19 = vunpack.c.l.b16 %v2353_v40 }
 0x342   :  { %1512 = vrot.lane.b32.xlu0 %v5286_v0, %s4238_s20  ;;  %1510 = vrot.lane.b32.xlu1 %v5188_v39, %s4238_s20 }
 0x343   :  { %2519 = vrot.lane.b32.xlu2 %v5337_v37, %s4243_s29 }
 0x344   :  { %v5369_v59 = vpop.permute.xlu0 %1622  ;;  %v5371_v13 = vpop.permute.xlu1 %1618 }
 0x345   :  { %v5375_v35 = vpop.permute.xlu2 %1558 }
 0x34a   :  { %2459 = vrot.lane.b32.xlu0 %v5337_v37, %s4239_s28  ;;  %1702 = vrot.lane.b32.xlu1 %v6122_v3, %s4241_s1 }
 0x34b   :  { %1574 = vrot.lane.b32.xlu2 %v5286_v0, %s4239_s28  ;;  %v2349_v0 = vpack.c.bf16 %v2317_v50, %v2317_v50 }
 0x34c   :  { %v5393_v33 = vpop.permute.xlu0 %1560  ;;  %v5395_v15 = vpop.permute.xlu1 %1556 }
 0x34d   :  { %v5397_v14 = vpop.permute.xlu2 %1496  ;;  %v2413_v44 = vunpack.c.l.b16 %v2349_v0 }
 0x34e   :  { %3973 = vmatmul.msk.bf16.gmra.mxu1 %vm2006_vm7, %v1968_v23  ;;  %v1907_v23 = vsel %vm1865_vm5, %v1842_v5, %v5371_v13 }
 0x34f   :  { %v5419_v61 = vpack.c.b16 %v2414_v21, %v2413_v44  ;;  %v1972_v52 = vsel %vm1930_vm6, %v1907_v23, %v5332_v29 }
 0x352   :  { %2555 = vrot.lane.b32.xlu0 %v5402_v53, %s4242_s27  ;;  %2521 = vrot.lane.b32.xlu1 %v5294_v30, %s4243_s29 }
 0x353   :  { %2457 = vrot.lane.b32.xlu2 %v5339_v22, %s4239_s28 }
 0x354   :  { %v5410_v31 = vpop.permute.xlu0 %1498  ;;  %v5412_v25 = vpop.permute.xlu1 %1494 }
 0x355   :  { %v5414_v36 = vpop.permute.xlu2 %1688  ;;  %v1772_v40 = vsel %vm1704_vm3, %v4991_v62, %v5412_v25 }
 0x35a   :  { %2525 = vrot.lane.b32.xlu0 %v5402_v53, %s4243_s29  ;;  %1576 = vrot.lane.b32.xlu1 %v5320_v42, %s4239_s28  ;;  %v2290_v42 = vadd.f32 %v5238_v4, %v2254_v51 }
 0x35b   :  { %2553 = vrot.lane.b32.xlu2 %v5419_v61, %s4242_s27  ;;  %v2143_v34 = vpop.f32.mrf.mxu1 }
 0x35c   :  { %v5431_v32 = vpop.permute.xlu0 %1690  ;;  %v5433_v8 = vpop.permute.xlu1 %1686  ;;  %v2322_v9 = vmax.f32 %v2290_v42, 0.0 }
 0x35d   :  { %v5436_v49 = vpop.permute.xlu2 %1626 }
 0x35e   :  { %3974 = vmatmul.msk.bf16.gmra.mxu1 %vm2006_vm7, %v1970_v48  ;;  %v2354_v55 = vpack.c.bf16 %v2322_v9, %v2322_v9  ;;  %v4188_v48 = vld [vmem:[%s6108_s3 + $0x8] sm:$0xff] }
 0x35f   :  { %2787 = vmatpush.bf16.msrb.mxu2 %v4188_v48 }
 0x360   :  { %v2418_v58 = vunpack.c.l.b16 %v2354_v55 }
 0x362   :  { %2495 = vrot.lane.b32.xlu0 %v5402_v53, %s4241_s1  ;;  %2491 = vrot.lane.b32.xlu1 %v5294_v30, %s4241_s1  ;;  %v5471_v0 = vpack.c.b16 %v2418_v58, %v2417_v19 }
 0x363   :  { %1640 = vrot.lane.b32.xlu2 %v6122_v3, %s4240_s18  ;;  %v2145_v21 = vpop.f32.mrf.mxu1 }
 0x364   :  { %v1629_v20 = vpop.permute.xlu0 %1628  ;;  %v5448_v10 = vpop.permute.xlu1 %1624 }
 0x365   :  { %v1565_v46 = vpop.permute.xlu2 %1564 }
 0x36a   :  { %2465 = vrot.lane.b32.xlu0 %v5402_v53, %s4239_s28  ;;  %2461 = vrot.lane.b32.xlu1 %v5294_v30, %s4239_s28 }
 0x36b   :  { %2523 = vrot.lane.b32.xlu2 %v5419_v61, %s4243_s29 }
 0x36c   :  { %v1567_v18 = vpop.permute.xlu0 %1566  ;;  %v5463_v16 = vpop.permute.xlu1 %1562 }
 0x36d   :  { %v1503_v50 = vpop.permute.xlu2 %1502 }
 0x36e   :  { %v1784_v13 = vsel %vm1704_vm3, %v5119_v1, %v1503_v50  ;;  %3975 = vmatmul.msk.bf16.gmra.mxu1 %vm2006_vm7, %v1972_v52  ;;  %v1769_v1 = vsel %vm1704_vm3, %v5030_v45, %v5328_v2  ;;  %v1846_v50 = vsel %vm1800_vm4, %v1772_v40, %v5375_v35 }
 0x36f   :  { %v1854_v43 = vsel %vm1800_vm4, %v1784_v13, %v1567_v18  ;;  %v1844_v51 = vsel %vm1800_vm4, %v1769_v1, %v5395_v15  ;;  %v1911_v13 = vsel %vm1865_vm5, %v1846_v50, %v5369_v59 }
 0x370   :  { %v1909_v7 = vsel %vm1865_vm5, %v1844_v51, %v5355_v24  ;;  %v1976_v35 = vsel %vm1930_vm6, %v1911_v13, %v5433_v8 }
 0x371   :  { %v1974_v9 = vsel %vm1930_vm6, %v1909_v7, %v5353_v63 }
 0x372   :  { %2557 = vrot.lane.b32.xlu1 %v5471_v0, %s4242_s27 }
 0x373   :  { %2493 = vrot.lane.b32.xlu2 %v5419_v61, %s4241_s1 }
 0x374   :  { %v1505_v27 = vpop.permute.xlu0 %1504  ;;  %v1501_v44 = vpop.permute.xlu1 %1500 }
 0x375   :  { %v1781_v29 = vsel %vm1704_vm3, %v5052_v47, %v1501_v44  ;;  %v1695_v17 = vpop.permute.xlu2 %1694  ;;  %v1787_v62 = vsel %vm1704_vm3, %v4870_v41, %v1505_v27 }
 0x376   :  { %v1852_v6 = vsel %vm1800_vm4, %v1781_v29, %v1565_v46  ;;  %v4187_v29 = vld [vmem:[%s6108_s3] sm:$0xff] }
 0x377   :  { %v1917_v26 = vsel %vm1865_vm5, %v1852_v6, %v1629_v20  ;;  %2788 = vmatpush.bf16.msrb.mxu2 %v4187_v29 }
 0x37a   :  { %2527 = vrot.lane.b32.xlu1 %v5471_v0, %s4243_s29 }
 0x37b   :  { %2463 = vrot.lane.b32.xlu2 %v5419_v61, %s4239_s28  ;;  %v2148_v45 = vpop.f32.mrf.mxu1 }
 0x37c   :  { %v2255_v47 = vmax.f32 %v2143_v34, %v2148_v45  ;;  %v1697_v2 = vpop.permute.xlu0 %1696  ;;  %v1693_v15 = vpop.permute.xlu1 %1692 }
 0x37d   :  { %v5496_v42 = vsel %vm1930_vm6, %v1917_v26, %v1693_v15  ;;  %v1633_v38 = vpop.permute.xlu2 %1632 }
 0x37e   :  { %3976 = vmatmul.msk.bf16.gmra.mxu1 %vm2006_vm7, %v1974_v9  ;;  %v2291_v24 = vadd.f32 %v5238_v4, %v2255_v47 }
 0x380   :  { %v2323_v46 = vmax.f32 %v2291_v24, 0.0 }
 0x382   :  { %2497 = vrot.lane.b32.xlu1 %v5471_v0, %s4241_s1  ;;  %v2355_v58 = vpack.c.bf16 %v2323_v46, %v2323_v46 }
 0x383   :  { %v2150_v20 = vpop.f32.mrf.mxu1 }
 0x384   :  { %v2256_v54 = vmax.f32 %v2145_v21, %v2150_v20  ;;  %v1635_v56 = vpop.permute.xlu0 %1634  ;;  %v1631_v55 = vpop.permute.xlu1 %1630  ;;  %v2419_v25 = vunpack.c.l.b16 %v2355_v58 }
 0x385   :  { %v1919_v5 = vsel %vm1865_vm5, %v1854_v43, %v1631_v55  ;;  %v1571_v34 = vpop.permute.xlu2 %1570 }
 0x386   :  { %v2292_v63 = vadd.f32 %v5238_v4, %v2256_v54  ;;  %v5510_v23 = vsel %vm1930_vm6, %v1919_v5, %v1695_v17 }
 0x388   :  { %v2324_v18 = vmax.f32 %v2292_v63, 0.0 }
 0x38a   :  { %v2356_v52 = vpack.c.bf16 %v2324_v18, %v2324_v18  ;;  %2467 = vrot.lane.b32.xlu1 %v5471_v0, %s4239_s28 }
 0x38b   :  { %v2153_v19 = vpop.f32.mrf.mxu1 }
 0x38c   :  { %v2420_v43 = vunpack.c.l.b16 %v2356_v52  ;;  %v1573_v21 = vpop.permute.xlu0 %1572  ;;  %v1569_v44 = vpop.permute.xlu1 %1568 }
 0x38d   :  { %v1856_v17 = vsel %vm1800_vm4, %v1787_v62, %v1569_v44  ;;  %v1509_v1 = vpop.permute.xlu2 %1508 }
 0x38e   :  { %v5526_v6 = vpack.c.b16 %v2420_v43, %v2419_v25  ;;  %v1921_v59 = vsel %vm1865_vm5, %v1856_v17, %v1633_v38  ;;  %v1793_v41 = vsel %vm1704_vm3, %v5195_v57, %v1509_v1  ;;  %3977 = vmatmul.msk.bf16.gmra.mxu1 %vm2006_vm7, %v1976_v35  ;;  %v1775_v57 = vsel %vm1704_vm3, %v5056_v11, %v5397_v14 }
 0x38f   :  { %v1860_v27 = vsel %vm1800_vm4, %v1793_v41, %v1573_v21  ;;  %v5534_v51 = vsel %vm1930_vm6, %v1921_v59, %v1697_v2  ;;  %v1848_v47 = vsel %vm1800_vm4, %v1775_v57, %v5393_v33 }
 0x390   :  { %2559 = vrot.lane.b32.xlu2 %v5526_v6, %s4242_s27  ;;  %v1913_v15 = vsel %vm1865_vm5, %v1848_v47, %v5448_v10 }
 0x391   :  { %v1978_v14 = vsel %vm1930_vm6, %v1913_v15, %v5414_v36 }
 0x393   :  { %v2155_v8 = vpop.f32.mrf.mxu1 }
 0x394   :  { %v1507_v26 = vpop.permute.xlu1 %1506  ;;  %v2456_v38 = vpop.permute.xlu0 %2455 }
 0x395   :  { %v1790_v48 = vsel %vm1704_vm3, %v5117_v60, %v1507_v26  ;;  %v1701_v2 = vpop.permute.xlu2 %1700  ;;  %v2582_v52 = vsel %vm1800_vm4, 0, %v2456_v38 }
 0x396   :  { %v1858_v7 = vsel %vm1800_vm4, %v1790_v48, %v1571_v34  ;;  %v1778_v34 = vsel %vm1704_vm3, %v5091_v28, %v5410_v31 }
 0x397   :  { %v1923_v45 = vsel %vm1865_vm5, %v1858_v7, %v1635_v56  ;;  %v1850_v63 = vsel %vm1800_vm4, %v1778_v34, %v5463_v16 }
 0x398   :  { %2529 = vrot.lane.b32.xlu2 %v5526_v6, %s4243_s29  ;;  %v1915_v50 = vsel %vm1865_vm5, %v1850_v63, %v5436_v49 }
 0x399   :  { %v1980_v43 = vsel %vm1930_vm6, %v1915_v50, %v5431_v32 }
 0x39b   :  { %v2158_v60 = vpop.f32.mrf.mxu1 }
 0x39c   :  { %v2257_v9 = vmax.f32 %v2153_v19, %v2158_v60  ;;  %v1699_v24 = vpop.permute.xlu1 %1698  ;;  %v2552_v54 = vpop.permute.xlu0 %2551 }
 0x39d   :  { %v5552_v11 = vsel %vm1930_vm6, %v1923_v45, %v1699_v24  ;;  %v2520_v33 = vpop.permute.xlu2 %2519 }
 0x39e   :  { %3978 = vmatmul.msk.bf16.gmra.mxu1 %vm2006_vm7, %v1978_v14  ;;  %v2293_v20 = vadd.f32 %v5238_v4, %v2257_v9 }
 0x3a0   :  { %2499 = vrot.lane.b32.xlu2 %v5526_v6, %s4241_s1  ;;  %v2325_v10 = vmax.f32 %v2293_v20, 0.0 }
 0x3a2   :  { %v2357_v58 = vpack.c.bf16 %v2325_v10, %v2325_v10 }
 0x3a3   :  { %v2160_v46 = vpop.f32.mrf.mxu1 }
 0x3a4   :  { %v2258_v56 = vmax.f32 %v2155_v8, %v2160_v46  ;;  %v1637_v55 = vpop.permute.xlu1 %1636  ;;  %v2421_v31 = vunpack.c.l.b16 %v2357_v58  ;;  %v1639_v44 = vpop.permute.xlu0 %1638 }
 0x3a5   :  { %v1925_v5 = vsel %vm1865_vm5, %v1860_v27, %v1637_v55  ;;  %v1575_v25 = vpop.permute.xlu2 %1574 }
 0x3a6   :  { %v2294_v36 = vadd.f32 %v5238_v4, %v2258_v56  ;;  %v5566_v40 = vsel %vm1930_vm6, %v1925_v5, %v1701_v2 }
 0x3a8   :  { %v2326_v18 = vmax.f32 %v2294_v36, 0.0  ;;  %2469 = vrot.lane.b32.xlu2 %v5526_v6, %s4239_s28 }
 0x3aa   :  { %v2358_v19 = vpack.c.bf16 %v2326_v18, %v2326_v18 }
 0x3ab   :  { %v2163_v28 = vpop.f32.mrf.mxu1 }
 0x3ac   :  { %v2422_v13 = vunpack.c.l.b16 %v2358_v19  ;;  %v2488_v62 = vpop.permute.xlu1 %2487  ;;  %v2490_v27 = vpop.permute.xlu0 %2489 }
 0x3ad   :  { %v2628_v16 = vsel %vm1930_vm6, %v2582_v52, %v2488_v62  ;;  %v2458_v59 = vpop.permute.xlu2 %2457 }
 0x3ae   :  { %v5578_v21 = vpack.c.b16 %v2422_v13, %v2421_v31  ;;  %v2661_v49 = vsel %vm2659_vm9, %v2628_v16, %v2520_v33  ;;  %3979 = vmatmul.msk.bf16.gmra.mxu1 %vm2006_vm7, %v1980_v43  ;;  %v2584_v7 = vsel %vm1800_vm4, 0, %v2458_v59 }
 0x3af   :  { %v2694_v29 = vsel %vm2692_vm10, %v2661_v49, %v2552_v54  ;;  %v2630_v15 = vsel %vm1930_vm6, %v2584_v7, %v2490_v27 }
 0x3b0   :  { %2561 = vrot.lane.b32.xlu0 %v5578_v21, %s4242_s27  ;;  %3995 = vmatmul.msk.bf16.vlgmr.msrb.gmra.mxu2 %vm2744_vm11, %v2694_v29 }
 0x3b3   :  { %v2165_v35 = vpop.f32.mrf.mxu1 }
 0x3b4   :  { %v1511_v17 = vpop.permute.xlu1 %1510  ;;  %v1513_v47 = vpop.permute.xlu0 %1512 }
 0x3b5   :  { %v1796_v32 = vsel %vm1704_vm3, %v5243_v12, %v1511_v17  ;;  %v2554_v45 = vpop.permute.xlu2 %2553  ;;  %v1799_v56 = vsel %vm1704_vm3, %v5188_v39, %v1513_v47 }
 0x3b6   :  { %v1862_v1 = vsel %vm1800_vm4, %v1796_v32, %v1575_v25 }
 0x3b7   :  { %v1927_v41 = vsel %vm1865_vm5, %v1862_v1, %v1639_v44 }
 0x3b8   :  { %2531 = vrot.lane.b32.xlu0 %v5578_v21, %s4243_s29 }
 0x3bb   :  { %v2168_v8 = vpop.f32.mrf.mxu1 }
 0x3bc   :  { %v2259_v26 = vmax.f32 %v2163_v28, %v2168_v8  ;;  %v5592_v48 = vpop.permute.xlu1 %1702  ;;  %v2460_v5 = vpop.permute.xlu0 %2459 }
 0x3bd   :  { %v5596_v57 = vsel %vm1930_vm6, %v1927_v41, %v5592_v48  ;;  %v1641_v10 = vpop.permute.xlu2 %1640  ;;  %v2587_v52 = vsel %vm1800_vm4, %v5339_v22, %v2460_v5 }
 0x3be   :  { %3980 = vmatmul.msk.bf16.gmra.mxu1 %vm2006_vm7, %v5496_v42  ;;  %v2295_v12 = vadd.f32 %v5238_v4, %v2259_v26 }
 0x3c0   :  { %2501 = vrot.lane.b32.xlu0 %v5578_v21, %s4241_s1  ;;  %v2327_v38 = vmax.f32 %v2295_v12, 0.0 }
 0x3c2   :  { %v2359_v20 = vpack.c.bf16 %v2327_v38, %v2327_v38 }
 0x3c3   :  { %v2170_v2 = vpop.f32.mrf.mxu1 }
 0x3c4   :  { %v2260_v60 = vmax.f32 %v2165_v35, %v2170_v2  ;;  %v2522_v9 = vpop.permute.xlu1 %2521  ;;  %v2423_v55 = vunpack.c.l.b16 %v2359_v20  ;;  %v2556_v13 = vpop.permute.xlu0 %2555 }
 0x3c5   :  { %v2663_v24 = vsel %vm2659_vm9, %v2630_v15, %v2522_v9  ;;  %v2524_v28 = vpop.permute.xlu2 %2523 }
 0x3c6   :  { %v2296_v14 = vadd.f32 %v5238_v4, %v2260_v60  ;;  %v2696_v42 = vsel %vm2692_vm10, %v2663_v24, %v2554_v45 }
 0x3c7   :  { %3996 = vmatmul.msk.bf16.gmra.mxu2 %vm2744_vm11, %v2696_v42 }
 0x3c8   :  { %v2328_v33 = vmax.f32 %v2296_v14, 0.0  ;;  %2471 = vrot.lane.b32.xlu0 %v5578_v21, %s4239_s28 }
 0x3ca   :  { %v2360_v46 = vpack.c.bf16 %v2328_v33, %v2328_v33 }
 0x3cb   :  { %v2173_v54 = vpop.f32.mrf.mxu1 }
 0x3cc   :  { %v2424_v34 = vunpack.c.l.b16 %v2360_v46  ;;  %v1577_v36 = vpop.permute.xlu1 %1576  ;;  %v2526_v59 = vpop.permute.xlu0 %2525 }
 0x3cd   :  { %v1864_v63 = vsel %vm1800_vm4, %v1799_v56, %v1577_v36  ;;  %v2494_v49 = vpop.permute.xlu2 %2493 }
 0x3ce   :  { %v5614_v58 = vpack.c.b16 %v2424_v34, %v2423_v55  ;;  %v1929_v18 = vsel %vm1865_vm5, %v1864_v63, %v1641_v10  ;;  %3981 = vmatmul.msk.bf16.gmra.mxu1 %vm2006_vm7, %v5510_v23 }
 0x3cf   :  { %v5621_v50 = vsel %vm1930_vm6, %v1929_v18, %v5592_v48 }
 0x3d0   :  { %2563 = vrot.lane.b32.xlu1 %v5614_v58, %s4242_s27 }
 0x3d3   :  { %v2175_v39 = vpop.f32.mrf.mxu1 }
 0x3d4   :  { %v2492_v19 = vpop.permute.xlu1 %2491  ;;  %v2496_v15 = vpop.permute.xlu0 %2495 }
 0x3d5   :  { %v2632_v31 = vsel %vm1930_vm6, %v2587_v52, %v2492_v19  ;;  %v2464_v47 = vpop.permute.xlu2 %2463 }
 0x3d6   :  { %v2665_v62 = vsel %vm2659_vm9, %v2632_v31, %v2524_v28  ;;  %v2593_v38 = vsel %vm1800_vm4, %v5294_v30, %v2464_v47 }
 0x3d7   :  { %v2698_v23 = vsel %vm2692_vm10, %v2665_v62, %v2556_v13  ;;  %v2636_v9 = vsel %vm1930_vm6, %v2593_v38, %v2496_v15 }
 0x3d8   :  { %2533 = vrot.lane.b32.xlu1 %v5614_v58, %s4243_s29  ;;  %3997 = vmatmul.msk.bf16.gmra.mxu2 %vm2744_vm11, %v2698_v23 }
 0x3db   :  { %v2178_v25 = vpop.f32.mrf.mxu1 }
 0x3dc   :  { %v2261_v16 = vmax.f32 %v2173_v54, %v2178_v25  ;;  %v2462_v43 = vpop.permute.xlu1 %2461  ;;  %v2466_v52 = vpop.permute.xlu0 %2465 }
 0x3dd   :  { %v2590_v44 = vsel %vm1800_vm4, %v5337_v37, %v2462_v43  ;;  %v2596_v13 = vsel %vm1800_vm4, %v5419_v61, %v2466_v52 }
 0x3de   :  { %3982 = vmatmul.msk.bf16.gmra.mxu1 %vm2006_vm7, %v5534_v51  ;;  %v2297_v22 = vadd.f32 %v5238_v4, %v2261_v16  ;;  %v2634_v29 = vsel %vm1930_vm6, %v2590_v44, %v2494_v49 }
 0x3df   :  { %v2667_v51 = vsel %vm2659_vm9, %v2634_v29, %v2526_v59 }
 0x3e0   :  { %2503 = vrot.lane.b32.xlu1 %v5614_v58, %s4241_s1  ;;  %v2329_v17 = vmax.f32 %v2297_v22, 0.0 }
 0x3e2   :  { %v2361_v8 = vpack.c.bf16 %v2329_v17, %v2329_v17 }
 0x3e3   :  { %v2180_v35 = vpop.f32.mrf.mxu1 }
 0x3e4   :  { %v2262_v32 = vmax.f32 %v2175_v39, %v2180_v35  ;;  %v2558_v1 = vpop.permute.xlu1 %2557  ;;  %v2425_v7 = vunpack.c.l.b16 %v2361_v8 }
 0x3e5   :  { %v2700_v27 = vsel %vm2692_vm10, %v2667_v51, %v2558_v1 }
 0x3e6   :  { %v2298_v41 = vadd.f32 %v5238_v4, %v2262_v32 }
 0x3e8   :  { %v2330_v26 = vmax.f32 %v2298_v41, 0.0  ;;  %2473 = vrot.lane.b32.xlu1 %v5614_v58, %s4239_s28  ;;  %3998 = vmatmul.msk.bf16.gmra.mxu2 %vm2744_vm11, %v2700_v27 }
 0x3ea   :  { %v2362_v37 = vpack.c.bf16 %v2330_v26, %v2330_v26  ;;  %v2560_v42 = vpop.permute.xlu2 %2559 }
 0x3eb   :  { %v2183_v12 = vpop.f32.mrf.mxu1 }
 0x3ec   :  { %v2426_v45 = vunpack.c.l.b16 %v2362_v37  ;;  %v2528_v60 = vpop.permute.xlu1 %2527 }
 0x3ed   :  { %v2669_v14 = vsel %vm2659_vm9, %v2636_v9, %v2528_v60 }
 0x3ee   :  { %v5647_v2 = vpack.c.b16 %v2426_v45, %v2425_v7  ;;  %3983 = vmatmul.msk.bf16.gmra.mxu1 %vm2006_vm7, %v5552_v11  ;;  %v2702_v20 = vsel %vm2692_vm10, %v2669_v14, %v2560_v42 }
 0x3f0   :  { %2565 = vrot.lane.b32.xlu2 %v5647_v2, %s4242_s27 }
 0x3f2   :  { %v2530_v23 = vpop.permute.xlu2 %2529 }
 0x3f3   :  { %v2185_v24 = vpop.f32.mrf.mxu1 }
 0x3f4   :  { %v2498_v28 = vpop.permute.xlu1 %2497 }
 0x3f5   :  { %v2638_v62 = vsel %vm1930_vm6, %v2596_v13, %v2498_v28 }
 0x3f6   :  { %v2671_v16 = vsel %vm2659_vm9, %v2638_v62, %v2530_v23 }
 0x3f8   :  { %3999 = vmatmul.msk.bf16.gmra.mxu2 %vm2744_vm11, %v2702_v20  ;;  %2535 = vrot.lane.b32.xlu2 %v5647_v2, %s4243_s29 }
 0x3fa   :  { %v2500_v26 = vpop.permute.xlu2 %2499 }
 0x3fb   :  { %v2188_v11 = vpop.f32.mrf.mxu1 }
 0x3fc   :  { %v2263_v33 = vmax.f32 %v2183_v12, %v2188_v11  ;;  %v2468_v51 = vpop.permute.xlu1 %2467 }
 0x3fd   :  { %v2599_v37 = vsel %vm1800_vm4, %v5402_v53, %v2468_v51 }
 0x3fe   :  { %3984 = vmatmul.msk.bf16.gmra.mxu1 %vm2006_vm7, %v5566_v40  ;;  %v2299_v30 = vadd.f32 %v5238_v4, %v2263_v33  ;;  %v2640_v45 = vsel %vm1930_vm6, %v2599_v37, %v2500_v26  ;;  %v4235_v26 = vld [vmem:[%s6107_s7] ss:$0 sm:$0xff] }
 0x400   :  { %2505 = vrot.lane.b32.xlu2 %v5647_v2, %s4241_s1  ;;  %v2331_v10 = vmax.f32 %v2299_v30, 0.0 }
 0x402   :  { %v2363_v55 = vpack.c.bf16 %v2331_v10, %v2331_v10  ;;  %v2470_v42 = vpop.permute.xlu2 %2469 }
 0x403   :  { %v2190_v46 = vpop.f32.mrf.mxu1 }
 0x404   :  { %v2264_v54 = vmax.f32 %v2185_v24, %v2190_v46  ;;  %v2427_v63 = vunpack.c.l.b16 %v2363_v55  ;;  %v2602_v55 = vsel %vm1800_vm4, %v5471_v0, %v2470_v42 }
 0x406   :  { %v2300_v56 = vadd.f32 %v5238_v4, %v2264_v54 }
 0x408   :  { %v2332_v5 = vmax.f32 %v2300_v56, 0.0  ;;  %2475 = vrot.lane.b32.xlu2 %v5647_v2, %s4239_s28 }
 0x40a   :  { %v2364_v34 = vpack.c.bf16 %v2332_v5, %v2332_v5 }
 0x40b   :  { %v2193_v36 = vpop.f32.mrf.mxu1 }
 0x40c   :  { %v2428_v18 = vunpack.c.l.b16 %v2364_v34 }
 0x40e   :  { %v5669_v40 = vpack.c.b16 %v2428_v18, %v2427_v63  ;;  %3985 = vmatmul.msk.bf16.gmra.mxu1 %vm2006_vm7, %v5596_v57 }
 0x410   :  { %2567 = vrot.lane.b32.xlu0 %v5669_v40, %s4242_s27 }
 0x413   :  { %v2195_v39 = vpop.f32.mrf.mxu1 }
 0x418   :  { %2537 = vrot.lane.b32.xlu0 %v5669_v40, %s4243_s29 }
 0x41b   :  { %v2198_v19 = vpop.f32.mrf.mxu1 }
 0x41c   :  { %v2265_v31 = vmax.f32 %v2193_v36, %v2198_v19 }
 0x41e   :  { %3986 = vmatmul.msk.bf16.gmra.mxu1 %vm2006_vm7, %v5621_v50  ;;  %v2301_v57 = vadd.f32 %v5238_v4, %v2265_v31 }
 0x420   :  { %2507 = vrot.lane.b32.xlu0 %v5669_v40, %s4241_s1  ;;  %v2333_v44 = vmax.f32 %v2301_v57, 0.0 }
 0x422   :  { %v2562_v25 = vpop.permute.xlu0 %2561  ;;  %v2365_v50 = vpack.c.bf16 %v2333_v44, %v2333_v44 }
 0x423   :  { %v2704_v43 = vsel %vm2692_vm10, %v2671_v16, %v2562_v25  ;;  %v2200_v22 = vpop.f32.mrf.mxu1 }
 0x424   :  { %v2266_v49 = vmax.f32 %v2195_v39, %v2200_v22  ;;  %4000 = vmatmul.msk.bf16.gmra.mxu2 %vm2744_vm11, %v2704_v43  ;;  %v2429_v32 = vunpack.c.l.b16 %v2365_v50 }
 0x426   :  { %v2302_v61 = vadd.f32 %v5238_v4, %v2266_v49 }
 0x428   :  { %v2334_v29 = vmax.f32 %v2302_v61, 0.0  ;;  %2477 = vrot.lane.b32.xlu0 %v5669_v40, %s4239_s28 }
 0x42a   :  { %v2366_v35 = vpack.c.bf16 %v2334_v29, %v2334_v29  ;;  %v2532_v12 = vpop.permute.xlu0 %2531 }
 0x42b   :  { %v2203_v17 = vpop.f32.mrf.mxu1  ;;  %v2673_v47 = vsel %vm2659_vm9, %v2640_v45, %v2532_v12 }
 0x42c   :  { %v2430_v1 = vunpack.c.l.b16 %v2366_v35 }
 0x42e   :  { %v5691_v59 = vpack.c.b16 %v2430_v1, %v2429_v32 }
 0x430   :  { %2569 = vrot.lane.b32.xlu1 %v5691_v59, %s4242_s27 }
 0x432   :  { %v2502_v46 = vpop.permute.xlu0 %2501 }
 0x433   :  { %v2205_v41 = vpop.f32.mrf.mxu1  ;;  %v5707_v14 = vpop.f32.mrf.mxu2  ;;  %v2642_v34 = vsel %vm1930_vm6, %v2602_v55, %v2502_v46 }
 0x438   :  { %2539 = vrot.lane.b32.xlu1 %v5691_v59, %s4243_s29 }
 0x43b   :  { %v2208_v27 = vpop.f32.mrf.mxu1  ;;  %v5719_v18 = vpop.f32.mrf.mxu2 }
 0x43c   :  { %v2267_v8 = vmax.f32 %v2203_v17, %v2208_v27 }
 0x43e   :  { %v2303_v7 = vadd.f32 %v5238_v4, %v2267_v8 }
 0x440   :  { %2509 = vrot.lane.b32.xlu1 %v5691_v59, %s4241_s1  ;;  %v2335_v9 = vmax.f32 %v2303_v7, 0.0 }
 0x442   :  { %v2564_v15 = vpop.permute.xlu1 %2563  ;;  %v2367_v20 = vpack.c.bf16 %v2335_v9, %v2335_v9 }
 0x443   :  { %v2706_v38 = vsel %vm2692_vm10, %v2673_v47, %v2564_v15  ;;  %v2210_v60 = vpop.f32.mrf.mxu1 }
 0x444   :  { %v2268_v24 = vmax.f32 %v2205_v41, %v2210_v60  ;;  %4001 = vmatmul.msk.bf16.gmra.mxu2 %vm2744_vm11, %v2706_v38  ;;  %v2431_v10 = vunpack.c.l.b16 %v2367_v20 }
 0x446   :  { %v2304_v53 = vadd.f32 %v5238_v4, %v2268_v24 }
 0x448   :  { %v2336_v11 = vmax.f32 %v2304_v53, 0.0  ;;  %2479 = vrot.lane.b32.xlu1 %v5691_v59, %s4239_s28 }
 0x44a   :  { %v2368_v33 = vpack.c.bf16 %v2336_v11, %v2336_v11  ;;  %v2534_v56 = vpop.permute.xlu1 %2533  ;;  %v2566_v63 = vpop.permute.xlu2 %2565 }
 0x44b   :  { %v2213_v30 = vpop.f32.mrf.mxu1  ;;  %v2675_v36 = vsel %vm2659_vm9, %v2642_v34, %v2534_v56  ;;  %v5725_v0 = vpop.f32.mrf.mxu2 }
 0x44c   :  { %v2432_v54 = vunpack.c.l.b16 %v2368_v33  ;;  %v2708_v39 = vsel %vm2692_vm10, %v2675_v36, %v2566_v63  ;;  %v2870_v34 = vmax.f32 %v5707_v14, %v5725_v0  ;;  %v5772_v36 = vld [vmem:[%s6109_s8] ss:$0 sm:$0xff]  ;;  %s4244_s8 = smov 64  }
 0x44e   :  { %v5713_v5 = vpack.c.b16 %v2432_v54, %v2431_v10 }
 0x450   :  { %2571 = vrot.lane.b32.xlu2 %v5713_v5, %s4242_s27 }
 0x452   :  { %v2504_v1 = vpop.permute.xlu1 %2503  ;;  %v2536_v8 = vpop.permute.xlu2 %2535 }
 0x453   :  { %v2215_v52 = vpop.f32.mrf.mxu1  ;;  %v2797_v13 = vpop.f32.mrf.mxu2 }
 0x454   :  { %4002 = vmatmul.msk.bf16.gmra.mxu2 %vm2744_vm11, %v2708_v39  ;;  %v2871_v54 = vmax.f32 %v5719_v18, %v2797_v13  ;;  %v2890_v18 = vadd.f32 %v5772_v36, %v2870_v34 }
 0x456   :  { %v2891_v39 = vadd.f32 %v5772_v36, %v2871_v54 }
 0x458   :  { %2541 = vrot.lane.b32.xlu2 %v5713_v5, %s4243_s29  ;;  %v2907_v0 = vmax.f32 %v2891_v39, 0.0 }
 0x45a   :  { %v2474_v56 = vpop.permute.xlu1 %2473 }
 0x45b   :  { %v2218_v19 = vpop.f32.mrf.mxu1  ;;  %v5733_v50 = vpop.f32.mrf.mxu2 }
 0x45c   :  { %v2269_v28 = vmax.f32 %v2213_v30, %v2218_v19  ;;  %v2506_v19 = vpop.permute.xlu2 %2505 }
 0x45e   :  { %v2305_v31 = vadd.f32 %v5238_v4, %v2269_v28 }
 0x460   :  { %2511 = vrot.lane.b32.xlu2 %v5713_v5, %s4241_s1  ;;  %v2337_v57 = vmax.f32 %v2305_v31, 0.0 }
 0x462   :  { %v2369_v16 = vpack.c.bf16 %v2337_v57, %v2337_v57 }
 0x463   :  { %v2220_v62 = vpop.f32.mrf.mxu1  ;;  %v5739_v17 = vpop.f32.mrf.mxu2 }
 0x464   :  { %v2270_v23 = vmax.f32 %v2215_v52, %v2220_v62  ;;  %v2433_v49 = vunpack.c.l.b16 %v2369_v16  ;;  %v2608_v52 = vsel %vm1800_vm4, %v5578_v21, %v2474_v56  ;;  %v2906_v16 = vmax.f32 %v2890_v18, 0.0  ;;  %v4193_v18 = vld [vmem:[%s6110_s4 + $0x20] sm:$0xff] }
 0x465   :  { %v2646_v14 = vsel %vm1930_vm6, %v2608_v52, %v2506_v19  ;;  %3168 = vmatpush.bf16.msrb.mxu3 %v4193_v18 }
 0x466   :  { %v2306_v25 = vadd.f32 %v5238_v4, %v2270_v23  ;;  %v2472_v4 = vpop.permute.xlu0 %2471 }
 0x467   :  { %v2605_v51 = vsel %vm1800_vm4, %v5526_v6, %v2472_v4 }
 0x468   :  { %v2338_v43 = vmax.f32 %v2306_v25, 0.0  ;;  %2481 = vrot.lane.b32.xlu2 %v5713_v5, %s4239_s28  ;;  %v2644_v27 = vsel %vm1930_vm6, %v2605_v51, %v2504_v1 }
 0x469   :  { %v2677_v7 = vsel %vm2659_vm9, %v2644_v27, %v2536_v8 }
 0x46a   :  { %v2370_v22 = vpack.c.bf16 %v2338_v43, %v2338_v43 }
 0x46b   :  { %v2223_v44 = vpop.f32.mrf.mxu1  ;;  %v5751_v12 = vpop.f32.mrf.mxu2 }
 0x46c   :  { %v2434_v61 = vunpack.c.l.b16 %v2370_v22  ;;  %v2923_v22 = vpack.c.bf16 %v2907_v0, %v2907_v0 }
 0x46e   :  { %v5735_v29 = vpack.c.b16 %v2434_v61, %v2433_v49  ;;  %v2922_v61 = vpack.c.bf16 %v2906_v16, %v2906_v16 }
 0x470   :  { %2573 = vrot.lane.b32.xlu0 %v5735_v29, %s4242_s27  ;;  %v2954_v27 = vunpack.c.l.b16 %v2922_v61 }
 0x473   :  { %v2225_v35 = vpop.f32.mrf.mxu1  ;;  %v5758_v42 = vpop.f32.mrf.mxu2 }
 0x478   :  { %2543 = vrot.lane.b32.xlu0 %v5735_v29, %s4243_s29 }
 0x47b   :  { %v2228_v32 = vpop.f32.mrf.mxu1  ;;  %v2810_v10 = vpop.f32.mrf.mxu2 }
 0x47c   :  { %v2271_v41 = vmax.f32 %v2223_v44, %v2228_v32 }
 0x47e   :  { %v2307_v37 = vadd.f32 %v4235_v26, %v2271_v41  ;;  %v2955_v41 = vunpack.c.l.b16 %v2923_v22 }
 0x480   :  { %2513 = vrot.lane.b32.xlu0 %v5735_v29, %s4241_s1  ;;  %v2339_v6 = vmax.f32 %v2307_v37, 0.0 }
 0x482   :  { %v2568_v45 = vpop.permute.xlu0 %2567  ;;  %v2371_v9 = vpack.c.bf16 %v2339_v6, %v2339_v6 }
 0x483   :  { %v2710_v47 = vsel %vm2692_vm10, %v2677_v7, %v2568_v45  ;;  %v2230_v15 = vpop.f32.mrf.mxu1  ;;  %v2812_v28 = vpop.f32.mrf.mxu2 }
 0x484   :  { %v2272_v38 = vmax.f32 %v2225_v35, %v2230_v15  ;;  %4003 = vmatmul.msk.bf16.gmra.mxu2 %vm2744_vm11, %v2710_v47  ;;  %v2435_v11 = vunpack.c.l.b16 %v2371_v9  ;;  %v2476_v35 = vpop.permute.xlu2 %2475  ;;  %v5785_v15 = vpack.c.b16 %v2955_v41, %v2954_v27 }
 0x486   :  { %v2308_v60 = vadd.f32 %v4235_v26, %v2272_v38 }
 0x488   :  { %v2340_v24 = vmax.f32 %v2308_v60, 0.0  ;;  %2483 = vrot.lane.b32.xlu0 %v5735_v29, %s4239_s28 }
 0x48a   :  { %v2372_v53 = vpack.c.bf16 %v2340_v24, %v2340_v24  ;;  %v2538_v31 = vpop.permute.xlu0 %2537 }
 0x48b   :  { %v2233_v20 = vpop.f32.mrf.mxu1  ;;  %v2679_v62 = vsel %vm2659_vm9, %v2646_v14, %v2538_v31 }
 0x48c   :  { %v2436_v33 = vunpack.c.l.b16 %v2372_v53 }
 0x48e   :  { %v2453_v30 = vpack.c.b16 %v2436_v33, %v2435_v11  ;;  %v2873_v11 = vmax.f32 %v5739_v17, %v5758_v42 }
 0x490   :  { %2575 = vrot.lane.b32.xlu1 %v2453_v30, %s4242_s27  ;;  %2579 = vrot.lane.b32.xlu0 %v6122_v3, %s4242_s27  ;;  %v2893_v54 = vadd.f32 %v5772_v36, %v2873_v11  ;;  %v4189_v11 = vld [vmem:[%s6110_s4] sm:$0xff] }
 0x492   :  { %v2508_v8 = vpop.permute.xlu0 %2507  ;;  %v2909_v17 = vmax.f32 %v2893_v54, 0.0 }
 0x493   :  { %v2235_v46 = vpop.f32.mrf.mxu1 }
 0x498   :  { %2545 = vrot.lane.b32.xlu1 %v2453_v30, %s4243_s29  ;;  %2549 = vrot.lane.b32.xlu0 %v6122_v3, %s4243_s29 }
 0x49b   :  { %v2238_v55 = vpop.f32.mrf.mxu1 }
 0x49c   :  { %v2273_v63 = vmax.f32 %v2233_v20, %v2238_v55 }
 0x49e   :  { %v2309_v13 = vadd.f32 %v4235_v26, %v2273_v63 }
 0x4a0   :  { %2515 = vrot.lane.b32.xlu1 %v2453_v30, %s4241_s1  ;;  %v2341_v43 = vmax.f32 %v2309_v13, 0.0 }
 0x4a2   :  { %v2570_v57 = vpop.permute.xlu1 %2569  ;;  %v2373_v4 = vpack.c.bf16 %v2341_v43, %v2341_v43 }
 0x4a3   :  { %v2712_v23 = vsel %vm2692_vm10, %v2679_v62, %v2570_v57  ;;  %v2240_v25 = vpop.f32.mrf.mxu1  ;;  %v2478_v62 = vpop.permute.xlu0 %2477 }
 0x4a4   :  { %v2274_v21 = vmax.f32 %v2235_v46, %v2240_v25  ;;  %4004 = vmatmul.msk.bf16.gmra.mxu2 %vm2744_vm11, %v2712_v23  ;;  %v2437_v37 = vunpack.c.l.b16 %v2373_v4  ;;  %v2614_v25 = vsel %vm1800_vm4, %v5647_v2, %v2478_v62 }
 0x4a6   :  { %v2310_v44 = vadd.f32 %v4235_v26, %v2274_v21  ;;  %v2611_v26 = vsel %vm1800_vm4, %v5614_v58, %v2476_v35 }
 0x4a7   :  { %v2815_v49 = vpop.f32.mrf.mxu2  ;;  %v2648_v38 = vsel %vm1930_vm6, %v2611_v26, %v2508_v8 }
 0x4a8   :  { %v2342_v32 = vmax.f32 %v2310_v44, 0.0  ;;  %v2874_v1 = vmax.f32 %v2810_v10, %v2815_v49  ;;  %2485 = vrot.lane.b32.xlu1 %v2453_v30, %s4239_s28  ;;  %v2872_v30 = vmax.f32 %v5733_v50, %v5751_v12  ;;  %v2925_v12 = vpack.c.bf16 %v2909_v17, %v2909_v17  ;;  %s4245_s28 = smov 48  }
 0x4aa   :  { %v2374_v51 = vpack.c.bf16 %v2342_v32, %v2342_v32  ;;  %v2894_v45 = vadd.f32 %v5772_v36, %v2874_v1  ;;  %v2540_v47 = vpop.permute.xlu1 %2539  ;;  %v2572_v53 = vpop.permute.xlu2 %2571  ;;  %v2892_v55 = vadd.f32 %v5772_v36, %v2872_v30  ;;  %v2957_v52 = vunpack.c.l.b16 %v2925_v12 }
 0x4ab   :  { %v2681_v24 = vsel %vm2659_vm9, %v2648_v38, %v2540_v47 }
 0x4ac   :  { %v2438_v7 = vunpack.c.l.b16 %v2374_v51  ;;  %v2910_v9 = vmax.f32 %v2894_v45, 0.0  ;;  %v2714_v58 = vsel %vm2692_vm10, %v2681_v24, %v2572_v53  ;;  %v2908_v50 = vmax.f32 %v2892_v55, 0.0 }
 0x4ae   :  { %v2454_v6 = vpack.c.b16 %v2438_v7, %v2437_v37  ;;  %v2926_v46 = vpack.c.bf16 %v2910_v9, %v2910_v9  ;;  %v2924_v39 = vpack.c.bf16 %v2908_v50, %v2908_v50  ;;  %v4192_v7 = vld [vmem:[%s6110_s4 + $0x18] sm:$0xff]  ;;  %v4191_v9 = vld [vmem:[%s6110_s4 + $0x10] sm:$0xff] }
 0x4af   :  { %v2817_v60 = vpop.f32.mrf.mxu2  ;;  %3169 = vmatpush.bf16.msrb.mxu3 %v4192_v7 }
 0x4b0   :  { %v2875_v20 = vmax.f32 %v2812_v28, %v2817_v60  ;;  %2992 = vrot.lane.b32.xlu1 %v5785_v15, %s4242_s27  ;;  %2577 = vrot.lane.b32.xlu2 %v2454_v6, %s4242_s27  ;;  %v2958_v34 = vunpack.c.l.b16 %v2926_v46  ;;  %v2956_v19 = vunpack.c.l.b16 %v2924_v39 }
 0x4b2   :  { %v2895_v33 = vadd.f32 %v5772_v36, %v2875_v20  ;;  %v5813_v28 = vpack.c.b16 %v2957_v52, %v2956_v19  ;;  %v2510_v57 = vpop.permute.xlu1 %2509  ;;  %v2542_v43 = vpop.permute.xlu2 %2541 }
 0x4b3   :  { %v2650_v16 = vsel %vm1930_vm6, %v2614_v25, %v2510_v57  ;;  %3170 = vmatpush.bf16.msrb.mxu3 %v4191_v9 }
 0x4b4   :  { %v2911_v10 = vmax.f32 %v2895_v33, 0.0  ;;  %4005 = vmatmul.msk.bf16.gmra.mxu2 %vm2744_vm11, %v2714_v58  ;;  %v2683_v49 = vsel %vm2659_vm9, %v2650_v16, %v2542_v43 }
 0x4b6   :  { %v2927_v56 = vpack.c.bf16 %v2911_v10, %v2911_v10 }
 0x4b8   :  { %v2959_v63 = vunpack.c.l.b16 %v2927_v56  ;;  %2978 = vrot.lane.b32.xlu1 %v5785_v15, %s4241_s1  ;;  %2547 = vrot.lane.b32.xlu2 %v2454_v6, %s4243_s29 }
 0x4ba   :  { %v5806_v42 = vpack.c.b16 %v2959_v63, %v2958_v34  ;;  %v2480_v8 = vpop.permute.xlu1 %2479  ;;  %v2512_v37 = vpop.permute.xlu2 %2511 }
 0x4bb   :  { %v2617_v45 = vsel %vm1800_vm4, %v5669_v40, %v2480_v8  ;;  %v4190_v40 = vld [vmem:[%s6110_s4 + $0x8] sm:$0xff] }
 0x4bc   :  { %3024 = vrot.lane.b32.xlu0 %v5806_v42, %s4244_s8  ;;  %v2652_v26 = vsel %vm1930_vm6, %v2617_v45, %v2512_v37  ;;  %3171 = vmatpush.bf16.msrb.mxu3 %v4190_v40 }
 0x4c0   :  { %2517 = vrot.lane.b32.xlu2 %v2454_v6, %s4241_s1  ;;  %3172 = vmatpush.bf16.msrb.mxu3 %v4189_v11 }
 0x4c2   :  { %v2482_v24 = vpop.permute.xlu2 %2481 }
 0x4c3   :  { %v2620_v58 = vsel %vm1800_vm4, %v5691_v59, %v2482_v24 }
 0x4c4   :  { %3010 = vrot.lane.b32.xlu0 %v5806_v42, %s4245_s28 }
 0x4c7   :  { %v2820_v31 = vpop.f32.mrf.mxu2 }
 0x4c8   :  { %3008 = vrot.lane.b32.xlu2 %v5813_v28, %s4245_s28 }
 0x4cc   :  { %2996 = vrot.lane.b32.xlu0 %v5806_v42, %s4242_s27 }
 0x4cf   :  { %v2822_v13 = vpop.f32.mrf.mxu2 }
 0x4d0   :  { %2994 = vrot.lane.b32.xlu2 %v5813_v28, %s4242_s27 }
 0x4d4   :  { %2982 = vrot.lane.b32.xlu0 %v5806_v42, %s4241_s1 }
 0x4d7   :  { %v2825_v14 = vpop.f32.mrf.mxu2 }
 0x4d8   :  { %v2876_v0 = vmax.f32 %v2820_v31, %v2825_v14  ;;  %2980 = vrot.lane.b32.xlu2 %v5813_v28, %s4241_s1 }
 0x4da   :  { %v2896_v23 = vadd.f32 %v5772_v36, %v2876_v0 }
 0x4dc   :  { %v2912_v22 = vmax.f32 %v2896_v23, 0.0 }
 0x4de   :  { %v2928_v32 = vpack.c.bf16 %v2912_v22, %v2912_v22 }
 0x4df   :  { %v2827_v21 = vpop.f32.mrf.mxu2 }
 0x4e0   :  { %v2877_v44 = vmax.f32 %v2822_v13, %v2827_v21  ;;  %v2960_v51 = vunpack.c.l.b16 %v2928_v32 }
 0x4e2   :  { %v2897_v61 = vadd.f32 %v5772_v36, %v2877_v44  ;;  %v2574_v35 = vpop.permute.xlu0 %2573 }
 0x4e3   :  { %v2716_v4 = vsel %vm2692_vm10, %v2683_v49, %v2574_v35 }
 0x4e4   :  { %v2913_v1 = vmax.f32 %v2897_v61, 0.0  ;;  %4006 = vmatmul.msk.bf16.gmra.mxu2 %vm2744_vm11, %v2716_v4 }
 0x4e6   :  { %v2929_v41 = vpack.c.bf16 %v2913_v1, %v2913_v1 }
 0x4e8   :  { %v2961_v2 = vunpack.c.l.b16 %v2929_v41 }
 0x4ea   :  { %v5836_v27 = vpack.c.b16 %v2961_v2, %v2960_v51  ;;  %v2544_v47 = vpop.permute.xlu0 %2543 }
 0x4eb   :  { %v2685_v6 = vsel %vm2659_vm9, %v2652_v26, %v2544_v47 }
 0x4ec   :  { %3026 = vrot.lane.b32.xlu1 %v5836_v27, %s4244_s8 }
 0x4f2   :  { %v2514_v53 = vpop.permute.xlu0 %2513 }
 0x4f3   :  { %v2654_v30 = vsel %vm1930_vm6, %v2620_v58, %v2514_v53 }
 0x4f4   :  { %3012 = vrot.lane.b32.xlu1 %v5836_v27, %s4245_s28 }
 0x4fa   :  { %v2484_v54 = vpop.permute.xlu0 %2483 }
 0x4fb   :  { %v2623_v63 = vsel %vm1800_vm4, %v5713_v5, %v2484_v54  ;;  %v3038_v5 = vsel %vm1930_vm6, 0, %v5592_v48 }
 0x4fc   :  { %2998 = vrot.lane.b32.xlu1 %v5836_v27, %s4242_s27 }
 0x502   :  { %v2576_v38 = vpop.permute.xlu1 %2575  ;;  %v5872_v17 = vpop.permute.xlu0 %2579 }
 0x503   :  { %v2718_v60 = vsel %vm2692_vm10, %v2685_v6, %v2576_v38 }
 0x504   :  { %2984 = vrot.lane.b32.xlu1 %v5836_v27, %s4241_s1  ;;  %4007 = vmatmul.msk.bf16.gmra.mxu2 %vm2744_vm11, %v2718_v60 }
 0x507   :  { %v2830_v55 = vpop.f32.mrf.mxu2 }
 0x50a   :  { %v2546_v20 = vpop.permute.xlu1 %2545  ;;  %v2578_v33 = vpop.permute.xlu2 %2577 }
 0x50b   :  { %v2687_v46 = vsel %vm2659_vm9, %v2654_v30, %v2546_v20  ;;  %v2550_v31 = vpop.permute.xlu0 %2549 }
 0x50c   :  { %v2720_v10 = vsel %vm2692_vm10, %v2687_v46, %v2578_v33 }
 0x50f   :  { %v2832_v12 = vpop.f32.mrf.mxu2 }
 0x512   :  { %v2516_v56 = vpop.permute.xlu1 %2515  ;;  %v2548_v34 = vpop.permute.xlu2 %2547 }
 0x513   :  { %v2656_v59 = vsel %vm1930_vm6, %v2623_v63, %v2516_v56 }
 0x514   :  { %4008 = vmatmul.msk.bf16.gmra.mxu2 %vm2744_vm11, %v2720_v10  ;;  %v2689_v39 = vsel %vm2659_vm9, %v2656_v59, %v2548_v34 }
 0x515   :  { %v2722_v19 = vsel %vm2692_vm10, %v2689_v39, %v5872_v17 }
 0x51a   :  { %v2486_v50 = vpop.permute.xlu1 %2485  ;;  %v2518_v52 = vpop.permute.xlu2 %2517 }
 0x51b   :  { %v2626_v0 = vsel %vm1800_vm4, %v5735_v29, %v2486_v50 }
 0x51c   :  { %v2658_v25 = vsel %vm1930_vm6, %v2626_v0, %v2518_v52 }
 0x51d   :  { %v2691_v48 = vsel %vm2659_vm9, %v2658_v25, %v2550_v31 }
 0x51e   :  { %v2723_v61 = vsel %vm2692_vm10, %v2691_v48, %v5872_v17 }
 0x522   :  { %v2993_v13 = vpop.permute.xlu1 %2992  ;;  %v3009_v57 = vpop.permute.xlu2 %3008 }
 0x523   :  { %v3060_v62 = vsel %vm2692_vm10, %v3038_v5, %v2993_v13 }
 0x524   :  { %4009 = vmatmul.msk.bf16.gmra.mxu2 %vm2744_vm11, %v2722_v19  ;;  %v3077_v16 = vsel %vm3075_vm12, %v3060_v62, %v3009_v57 }
 0x527   :  { %v2835_v18 = vpop.f32.mrf.mxu2 }
 0x528   :  { %v2878_v14 = vmax.f32 %v2830_v55, %v2835_v18 }
 0x52a   :  { %v2898_v23 = vadd.f32 %v5772_v36, %v2878_v14  ;;  %v2979_v8 = vpop.permute.xlu1 %2978  ;;  %v2995_v7 = vpop.permute.xlu2 %2994 }
 0x52b   :  { %v3040_v37 = vsel %vm1930_vm6, 0, %v2979_v8 }
 0x52c   :  { %v2914_v44 = vmax.f32 %v2898_v23, 0.0  ;;  %v3062_v47 = vsel %vm2692_vm10, %v3040_v37, %v2995_v7 }
 0x52e   :  { %v3025_v43 = vpop.permute.xlu0 %3024  ;;  %v2930_v35 = vpack.c.bf16 %v2914_v44, %v2914_v44 }
 0x52f   :  { %v3094_v21 = vsel %vm3092_vm13, %v3077_v16, %v3025_v43  ;;  %v2837_v22 = vpop.f32.mrf.mxu2 }
 0x530   :  { %v2879_v29 = vmax.f32 %v2832_v12, %v2837_v22  ;;  %4031 = vmatmul.msk.bf16.vlgmr.msrb.gmra.mxu3 %vm3148_vm14, %v3094_v21  ;;  %v2962_v1 = vunpack.c.l.b16 %v2930_v35 }
 0x532   :  { %v2899_v49 = vadd.f32 %v5772_v36, %v2879_v29  ;;  %v2981_v34 = vpop.permute.xlu2 %2980 }
 0x533   :  { %v3043_v12 = vsel %vm1930_vm6, %v5785_v15, %v2981_v34 }
 0x534   :  { %v2915_v4 = vmax.f32 %v2899_v49, 0.0  ;;  %4010 = vmatmul.msk.bf16.gmra.mxu2 %vm2744_vm11, %v2723_v61 }
 0x536   :  { %v2931_v32 = vpack.c.bf16 %v2915_v4, %v2915_v4  ;;  %v3011_v45 = vpop.permute.xlu0 %3010 }
 0x537   :  { %v2840_v2 = vpop.f32.mrf.mxu2  ;;  %v3079_v26 = vsel %vm3075_vm12, %v3062_v47, %v3011_v45 }
 0x538   :  { %v2963_v41 = vunpack.c.l.b16 %v2931_v32 }
 0x53a   :  { %v5894_v51 = vpack.c.b16 %v2963_v41, %v2962_v1 }
 0x53c   :  { %3028 = vrot.lane.b32.xlu2 %v5894_v51, %s4244_s8 }
 0x53e   :  { %v2997_v59 = vpop.permute.xlu0 %2996 }
 0x53f   :  { %v2842_v38 = vpop.f32.mrf.mxu2  ;;  %v3064_v39 = vsel %vm2692_vm10, %v3043_v12, %v2997_v59 }
 0x544   :  { %3014 = vrot.lane.b32.xlu2 %v5894_v51, %s4245_s28 }
 0x54c   :  { %3000 = vrot.lane.b32.xlu2 %v5894_v51, %s4242_s27 }
 0x554   :  { %2986 = vrot.lane.b32.xlu2 %v5894_v51, %s4241_s1 }
 0x55e   :  { %v3027_v6 = vpop.permute.xlu1 %3026 }
 0x55f   :  { %v3096_v60 = vsel %vm3092_vm13, %v3079_v26, %v3027_v6 }
 0x560   :  { %4032 = vmatmul.msk.bf16.gmra.mxu3 %vm3148_vm14, %v3096_v60 }
 0x566   :  { %v3013_v50 = vpop.permute.xlu1 %3012 }
 0x567   :  { %v2845_v9 = vpop.f32.mrf.mxu2  ;;  %v3081_v52 = vsel %vm3075_vm12, %v3064_v39, %v3013_v50 }
 0x568   :  { %v2880_v24 = vmax.f32 %v2840_v2, %v2845_v9 }
 0x56a   :  { %v2900_v40 = vadd.f32 %v5772_v36, %v2880_v24 }
 0x56c   :  { %v2916_v20 = vmax.f32 %v2900_v40, 0.0 }
 0x56e   :  { %v2932_v58 = vpack.c.bf16 %v2916_v20, %v2916_v20  ;;  %v2999_v9 = vpop.permute.xlu1 %2998 }
 0x56f   :  { %v2847_v53 = vpop.f32.mrf.mxu2 }
 0x570   :  { %v2881_v11 = vmax.f32 %v2842_v38, %v2847_v53  ;;  %v2964_v10 = vunpack.c.l.b16 %v2932_v58  ;;  %v2983_v38 = vpop.permute.xlu0 %2982 }
 0x571   :  { %v3046_v53 = vsel %vm1930_vm6, %v5813_v28, %v2983_v38 }
 0x572   :  { %v2901_v33 = vadd.f32 %v5772_v36, %v2881_v11 }
 0x574   :  { %v2917_v30 = vmax.f32 %v2901_v33, 0.0  ;;  %v3066_v33 = vsel %vm2692_vm10, %v3046_v53, %v2999_v9 }
 0x576   :  { %v2933_v46 = vpack.c.bf16 %v2917_v30, %v2917_v30  ;;  %v2985_v28 = vpop.permute.xlu1 %2984 }
 0x578   :  { %v2965_v54 = vunpack.c.l.b16 %v2933_v46 }
 0x57a   :  { %v5911_v56 = vpack.c.b16 %v2965_v54, %v2964_v10 }
 0x57c   :  { %3030 = vrot.lane.b32.xlu0 %v5911_v56, %s4244_s8 }
 0x584   :  { %3016 = vrot.lane.b32.xlu0 %v5911_v56, %s4245_s28 }
 0x587   :  { %v2850_v55 = vpop.f32.mrf.mxu2 }
 0x58c   :  { %3002 = vrot.lane.b32.xlu0 %v5911_v56, %s4242_s27 }
 0x58f   :  { %v2852_v63 = vpop.f32.mrf.mxu2 }
 0x594   :  { %2988 = vrot.lane.b32.xlu0 %v5911_v56, %s4241_s1 }
 0x596   :  { %v3029_v19 = vpop.permute.xlu2 %3028 }
 0x597   :  { %v3098_v31 = vsel %vm3092_vm13, %v3081_v52, %v3029_v19  ;;  %v2855_v18 = vpop.f32.mrf.mxu2  ;;  %v3049_v52 = vsel %vm1930_vm6, %v5806_v42, %v2985_v28  ;;  %v4195_v28 = vld [vmem:[%s6112_s5 + $0x8] sm:$0xff] }
 0x598   :  { %v2882_v13 = vmax.f32 %v2850_v55, %v2855_v18  ;;  %4033 = vmatmul.msk.bf16.gmra.mxu3 %vm3148_vm14, %v3098_v31 }
 0x59a   :  { %v2902_v14 = vadd.f32 %v5772_v36, %v2882_v13 }
 0x59c   :  { %3036 = vrot.lane.b32.xlu0 %v6122_v3, %s4244_s8  ;;  %v2918_v5 = vmax.f32 %v2902_v14, 0.0 }
 0x59e   :  { %v2934_v57 = vpack.c.bf16 %v2918_v5, %v2918_v5  ;;  %v3015_v24 = vpop.permute.xlu2 %3014 }
 0x59f   :  { %v2857_v15 = vpop.f32.mrf.mxu2  ;;  %v3083_v58 = vsel %vm3075_vm12, %v3066_v33, %v3015_v24  ;;  %v4199_v33 = vld [vmem:[%s6112_s5 + $0x28] sm:$0xff] }
 0x5a0   :  { %v2883_v0 = vmax.f32 %v2852_v63, %v2857_v15  ;;  %v2966_v43 = vunpack.c.l.b16 %v2934_v57 }
 0x5a2   :  { %v2903_v62 = vadd.f32 %v5772_v36, %v2883_v0 }
 0x5a4   :  { %v2919_v23 = vmax.f32 %v2903_v62, 0.0  ;;  %3022 = vrot.lane.b32.xlu0 %v6122_v3, %s4245_s28 }
 0x5a6   :  { %v2935_v25 = vpack.c.bf16 %v2919_v23, %v2919_v23  ;;  %v3001_v12 = vpop.permute.xlu2 %3000 }
 0x5a7   :  { %v2860_v16 = vpop.f32.mrf.mxu2  ;;  %v3068_v19 = vsel %vm2692_vm10, %v3049_v52, %v3001_v12 }
 0x5a8   :  { %v2967_v21 = vunpack.c.l.b16 %v2935_v25 }
 0x5aa   :  { %v2976_v22 = vpack.c.b16 %v2967_v21, %v2966_v43 }
 0x5ac   :  { %3032 = vrot.lane.b32.xlu1 %v2976_v22, %s4244_s8 }
 0x5ae   :  { %v2987_v14 = vpop.permute.xlu2 %2986 }
 0x5af   :  { %v2862_v48 = vpop.f32.mrf.mxu2  ;;  %v3052_v0 = vsel %vm1930_vm6, %v5836_v27, %v2987_v14 }
 0x5b3   :  { %v3174_v45 = vpop.f32.mrf.mxu3 }
 0x5b4   :  { %3018 = vrot.lane.b32.xlu1 %v2976_v22, %s4245_s28 }
 0x5b7   :  { %v2865_v44 = vpop.f32.mrf.mxu2 }
 0x5b8   :  { %v2884_v29 = vmax.f32 %v2860_v16, %v2865_v44 }
 0x5ba   :  { %v2904_v49 = vadd.f32 %v5772_v36, %v2884_v29 }
 0x5bb   :  { %v3176_v47 = vpop.f32.mrf.mxu3 }
 0x5bc   :  { %3004 = vrot.lane.b32.xlu1 %v2976_v22, %s4242_s27  ;;  %v2920_v35 = vmax.f32 %v2904_v49, 0.0 }
 0x5be   :  { %v2936_v1 = vpack.c.bf16 %v2920_v35, %v2920_v35 }
 0x5bf   :  { %v2867_v61 = vpop.f32.mrf.mxu2 }
 0x5c0   :  { %v2885_v4 = vmax.f32 %v2862_v48, %v2867_v61  ;;  %v2968_v8 = vunpack.c.l.b16 %v2936_v1 }
 0x5c2   :  { %v2905_v32 = vadd.f32 %v5772_v36, %v2885_v4  ;;  %v5945_v36 = vld [vmem:[%s6111_s9] ss:$0 sm:$0xff]  ;;  %s4246_s9 = smov 96  }
 0x5c4   :  { %v2921_v41 = vmax.f32 %v2905_v32, 0.0  ;;  %2990 = vrot.lane.b32.xlu1 %v2976_v22, %s4241_s1 }
 0x5c6   :  { %v2937_v2 = vpack.c.bf16 %v2921_v41, %v2921_v41 }
 0x5c8   :  { %v2969_v37 = vunpack.c.l.b16 %v2937_v2 }
 0x5ca   :  { %v2977_v7 = vpack.c.b16 %v2969_v37, %v2968_v8 }
 0x5cc   :  { %3034 = vrot.lane.b32.xlu2 %v2977_v7, %s4244_s8 }
 0x5d4   :  { %3020 = vrot.lane.b32.xlu2 %v2977_v7, %s4245_s28 }
 0x5dc   :  { %3006 = vrot.lane.b32.xlu2 %v2977_v7, %s4242_s27 }
 0x5e3   :  { %v3179_v26 = vpop.f32.mrf.mxu3 }
 0x5e4   :  { %v3214_v6 = vmax.f32 %v3174_v45, %v3179_v26 }
 0x5e6   :  { %v3226_v60 = vadd.f32 %v5945_v36, %v3214_v6 }
 0x5e8   :  { %v3234_v20 = vmax.f32 %v3226_v60, 0.0 }
 0x5ea   :  { %v3242_v54 = vpack.c.bf16 %v3234_v20, %v3234_v20  ;;  %v4200_v20 = vld [vmem:[%s6112_s5 + $0x30] sm:$0xff] }
 0x5eb   :  { %v3181_v40 = vpop.f32.mrf.mxu3 }
 0x5ec   :  { %v3215_v11 = vmax.f32 %v3176_v47, %v3181_v40  ;;  %v3258_v63 = vunpack.c.l.b16 %v3242_v54  ;;  %v4201_v40 = vld [vmem:[%s6112_s5 + $0x38] sm:$0xff] }
 0x5ed   :  { %3410 = vmatpush.bf16.msra.mxu3 %v4201_v40 }
 0x5ee   :  { %v3227_v30 = vadd.f32 %v5945_v36, %v3215_v11  ;;  %v3031_v46 = vpop.permute.xlu0 %3030 }
 0x5ef   :  { %v3100_v10 = vsel %vm3092_vm13, %v3083_v58, %v3031_v46  ;;  %v4198_v58 = vld [vmem:[%s6112_s5 + $0x20] sm:$0xff] }
 0x5f0   :  { %v3235_v55 = vmax.f32 %v3227_v30, 0.0  ;;  %4034 = vmatmul.msk.bf16.gmra.mxu3 %vm3148_vm14, %v3100_v10  ;;  %v4197_v10 = vld [vmem:[%s6112_s5 + $0x18] sm:$0xff] }
 0x5f1   :  { %3411 = vmatpush.bf16.msra.mxu3 %v4200_v20 }
 0x5f2   :  { %v3243_v34 = vpack.c.bf16 %v3235_v55, %v3235_v55  ;;  %v4196_v55 = vld [vmem:[%s6112_s5 + $0x10] sm:$0xff] }
 0x5f4   :  { %v3259_v59 = vunpack.c.l.b16 %v3243_v34 }
 0x5f5   :  { %3412 = vmatpush.bf16.msra.mxu3 %v4199_v33 }
 0x5f6   :  { %v5955_v50 = vpack.c.b16 %v3259_v59, %v3258_v63  ;;  %v3017_v39 = vpop.permute.xlu0 %3016 }
 0x5f7   :  { %v3085_v31 = vsel %vm3075_vm12, %v3068_v19, %v3017_v39  ;;  %v4194_v19 = vld [vmem:[%s6112_s5] sm:$0xff] }
 0x5f8   :  { %3270 = vrot.lane.b32.xlu0 %v5955_v50, %s4242_s27  ;;  %3276 = vrot.lane.b32.xlu1 %v5955_v50, %s4244_s8 }
 0x5f9   :  { %3413 = vmatpush.bf16.msra.mxu3 %v4198_v58 }
 0x5fd   :  { %3414 = vmatpush.bf16.msra.mxu3 %v4197_v10 }
 0x5fe   :  { %v3003_v15 = vpop.permute.xlu0 %3002 }
 0x5ff   :  { %v3070_v62 = vsel %vm2692_vm10, %v3052_v0, %v3003_v15 }
 0x601   :  { %3415 = vmatpush.bf16.msra.mxu3 %v4196_v55 }
 0x605   :  { %3416 = vmatpush.bf16.msra.mxu3 %v4195_v28 }
 0x606   :  { %v2989_v25 = vpop.permute.xlu0 %2988 }
 0x607   :  { %v3055_v43 = vsel %vm1930_vm6, %v5894_v51, %v2989_v25 }
 0x609   :  { %3417 = vmatpush.bf16.msra.mxu3 %v4194_v19 }
 0x60e   :  { %v3037_v27 = vpop.permute.xlu0 %3036 }
 0x616   :  { %v3023_v4 = vpop.permute.xlu0 %3022 }
 0x61b   :  { %v3184_v1 = vpop.f32.mrf.mxu3 }
 0x61e   :  { %v3033_v18 = vpop.permute.xlu1 %3032 }
 0x61f   :  { %v3102_v13 = vsel %vm3092_vm13, %v3085_v31, %v3033_v18 }
 0x620   :  { %4035 = vmatmul.msk.bf16.gmra.mxu3 %vm3148_vm14, %v3102_v13 }
 0x623   :  { %v3186_v41 = vpop.f32.mrf.mxu3 }
 0x626   :  { %v3019_v5 = vpop.permute.xlu1 %3018  ;;  %v3035_v42 = vpop.permute.xlu2 %3034 }
 0x627   :  { %v3087_v57 = vsel %vm3075_vm12, %v3070_v62, %v3019_v5 }
 0x628   :  { %v3104_v23 = vsel %vm3092_vm13, %v3087_v57, %v3035_v42 }
 0x62e   :  { %v3005_v16 = vpop.permute.xlu1 %3004  ;;  %v3021_v22 = vpop.permute.xlu2 %3020 }
 0x62f   :  { %v3072_v21 = vsel %vm2692_vm10, %v3055_v43, %v3005_v16 }
 0x630   :  { %4036 = vmatmul.msk.bf16.gmra.mxu3 %vm3148_vm14, %v3104_v23  ;;  %v3089_v48 = vsel %vm3075_vm12, %v3072_v21, %v3021_v22 }
 0x631   :  { %v3106_v44 = vsel %vm3092_vm13, %v3089_v48, %v3037_v27  ;;  %v3292_v48 = vsel %vm2692_vm10, 0, %v5872_v17  ;;  %v4203_v17 = vld [vmem:[%s6112_s5 + $0x48] sm:$0xff] }
 0x632   :  { %3445 = vmatpush.bf16.msrb.mxu3 %v4203_v17 }
 0x636   :  { %v2991_v29 = vpop.permute.xlu1 %2990  ;;  %v3007_v61 = vpop.permute.xlu2 %3006 }
 0x637   :  { %v3058_v49 = vsel %vm1930_vm6, %v5911_v56, %v2991_v29 }
 0x638   :  { %v3074_v35 = vsel %vm2692_vm10, %v3058_v49, %v3007_v61 }
 0x639   :  { %v3091_v51 = vsel %vm3075_vm12, %v3074_v35, %v3023_v4 }
 0x63a   :  { %v3107_v32 = vsel %vm3092_vm13, %v3091_v51, %v3037_v27 }
 0x640   :  { %4037 = vmatmul.msk.bf16.gmra.mxu3 %vm3148_vm14, %v3106_v44 }
 0x650   :  { %4038 = vmatmul.msk.bf16.gmra.mxu3 %vm3148_vm14, %v3107_v32 }
 0x66a   :  { %v3277_v43 = vpop.permute.xlu1 %3276 }
 0x66b   :  { %v3302_v44 = vsel %vm3092_vm13, %v3292_v48, %v3277_v43  ;;  %v4205_v48 = vld [vmem:[%s6114_s11 + $0x8] sm:$0xff] }
 0x673   :  { %v3189_v2 = vpop.f32.mrf.mxu3 }
 0x674   :  { %v3216_v8 = vmax.f32 %v3184_v1, %v3189_v2 }
 0x676   :  { %v3228_v37 = vadd.f32 %v5945_v36, %v3216_v8  ;;  %v4202_v8 = vld [vmem:[%s6112_s5 + $0x40] sm:$0xff] }
 0x677   :  { %3446 = vmatpush.bf16.msrb.mxu3 %v4202_v8 }
 0x678   :  { %v3236_v45 = vmax.f32 %v3228_v37, 0.0 }
 0x67a   :  { %v3244_v26 = vpack.c.bf16 %v3236_v45, %v3236_v45 }
 0x67b   :  { %v3191_v7 = vpop.f32.mrf.mxu3 }
 0x67c   :  { %v3217_v47 = vmax.f32 %v3186_v41, %v3191_v7  ;;  %v3260_v60 = vunpack.c.l.b16 %v3244_v26 }
 0x67e   :  { %v3229_v56 = vadd.f32 %v5945_v36, %v3217_v47 }
 0x680   :  { %v3237_v6 = vmax.f32 %v3229_v56, 0.0 }
 0x682   :  { %v3245_v38 = vpack.c.bf16 %v3237_v6, %v3237_v6 }
 0x684   :  { %v3261_v9 = vunpack.c.l.b16 %v3245_v38 }
 0x686   :  { %v5987_v24 = vpack.c.b16 %v3261_v9, %v3260_v60 }
 0x688   :  { %3272 = vrot.lane.b32.xlu0 %v5987_v24, %s4242_s27  ;;  %3278 = vrot.lane.b32.xlu1 %v5987_v24, %s4244_s8 }
 0x689   :  { %3284 = vrot.lane.b32.xlu2 %v5987_v24, %s4246_s9 }
 0x6a3   :  { %v3194_v53 = vpop.f32.mrf.mxu3 }
 0x6ab   :  { %v3196_v11 = vpop.f32.mrf.mxu3 }
 0x6b3   :  { %v3199_v30 = vpop.f32.mrf.mxu3 }
 0x6b4   :  { %v3218_v46 = vmax.f32 %v3194_v53, %v3199_v30  ;;  %v4209_v30 = vld [vmem:[%s6114_s11 + $0x28] sm:$0xff] }
 0x6b6   :  { %v3230_v54 = vadd.f32 %v5945_v36, %v3218_v46 }
 0x6b8   :  { %v3238_v63 = vmax.f32 %v3230_v54, 0.0 }
 0x6ba   :  { %v3246_v39 = vpack.c.bf16 %v3238_v63, %v3238_v63 }
 0x6bb   :  { %v3201_v34 = vpop.f32.mrf.mxu3 }
 0x6bc   :  { %v3219_v59 = vmax.f32 %v3196_v11, %v3201_v34  ;;  %v3262_v13 = vunpack.c.l.b16 %v3246_v39  ;;  %v4231_v39 = vld [vmem:[%s6113_s10] ss:$0 sm:$0xff] }
 0x6be   :  { %v3231_v12 = vadd.f32 %v5945_v36, %v3219_v59 }
 0x6c0   :  { %v3239_v52 = vmax.f32 %v3231_v12, 0.0 }
 0x6c2   :  { %v3247_v31 = vpack.c.bf16 %v3239_v52, %v3239_v52 }
 0x6c3   :  { %v3204_v18 = vpop.f32.mrf.mxu3 }
 0x6c4   :  { %v3263_v14 = vunpack.c.l.b16 %v3247_v31 }
 0x6c6   :  { %v3268_v15 = vpack.c.b16 %v3263_v14, %v3262_v13 }
 0x6c8   :  { %3274 = vrot.lane.b32.xlu0 %v3268_v15, %s4242_s27  ;;  %3280 = vrot.lane.b32.xlu1 %v3268_v15, %s4244_s8 }
 0x6c9   :  { %3286 = vrot.lane.b32.xlu2 %v3268_v15, %s4246_s9 }
 0x6cb   :  { %v3206_v5 = vpop.f32.mrf.mxu3 }
 0x6d3   :  { %v3209_v0 = vpop.f32.mrf.mxu3 }
 0x6d4   :  { %v3220_v62 = vmax.f32 %v3204_v18, %v3209_v0 }
 0x6d6   :  { %v3232_v57 = vadd.f32 %v5945_v36, %v3220_v62 }
 0x6d8   :  { %v3240_v23 = vmax.f32 %v3232_v57, 0.0 }
 0x6da   :  { %v3248_v21 = vpack.c.bf16 %v3240_v23, %v3240_v23 }
 0x6db   :  { %v3211_v42 = vpop.f32.mrf.mxu3 }
 0x6dc   :  { %v3221_v25 = vmax.f32 %v3206_v5, %v3211_v42  ;;  %v3264_v49 = vunpack.c.l.b16 %v3248_v21  ;;  %v4206_v21 = vld [vmem:[%s6114_s11 + $0x10] sm:$0xff] }
 0x6de   :  { %v3233_v16 = vadd.f32 %v5945_v36, %v3221_v25  ;;  %v3271_v36 = vpop.permute.xlu0 %3270 }
 0x6df   :  { %v3294_v32 = vsel %vm2692_vm10, 0, %v3271_v36 }
 0x6e0   :  { %v3241_v22 = vmax.f32 %v3233_v16, 0.0  ;;  %v4207_v16 = vld [vmem:[%s6114_s11 + $0x18] sm:$0xff] }
 0x6e2   :  { %v3249_v27 = vpack.c.bf16 %v3241_v22, %v3241_v22 }
 0x6e3   :  { %v3285_v29 = vpop.permute.xlu2 %3284 }
 0x6e4   :  { %v3265_v61 = vunpack.c.l.b16 %v3249_v27  ;;  %v3311_v35 = vsel %vm3309_vm15, %v3302_v44, %v3285_v29  ;;  %v4204_v27 = vld [vmem:[%s6114_s11] sm:$0xff] }
 0x6e5   :  { %3418 = vmatmul.bf16.vlgmr.msra.gmra.mxu3 %v3311_v35 }
 0x6e6   :  { %v3269_v4 = vpack.c.b16 %v3265_v61, %v3264_v49 }
 0x6e8   :  { %3282 = vrot.lane.b32.xlu1 %v3269_v4, %s4244_s8  ;;  %3288 = vrot.lane.b32.xlu2 %v3269_v4, %s4246_s9 }
 0x6f0   :  { %3290 = vrot.lane.b32.xlu2 %v6122_v3, %s4246_s9 }
 0x6fa   :  { %v3279_v51 = vpop.permute.xlu1 %3278  ;;  %v3273_v37 = vpop.permute.xlu0 %3272 }
 0x6fb   :  { %v3304_v1 = vsel %vm3092_vm13, %v3294_v32, %v3279_v51  ;;  %v3297_v45 = vsel %vm2692_vm10, %v5955_v50, %v3273_v37  ;;  %v4211_v50 = vld [vmem:[%s6114_s11 + $0x38] sm:$0xff] }
 0x6fc   :  { %3572 = vmatpush.bf16.msra.mxu2 %v4211_v50 }
 0x723   :  { %v3287_v41 = vpop.permute.xlu2 %3286 }
 0x724   :  { %v3314_v2 = vsel %vm3309_vm15, %v3304_v1, %v3287_v41 }
 0x725   :  { %3423 = vmatmul.bf16.gmra.mxu3 %v3314_v2 }
 0x73a   :  { %v3281_v7 = vpop.permute.xlu1 %3280  ;;  %v3275_v6 = vpop.permute.xlu0 %3274 }
 0x73b   :  { %v3306_v47 = vsel %vm3092_vm13, %v3297_v45, %v3281_v7  ;;  %v3300_v60 = vsel %vm2692_vm10, %v5987_v24, %v3275_v6  ;;  %v4210_v24 = vld [vmem:[%s6114_s11 + $0x30] sm:$0xff] }
 0x73c   :  { %3573 = vmatpush.bf16.msra.mxu2 %v4210_v24  ;;  %v4233_v24 = vld [vmem:[%s6117_s14] ss:$0 sm:$0xff] }
 0x740   :  { %3574 = vmatpush.bf16.msra.mxu2 %v4209_v30 }
 0x742   :  { %v3289_v56 = vpop.permute.xlu2 %3288 }
 0x743   :  { %v3317_v26 = vsel %vm3309_vm15, %v3306_v47, %v3289_v56  ;;  %v4213_v47 = vld [vmem:[%s6116_s13 + $0x8] sm:$0xff]  ;;  %v4212_v56 = vld [vmem:[%s6116_s13] sm:$0xff] }
 0x744   :  { %3428 = vmatmul.bf16.gmra.mxu3 %v3317_v26 }
 0x745   :  { %3616 = vmatpush.bf16.msra.mxu3 %v4213_v47 }
 0x749   :  { %3617 = vmatpush.bf16.msra.mxu3 %v4212_v56 }
 0x74a   :  { %v3291_v38 = vpop.permute.xlu2 %3290 }
 0x75a   :  { %v3283_v9 = vpop.permute.xlu1 %3282 }
 0x75b   :  { %v3308_v40 = vsel %vm3092_vm13, %v3300_v60, %v3283_v9  ;;  %v4232_v60 = vld [vmem:[%s6115_s12] ss:$0 sm:$0xff] }
 0x75c   :  { %v3320_v53 = vsel %vm3309_vm15, %v3308_v40, %v3291_v38 }
 0x75d   :  { %3433 = vmatmul.bf16.gmra.mxu3 %v3320_v53 }
 0x768   :  { %v3419_v20 = vpop.f32.mrf.mxu3 }
 0x76d   :  { %4079 = vmatmul.msk.bf16.vlgmr.msrb.gmra.mxu3 %vm2692_vm10, %v3268_v15 }
 0x770   :  { %v3421_v11 = vpop.f32.mrf.mxu3 }
 0x77d   :  { %4080 = vmatmul.msk.bf16.gmra.mxu3 %vm2692_vm10, %v3269_v4 }
 0x78d   :  { %3457 = vmatmul.bf16.gmra.mxu3 %v6122_v3 }
 0x79d   :  { %3462 = vmatmul.bf16.gmra.mxu3 %v6122_v3  ;;  %v4208_v3 = vld [vmem:[%s6114_s11 + $0x20] sm:$0xff] }
 0x79e   :  { %3575 = vmatpush.bf16.msra.mxu2 %v4208_v3 }
 0x7a2   :  { %3576 = vmatpush.bf16.msra.mxu2 %v4207_v16 }
 0x7a6   :  { %3577 = vmatpush.bf16.msra.mxu2 %v4206_v21 }
 0x7a8   :  { %v3424_v33 = vpop.f32.mrf.mxu3 }
 0x7aa   :  { %3578 = vmatpush.bf16.msra.mxu2 %v4205_v48 }
 0x7ae   :  { %3579 = vmatpush.bf16.msra.mxu2 %v4204_v27 }
 0x7b0   :  { %v3426_v58 = vpop.f32.mrf.mxu3 }
 0x7c7   :  { %v3429_v46 = vpop.f32.mrf.mxu3 }
 0x7cf   :  { %v3431_v10 = vpop.f32.mrf.mxu3 }
 0x7e0   :  { %v3434_v54 = vpop.f32.mrf.mxu3 }
 0x7e8   :  { %v3436_v55 = vpop.f32.mrf.mxu3 }
 0x7f0   :  { %v3448_v34 = vpop.f32.mrf.mxu3 }
 0x7f1   :  { %v3449_v28 = vadd.f32 %v3448_v34, %v3419_v20 }
 0x7f8   :  { %v3450_v63 = vpop.f32.mrf.mxu3 }
 0x7f9   :  { %v3451_v18 = vadd.f32 %v3450_v63, %v3421_v11 }
 0x800   :  { %v3453_v59 = vpop.f32.mrf.mxu3 }
 0x801   :  { %v3454_v12 = vadd.f32 %v3453_v59, %v3424_v33 }
 0x803   :  { %v3468_v52 = vmax.f32 %v3449_v28, %v3454_v12 }
 0x805   :  { %v3476_v19 = vadd.f32 %v4231_v39, %v3468_v52 }
 0x807   :  { %v3480_v14 = vmax.f32 %v3476_v19, 0.0 }
 0x808   :  { %v3455_v31 = vpop.f32.mrf.mxu3 }
 0x809   :  { %v3456_v13 = vadd.f32 %v3455_v31, %v3426_v58  ;;  %v3484_v0 = vpack.c.bf16 %v3480_v14, %v3480_v14 }
 0x80b   :  { %v3469_v15 = vmax.f32 %v3451_v18, %v3456_v13  ;;  %v3490_v23 = vunpack.c.l.b16 %v3484_v0 }
 0x80d   :  { %v3477_v5 = vadd.f32 %v4231_v39, %v3469_v15 }
 0x80f   :  { %v3481_v62 = vmax.f32 %v3477_v5, 0.0 }
 0x810   :  { %v3458_v57 = vpop.f32.mrf.mxu3 }
 0x811   :  { %v3485_v42 = vpack.c.bf16 %v3481_v62, %v3481_v62  ;;  %v3459_v29 = vadd.f32 %v3458_v57, %v3429_v46 }
 0x813   :  { %v3491_v25 = vunpack.c.l.b16 %v3485_v42 }
 0x815   :  { %v3492_v43 = vpack.c.b16 %v3491_v25, %v3490_v23 }
 0x818   :  { %v3460_v22 = vpop.f32.mrf.mxu3 }
 0x819   :  { %v3461_v17 = vadd.f32 %v3460_v22, %v3431_v10 }
 0x820   :  { %v3463_v44 = vpop.f32.mrf.mxu3 }
 0x821   :  { %v3464_v49 = vadd.f32 %v3463_v44, %v3434_v54 }
 0x823   :  { %v3470_v61 = vmax.f32 %v3459_v29, %v3464_v49 }
 0x825   :  { %v3478_v35 = vadd.f32 %v4231_v39, %v3470_v61 }
 0x827   :  { %v3482_v51 = vmax.f32 %v3478_v35, 0.0 }
 0x828   :  { %v3465_v4 = vpop.f32.mrf.mxu3 }
 0x829   :  { %v3466_v36 = vadd.f32 %v3465_v4, %v3436_v55  ;;  %v3486_v41 = vpack.c.bf16 %v3482_v51, %v3482_v51 }
 0x82b   :  { %v3471_v32 = vmax.f32 %v3461_v17, %v3466_v36  ;;  %v3495_v37 = vunpack.c.l.b16 %v3486_v41 }
 0x82d   :  { %v3479_v1 = vadd.f32 %v4231_v39, %v3471_v32 }
 0x82f   :  { %v3483_v2 = vmax.f32 %v3479_v1, 0.0 }
 0x831   :  { %v3487_v8 = vpack.c.bf16 %v3483_v2, %v3483_v2 }
 0x833   :  { %v3496_v7 = vunpack.c.l.b16 %v3487_v8 }
 0x835   :  { %v3497_v45 = vpack.c.b16 %v3496_v7, %v3495_v37 }
 0x837   :  { %3498 = vrot.lane.b32.xlu0 %v3497_v45, %s4244_s8 }
 0x8a9   :  { %v3499_v26 = vpop.permute.xlu0 %3498 }
 0x8aa   :  { %v3502_v6 = vsel %vm3092_vm13, %v3492_v43, %v3499_v26 }
 0x8ab   :  { %3580 = vmatmul.bf16.vlgmr.msra.gmra.mxu2 %v3502_v6 }
 0x92e   :  { %v3581_v38 = vpop.f32.mrf.mxu2 }
 0x92f   :  { %v3582_v40 = vadd.f32 %v4232_v60, %v3581_v38 }
 0x936   :  { %v3583_v9 = vpop.f32.mrf.mxu2 }
 0x937   :  { %v3584_v53 = vadd.f32 %v4232_v60, %v3583_v9 }
 0x939   :  { %v3586_v50 = vpack.c.bf16 %v3584_v53, %v3582_v40 }
 0x93b   :  { %4121 = vmatmul.msk.bf16.vlgmr.msra.gmra.mxu3 %vm2692_vm10, %v3586_v50 }
 0x9be   :  { %v3619_v20 = vpop.f32.mrf.mxu3 }
 0x9bf   :  { %v3620_v11 = vadd.f32 %v4233_v24, %v3619_v20 }
 0x9c1   :  { %3625 = vst.msk [vmem:[%s6118_s15] sm:$0xff] %vm3624_vm0, %v3620_v11 }
 0x9c6   :  { %v3621_v33 = vpop.f32.mrf.mxu3 }
 0x9c7   :  { %v3622_v58 = vadd.f32 %v4233_v24, %v3621_v33 }
 0x9c9   :  { %3626 = vst.msk [vmem:[%s6118_s15 + $0x8] sm:$0xff] %vm3624_vm0, %v3622_v58 }

</bundles_post_ra>
